<compile_context>
chip_gen: v7x
topology: tpu7x:2x2x1
jax: 0.10.0
libtpu: 0.0.40
codegen_flags: <defaults>
</compile_context>

<pallas_src>
import functools
import math

import jax
import jax.numpy as jnp
from jax.experimental import pallas as pl
from jax.experimental.pallas import tpu as pltpu


def _round_up(v, m):
    return (v + m - 1) // m * m


def _vmem_limit_bytes():
    """Generation-aware scoped-VMEM cap with a safe fallback."""
    try:
        phys = pltpu.get_tpu_info().vmem_capacity_bytes
    except Exception:  # no TPU backend / interpret mode / attribute mismatch
        phys = 64 * 1024 * 1024
    if phys >= 128 * 1024 * 1024:      # v5e / v6e
        return 96 * 1024 * 1024
    return 44 * 1024 * 1024            # v7x (64 MiB physical) + headroom


# ----------------------------------------------------------------------------
# In-kernel helpers.
# ----------------------------------------------------------------------------
def _zero_halo_frame(buf_ref, *, d, h, w, wl):
    """Zero only the halo frame of a (h+2d, wl+w+wr, C) scratch buffer."""
    wp, c = buf_ref.shape[1], buf_ref.shape[2]
    wr = wp - wl - w
    zrow = jnp.zeros((d, wp, c), buf_ref.dtype)
    buf_ref[0:d, :, :] = zrow                                    # top d rows
    buf_ref[d + h:d + h + d, :, :] = zrow                        # bottom d rows
    buf_ref[d:d + h, 0:wl, :] = jnp.zeros((h, wl, c), buf_ref.dtype)   # left
    buf_ref[d:d + h, wl + w:wl + w + wr, :] = jnp.zeros((h, wr, c),
                                                        buf_ref.dtype)  # right


def _depthwise_s1(buf_ref, dw_ref, *, d, h, w, wl):
    """Depthwise 3x3 (dilation d, stride 1, 'same') from a halo scratch.

    One W-shifted window load per kw, reused across the 3 kh taps; the
    accumulator is initialized from the first tap product (no zeros pass).
    """
    dw = dw_ref[...]                                   # (9, C) f32, tap-major
    acc = None
    for kw in range(3):
        xw = buf_ref[:, pl.ds(wl - d + kw * d, w), :]  # (h+2d, w, C)
        for kh in range(3):
            t = xw[kh * d:kh * d + h] * dw[kh * 3 + kw][None, None, :]
            acc = t if acc is None else acc + t
    return acc                                         # (h, w, C) f32


# ----------------------------------------------------------------------------
# Fused Block_1 kernel (one grid step per batch element).
# ----------------------------------------------------------------------------
def _block1_kernel(x_ref,
                   dw1_ref, pw1_ref, b1_ref,
                   dw2_ref, pw2_ref, b2_ref,
                   dw3_ref, pw3_ref,
                   wsk_ref, b3_ref,
                   o_ref,
                   hx_ref, hy_ref,
                   *, dilation, stride, wl):
    # x_ref:   (1, H, W, Cin)                block input (f32)
    # dw*_ref: (9, C)                        depthwise taps, row k = (kh=k//3, kw=k%3)
    # pw*_ref: (Cin/ Cmid, Cmid/Cout) bf16   pointwise weights, BN scale pre-folded
    # wsk_ref: (Cin, Cout) bf16              skip 1x1 weights, bn3 scale pre-folded
    # b*_ref:  (1, C)                        BN biases
    # o_ref:   (1, Ho, Wo, Cout)
    # hx_ref:  VMEM (H+2d, wl+W+d, Cin) f32  halo scratch for x ("same" pad)
    # hy_ref:  VMEM (H+2d, wl+W+d, Cmid) f32 halo scratch reused for y1 and y2
    d, s = dilation, stride
    H, W, Cin = x_ref.shape[1], x_ref.shape[2], x_ref.shape[3]
    Cmid = pw1_ref.shape[1]
    Ho, Wo, Cout = o_ref.shape[1], o_ref.shape[2], o_ref.shape[3]

    # ---- conv1: depthwise + pointwise(MXU) + bn1 + relu --------------------
    _zero_halo_frame(hx_ref, d=d, h=H, w=W, wl=wl)
    hx_ref[d:d + H, wl:wl + W, :] = x_ref[0]

    y = _depthwise_s1(hx_ref, dw1_ref, d=d, h=H, w=W, wl=wl)      # (H, W, Cin)
    y = jnp.dot(y.reshape(H * W, Cin).astype(jnp.bfloat16), pw1_ref[...],
                preferred_element_type=jnp.float32)               # (H*W, Cmid)
    y = jnp.maximum(y + b1_ref[...], 0.0)

    # ---- conv2: depthwise + pointwise(MXU) + bn2 (no relu) -----------------
    # y1 goes straight into the VMEM halo scratch -- no HBM round trip.
    _zero_halo_frame(hy_ref, d=d, h=H, w=W, wl=wl)
    hy_ref[d:d + H, wl:wl + W, :] = y.reshape(H, W, Cmid)

    y = _depthwise_s1(hy_ref, dw2_ref, d=d, h=H, w=W, wl=wl)      # (H, W, Cmid)
    y = jnp.dot(y.reshape(H * W, Cmid).astype(jnp.bfloat16), pw2_ref[...],
                preferred_element_type=jnp.float32)
    y = y + b2_ref[...]

    # ---- conv3 (strided separable) + skip (strided 1x1) + bn3 + add + relu -
    # Reuse hy as conv3's halo; frame is still zero, only interior rewritten.
    hy_ref[d:d + H, wl:wl + W, :] = y.reshape(H, W, Cmid)

    dw3 = dw3_ref[...]
    acc = None
    for kw in range(3):
        for kh in range(3):
            # All-slice strided reads: only the strided output pixels are
            # touched (4x fewer FMAs / 4x smaller pointwise at stride 2).
            win = hy_ref[pl.ds(kh * d, Ho, stride=s),
                         pl.ds(wl - d + kw * d, Wo, stride=s), :]
            t = win * dw3[kh * 3 + kw][None, None, :]
            acc = t if acc is None else acc + t
    main = jnp.dot(acc.reshape(Ho * Wo, Cmid).astype(jnp.bfloat16), pw3_ref[...],
                   preferred_element_type=jnp.float32)            # (Ho*Wo, Cout)

    # Skip path: stride-s 1x1 conv read from the interior of hx (x is already
    # resident there), bn3 scale pre-folded into wsk, bias added here.
    xs = hx_ref[pl.ds(d, Ho, stride=s), pl.ds(wl, Wo, stride=s), :]
    skip = jnp.dot(xs.reshape(Ho * Wo, Cin).astype(jnp.bfloat16), wsk_ref[...],
                   preferred_element_type=jnp.float32)
    skip = skip + b3_ref[...]

    out = jnp.maximum(skip + main, 0.0)
    o_ref[...] = out.reshape(1, Ho, Wo, Cout).astype(o_ref.dtype)


# ----------------------------------------------------------------------------
# Wrapper (NHWC in / NHWC out).
# ----------------------------------------------------------------------------
def block1_pallas(x_nhwc, params, *, dilation=1, stride=2):
    N, H, W, Cin = x_nhwc.shape
    Cmid = params["pw1"].shape[1]
    Cout = params["pw3"].shape[1]
    d, s = dilation, stride
    Ho = (H - 1) // s + 1
    Wo = (W - 1) // s + 1
    wl = _round_up(max(d, 1), 8)           # sublane-aligned left halo
    Wp = wl + W + d                        # right halo only needs d

    # Fold BN scales into the bf16 pointwise / skip weights (free, wrapper-time).
    pw1 = (params["pw1"] * params["bn1_scale"][None, :]).astype(jnp.bfloat16)
    pw2 = (params["pw2"] * params["bn2_scale"][None, :]).astype(jnp.bfloat16)
    pw3 = params["pw3"].astype(jnp.bfloat16)          # conv3 has no BN (spec)
    wsk = (params["w_skip"] * params["bn3_scale"][None, :]).astype(jnp.bfloat16)
    b1 = params["bn1_bias"].reshape(1, -1)
    b2 = params["bn2_bias"].reshape(1, -1)
    b3 = params["bn3_bias"].reshape(1, -1)

    kernel = functools.partial(_block1_kernel, dilation=d, stride=s, wl=wl)

    flops = 2 * N * (H * W * (9 * Cin + Cin * Cmid)
                     + H * W * (9 * Cmid + Cmid * Cmid)
                     + Ho * Wo * (9 * Cmid + Cmid * Cout)
                     + Ho * Wo * Cin * Cout)
    bytes_accessed = (4 * N * (H * W * Cin + Ho * Wo * Cout)
                      + N * (4 * 9 * (Cin + 2 * Cmid)
                             + 2 * (Cin * Cmid + Cmid * Cmid
                                    + Cmid * Cout + Cin * Cout)
                             + 4 * (2 * Cmid + Cout)))

    return pl.pallas_call(
        kernel,
        out_shape=jax.ShapeDtypeStruct((N, Ho, Wo, Cout), jnp.float32),
        grid_spec=pltpu.PrefetchScalarGridSpec(
            num_scalar_prefetch=0,
            grid=(N,),
            in_specs=[
                pl.BlockSpec((1, H, W, Cin), lambda n: (n, 0, 0, 0)),
                pl.BlockSpec((9, Cin), lambda n: (0, 0)),
                pl.BlockSpec((Cin, Cmid), lambda n: (0, 0)),
                pl.BlockSpec((1, Cmid), lambda n: (0, 0)),
                pl.BlockSpec((9, Cmid), lambda n: (0, 0)),
                pl.BlockSpec((Cmid, Cmid), lambda n: (0, 0)),
                pl.BlockSpec((1, Cmid), lambda n: (0, 0)),
                pl.BlockSpec((9, Cmid), lambda n: (0, 0)),
                pl.BlockSpec((Cmid, Cout), lambda n: (0, 0)),
                pl.BlockSpec((Cin, Cout), lambda n: (0, 0)),
                pl.BlockSpec((1, Cout), lambda n: (0, 0)),
            ],
            out_specs=pl.BlockSpec((1, Ho, Wo, Cout), lambda n: (n, 0, 0, 0)),
            scratch_shapes=[
                pltpu.VMEM((H + 2 * d, Wp, Cin), jnp.float32),
                pltpu.VMEM((H + 2 * d, Wp, Cmid), jnp.float32),
            ],
        ),
        compiler_params=pltpu.CompilerParams(
            dimension_semantics=("parallel",),
            vmem_limit_bytes=_vmem_limit_bytes()),
        cost_estimate=pl.CostEstimate(flops=flops, transcendentals=0,
                                      bytes_accessed=bytes_accessed),
    )(x_nhwc,
      params["dw1"], pw1, b1,
      params["dw2"], pw2, b2,
      params["dw3"], pw3,
      wsk, b3)


def block1_forward(x_nchw, params, *, dilation=1, stride=2):
    x = jnp.transpose(x_nchw, (0, 2, 3, 1))              # NCHW -> NHWC
    out = block1_pallas(x, params, dilation=dilation, stride=stride)
    return jnp.transpose(out, (0, 3, 1, 2))              # NHWC -> NCHW


# ----------------------------------------------------------------------------
# Pure-JAX reference (f32) for a correctness sanity check.
# ----------------------------------------------------------------------------
def _ref_sep_conv(x_nhwc, dw9, pw, *, dilation, stride):
    c = x_nhwc.shape[-1]
    w_dw = dw9.reshape(3, 3, 1, c)
    y = jax.lax.conv_general_dilated(
        x_nhwc, w_dw, window_strides=(stride, stride),
        padding=[(dilation, dilation), (dilation, dilation)],
        rhs_dilation=(dilation, dilation),
        dimension_numbers=("NHWC", "HWIO", "NHWC"),
        feature_group_count=c)
    return jnp.einsum("nhwc,cd->nhwd", y, pw)


def block1_reference(x_nchw, params, *, dilation=1, stride=2):
    x = jnp.transpose(x_nchw, (0, 2, 3, 1))
    y = _ref_sep_conv(x, params["dw1"], params["pw1"], dilation=dilation, stride=1)
    y = jnp.maximum(y * params["bn1_scale"] + params["bn1_bias"], 0.0)
    y = _ref_sep_conv(y, params["dw2"], params["pw2"], dilation=dilation, stride=1)
    y = y * params["bn2_scale"] + params["bn2_bias"]
    y = _ref_sep_conv(y, params["dw3"], params["pw3"], dilation=dilation,
                      stride=stride)
    skip = x[:, ::stride, ::stride, :] @ params["w_skip"]
    skip = skip * params["bn3_scale"] + params["bn3_bias"]
    out = jnp.maximum(skip + y, 0.0)
    return jnp.transpose(out, (0, 3, 1, 2))


# ----------------------------------------------------------------------------
# Deterministic parameter initialization (synthetic weights, no checkpoints).
# ----------------------------------------------------------------------------
def init_params(key, inplanes, planes, eps=1e-5):
    ks = jax.random.split(key, 16)

    def conv_w(k, shape, fan_in):
        return jax.random.normal(k, shape, jnp.float32) / math.sqrt(fan_in)

    def bn_fold(kg, kb, km, kv, c):
        gamma = 1.0 + 0.1 * jax.random.normal(kg, (c,), jnp.float32)
        beta = 0.1 * jax.random.normal(kb, (c,), jnp.float32)
        running_mean = 0.1 * jax.random.normal(km, (c,), jnp.float32)
        running_var = jax.random.uniform(kv, (c,), jnp.float32, 0.5, 1.5)
        scale = gamma / jnp.sqrt(running_var + eps)
        bias = beta - running_mean * scale
        return scale, bias

    p = {}
    # Depthwise weights stored tap-major as (9, C): row k = tap (kh=k//3, kw=k%3).
    p["dw1"] = conv_w(ks[0], (9, inplanes), 9)
    p["pw1"] = conv_w(ks[1], (inplanes, planes), inplanes)
    p["bn1_scale"], p["bn1_bias"] = bn_fold(ks[2], ks[3], ks[4], ks[5], planes)

    p["dw2"] = conv_w(ks[6], (9, planes), 9)
    p["pw2"] = conv_w(ks[7], (planes, planes), planes)
    p["bn2_scale"], p["bn2_bias"] = bn_fold(ks[8], ks[9], ks[10], ks[11], planes)

    p["dw3"] = conv_w(ks[12], (9, planes), 9)
    p["pw3"] = conv_w(ks[13], (planes, planes), planes)

    p["w_skip"] = conv_w(ks[14], (inplanes, planes), inplanes)
    sk = jax.random.split(ks[15], 4)
    p["bn3_scale"], p["bn3_bias"] = bn_fold(sk[0], sk[1], sk[2], sk[3], planes)
    return p


if __name__ == "__main__":
    key = jax.random.PRNGKey(0)
    kx, kp = jax.random.split(key)

    N, Cin, H, W = 2, 4, 16, 16
    planes, dilation, stride = 8, 1, 2

    x = jax.random.normal(kx, (N, Cin, H, W), jnp.float32)   # NCHW like PyTorch
    params = init_params(kp, Cin, planes)

    fwd = jax.jit(functools.partial(block1_forward, dilation=dilation,
                                    stride=stride))
    out = fwd(x, params)
    jax.block_until_ready(out)

    expected = (N, planes, (H - 1) // stride + 1, (W - 1) // stride + 1)
    assert out.shape == expected, (out.shape, expected)
    assert bool(jnp.all(jnp.isfinite(out)))
    assert bool(jnp.all(out >= 0.0))  # final ReLU

    # Loose tolerance: kernel uses bf16 MXU operands with BN scale folded into
    # the bf16 weights; reference is full f32.
    ref = block1_reference(x, params, dilation=dilation, stride=stride)
    assert bool(jnp.allclose(out, ref, atol=0.1, rtol=0.1)), \
        float(jnp.max(jnp.abs(out - ref)))

    print("KERNEL_OK")
</pallas_src>

<mosaic_0001>
module attributes {stable_mosaic.version = 11 : i64} {
  func.func @_block1_kernel(%arg0: i32, %arg1: memref<1x16x16x4xf32, #tpu.memory_space<vmem>>, %arg2: memref<9x4xf32, #tpu.memory_space<vmem>>, %arg3: memref<4x8xbf16, #tpu.memory_space<vmem>>, %arg4: memref<1x8xf32, #tpu.memory_space<vmem>>, %arg5: memref<9x8xf32, #tpu.memory_space<vmem>>, %arg6: memref<8x8xbf16, #tpu.memory_space<vmem>>, %arg7: memref<1x8xf32, #tpu.memory_space<vmem>>, %arg8: memref<9x8xf32, #tpu.memory_space<vmem>>, %arg9: memref<8x8xbf16, #tpu.memory_space<vmem>>, %arg10: memref<4x8xbf16, #tpu.memory_space<vmem>>, %arg11: memref<1x8xf32, #tpu.memory_space<vmem>>, %arg12: memref<1x8x8x8xf32, #tpu.memory_space<vmem>>, %arg13: memref<18x25x4xf32, #tpu.memory_space<vmem>>, %arg14: memref<18x25x8xf32, #tpu.memory_space<vmem>>) attributes {dimension_semantics = [#tpu.dimension_semantics<parallel>], iteration_bounds = array<i64: 2>, scalar_prefetch = 0 : i64, scratch_operands = 2 : i64, tpu.core_type = #tpu.core_type<tc>, window_params = [{transform_indices = @transform_0, window_bounds = array<i64: 1, 16, 16, 4>}, {pipeline_mode = #tpu.pipeline_mode<synchronous>, transform_indices = @transform_1, window_bounds = array<i64: 9, 4>}, {pipeline_mode = #tpu.pipeline_mode<synchronous>, transform_indices = @transform_2, window_bounds = array<i64: 4, 8>}, {pipeline_mode = #tpu.pipeline_mode<synchronous>, transform_indices = @transform_3, window_bounds = array<i64: 1, 8>}, {pipeline_mode = #tpu.pipeline_mode<synchronous>, transform_indices = @transform_4, window_bounds = array<i64: 9, 8>}, {pipeline_mode = #tpu.pipeline_mode<synchronous>, transform_indices = @transform_5, window_bounds = array<i64: 8, 8>}, {pipeline_mode = #tpu.pipeline_mode<synchronous>, transform_indices = @transform_6, window_bounds = array<i64: 1, 8>}, {pipeline_mode = #tpu.pipeline_mode<synchronous>, transform_indices = @transform_7, window_bounds = array<i64: 9, 8>}, {pipeline_mode = #tpu.pipeline_mode<synchronous>, transform_indices = @transform_8, window_bounds = array<i64: 8, 8>}, {pipeline_mode = #tpu.pipeline_mode<synchronous>, transform_indices = @transform_9, window_bounds = array<i64: 4, 8>}, {pipeline_mode = #tpu.pipeline_mode<synchronous>, transform_indices = @transform_10, window_bounds = array<i64: 1, 8>}, {transform_indices = @transform_11, window_bounds = array<i64: 1, 8, 8, 8>}]} {
    %cst = arith.constant 0.000000e+00 : f32
    %0 = vector.broadcast %cst : f32 to vector<1x25x4xf32>
    %c0 = arith.constant 0 : index
    %c0_0 = arith.constant 0 : index
    %c0_1 = arith.constant 0 : index
    %1 = vector.load %arg13[%c0, %c0_0, %c0_1] : memref<18x25x4xf32, #tpu.memory_space<vmem>>, vector<1x25x4xf32>
    tpu.vector_store %arg13[%c0, %c0_0, %c0_1], %0 {strides = array<i32>} : memref<18x25x4xf32, #tpu.memory_space<vmem>>, vector<1x25x4xf32>,
    %c17 = arith.constant 17 : index
    %c0_2 = arith.constant 0 : index
    %c0_3 = arith.constant 0 : index
    %2 = vector.load %arg13[%c17, %c0_2, %c0_3] : memref<18x25x4xf32, #tpu.memory_space<vmem>>, vector<1x25x4xf32>
    tpu.vector_store %arg13[%c17, %c0_2, %c0_3], %0 {strides = array<i32>} : memref<18x25x4xf32, #tpu.memory_space<vmem>>, vector<1x25x4xf32>,
    %cst_4 = arith.constant 0.000000e+00 : f32
    %3 = vector.broadcast %cst_4 : f32 to vector<16x8x4xf32>
    %c1 = arith.constant 1 : index
    %c0_5 = arith.constant 0 : index
    %c0_6 = arith.constant 0 : index
    %4 = vector.load %arg13[%c1, %c0_5, %c0_6] : memref<18x25x4xf32, #tpu.memory_space<vmem>>, vector<16x8x4xf32>
    tpu.vector_store %arg13[%c1, %c0_5, %c0_6], %3 {strides = array<i32>} : memref<18x25x4xf32, #tpu.memory_space<vmem>>, vector<16x8x4xf32>,
    %cst_7 = arith.constant 0.000000e+00 : f32
    %5 = vector.broadcast %cst_7 : f32 to vector<16x1x4xf32>
    %c1_8 = arith.constant 1 : index
    %c24 = arith.constant 24 : index
    %c0_9 = arith.constant 0 : index
    %6 = vector.load %arg13[%c1_8, %c24, %c0_9] : memref<18x25x4xf32, #tpu.memory_space<vmem>>, vector<16x1x4xf32>
    tpu.vector_store %arg13[%c1_8, %c24, %c0_9], %5 {strides = array<i32>} : memref<18x25x4xf32, #tpu.memory_space<vmem>>, vector<16x1x4xf32>,
    %c0_10 = arith.constant 0 : index
    %c0_11 = arith.constant 0 : index
    %c0_12 = arith.constant 0 : index
    %c0_13 = arith.constant 0 : index
    %7 = vector.load %arg1[%c0_10, %c0_11, %c0_12, %c0_13] : memref<1x16x16x4xf32, #tpu.memory_space<vmem>>, vector<1x16x16x4xf32>
    %8 = vector.shape_cast %7 : vector<1x16x16x4xf32> to vector<16x16x4xf32>
    %c1_14 = arith.constant 1 : index
    %c8 = arith.constant 8 : index
    %c0_15 = arith.constant 0 : index
    %9 = vector.load %arg13[%c1_14, %c8, %c0_15] : memref<18x25x4xf32, #tpu.memory_space<vmem>>, vector<16x16x4xf32>
    tpu.vector_store %arg13[%c1_14, %c8, %c0_15], %8 {strides = array<i32>} : memref<18x25x4xf32, #tpu.memory_space<vmem>>, vector<16x16x4xf32>,
    %c0_16 = arith.constant 0 : index
    %c0_17 = arith.constant 0 : index
    %10 = vector.load %arg2[%c0_16, %c0_17] : memref<9x4xf32, #tpu.memory_space<vmem>>, vector<9x4xf32>
    %c0_18 = arith.constant 0 : index
    %c7 = arith.constant 7 : index
    %c0_19 = arith.constant 0 : index
    %11 = vector.load %arg13[%c0_18, %c7, %c0_19] : memref<18x25x4xf32, #tpu.memory_space<vmem>>, vector<18x16x4xf32>
    %12 = vector.extract_strided_slice %11 {offsets = [0, 0, 0], sizes = [16, 16, 4], strides = [1, 1, 1]} : vector<18x16x4xf32> to vector<16x16x4xf32>
    %13 = vector.extract_strided_slice %10 {offsets = [0, 0], sizes = [1, 4], strides = [1, 1]} : vector<9x4xf32> to vector<1x4xf32>
    %14 = vector.shape_cast %13 : vector<1x4xf32> to vector<4xf32>
    %15 = vector.shape_cast %14 : vector<4xf32> to vector<1x1x4xf32>
    %16 = vector.broadcast %15 : vector<1x1x4xf32> to vector<16x16x4xf32>
    %17 = arith.mulf %12, %16 : vector<16x16x4xf32>
    %18 = vector.extract_strided_slice %11 {offsets = [1, 0, 0], sizes = [16, 16, 4], strides = [1, 1, 1]} : vector<18x16x4xf32> to vector<16x16x4xf32>
    %19 = vector.extract_strided_slice %10 {offsets = [3, 0], sizes = [1, 4], strides = [1, 1]} : vector<9x4xf32> to vector<1x4xf32>
    %20 = vector.shape_cast %19 : vector<1x4xf32> to vector<4xf32>
    %21 = vector.shape_cast %20 : vector<4xf32> to vector<1x1x4xf32>
    %22 = vector.broadcast %21 : vector<1x1x4xf32> to vector<16x16x4xf32>
    %23 = arith.mulf %18, %22 : vector<16x16x4xf32>
    %24 = arith.addf %17, %23 : vector<16x16x4xf32>
    %25 = vector.extract_strided_slice %11 {offsets = [2, 0, 0], sizes = [16, 16, 4], strides = [1, 1, 1]} : vector<18x16x4xf32> to vector<16x16x4xf32>
    %26 = vector.extract_strided_slice %10 {offsets = [6, 0], sizes = [1, 4], strides = [1, 1]} : vector<9x4xf32> to vector<1x4xf32>
    %27 = vector.shape_cast %26 : vector<1x4xf32> to vector<4xf32>
    %28 = vector.shape_cast %27 : vector<4xf32> to vector<1x1x4xf32>
    %29 = vector.broadcast %28 : vector<1x1x4xf32> to vector<16x16x4xf32>
    %30 = arith.mulf %25, %29 : vector<16x16x4xf32>
    %31 = arith.addf %24, %30 : vector<16x16x4xf32>
    %c0_20 = arith.constant 0 : index
    %c8_21 = arith.constant 8 : index
    %c0_22 = arith.constant 0 : index
    %32 = vector.load %arg13[%c0_20, %c8_21, %c0_22] : memref<18x25x4xf32, #tpu.memory_space<vmem>>, vector<18x16x4xf32>
    %33 = vector.extract_strided_slice %32 {offsets = [0, 0, 0], sizes = [16, 16, 4], strides = [1, 1, 1]} : vector<18x16x4xf32> to vector<16x16x4xf32>
    %34 = vector.extract_strided_slice %10 {offsets = [1, 0], sizes = [1, 4], strides = [1, 1]} : vector<9x4xf32> to vector<1x4xf32>
    %35 = vector.shape_cast %34 : vector<1x4xf32> to vector<4xf32>
    %36 = vector.shape_cast %35 : vector<4xf32> to vector<1x1x4xf32>
    %37 = vector.broadcast %36 : vector<1x1x4xf32> to vector<16x16x4xf32>
    %38 = arith.mulf %33, %37 : vector<16x16x4xf32>
    %39 = arith.addf %31, %38 : vector<16x16x4xf32>
    %40 = vector.extract_strided_slice %32 {offsets = [1, 0, 0], sizes = [16, 16, 4], strides = [1, 1, 1]} : vector<18x16x4xf32> to vector<16x16x4xf32>
    %41 = vector.extract_strided_slice %10 {offsets = [4, 0], sizes = [1, 4], strides = [1, 1]} : vector<9x4xf32> to vector<1x4xf32>
    %42 = vector.shape_cast %41 : vector<1x4xf32> to vector<4xf32>
    %43 = vector.shape_cast %42 : vector<4xf32> to vector<1x1x4xf32>
    %44 = vector.broadcast %43 : vector<1x1x4xf32> to vector<16x16x4xf32>
    %45 = arith.mulf %40, %44 : vector<16x16x4xf32>
    %46 = arith.addf %39, %45 : vector<16x16x4xf32>
    %47 = vector.extract_strided_slice %32 {offsets = [2, 0, 0], sizes = [16, 16, 4], strides = [1, 1, 1]} : vector<18x16x4xf32> to vector<16x16x4xf32>
    %48 = vector.extract_strided_slice %10 {offsets = [7, 0], sizes = [1, 4], strides = [1, 1]} : vector<9x4xf32> to vector<1x4xf32>
    %49 = vector.shape_cast %48 : vector<1x4xf32> to vector<4xf32>
    %50 = vector.shape_cast %49 : vector<4xf32> to vector<1x1x4xf32>
    %51 = vector.broadcast %50 : vector<1x1x4xf32> to vector<16x16x4xf32>
    %52 = arith.mulf %47, %51 : vector<16x16x4xf32>
    %53 = arith.addf %46, %52 : vector<16x16x4xf32>
    %c0_23 = arith.constant 0 : index
    %c9 = arith.constant 9 : index
    %c0_24 = arith.constant 0 : index
    %54 = vector.load %arg13[%c0_23, %c9, %c0_24] : memref<18x25x4xf32, #tpu.memory_space<vmem>>, vector<18x16x4xf32>
    %55 = vector.extract_strided_slice %54 {offsets = [0, 0, 0], sizes = [16, 16, 4], strides = [1, 1, 1]} : vector<18x16x4xf32> to vector<16x16x4xf32>
    %56 = vector.extract_strided_slice %10 {offsets = [2, 0], sizes = [1, 4], strides = [1, 1]} : vector<9x4xf32> to vector<1x4xf32>
    %57 = vector.shape_cast %56 : vector<1x4xf32> to vector<4xf32>
    %58 = vector.shape_cast %57 : vector<4xf32> to vector<1x1x4xf32>
    %59 = vector.broadcast %58 : vector<1x1x4xf32> to vector<16x16x4xf32>
    %60 = arith.mulf %55, %59 : vector<16x16x4xf32>
    %61 = arith.addf %53, %60 : vector<16x16x4xf32>
    %62 = vector.extract_strided_slice %54 {offsets = [1, 0, 0], sizes = [16, 16, 4], strides = [1, 1, 1]} : vector<18x16x4xf32> to vector<16x16x4xf32>
    %63 = vector.extract_strided_slice %10 {offsets = [5, 0], sizes = [1, 4], strides = [1, 1]} : vector<9x4xf32> to vector<1x4xf32>
    %64 = vector.shape_cast %63 : vector<1x4xf32> to vector<4xf32>
    %65 = vector.shape_cast %64 : vector<4xf32> to vector<1x1x4xf32>
    %66 = vector.broadcast %65 : vector<1x1x4xf32> to vector<16x16x4xf32>
    %67 = arith.mulf %62, %66 : vector<16x16x4xf32>
    %68 = arith.addf %61, %67 : vector<16x16x4xf32>
    %69 = vector.extract_strided_slice %54 {offsets = [2, 0, 0], sizes = [16, 16, 4], strides = [1, 1, 1]} : vector<18x16x4xf32> to vector<16x16x4xf32>
    %70 = vector.extract_strided_slice %10 {offsets = [8, 0], sizes = [1, 4], strides = [1, 1]} : vector<9x4xf32> to vector<1x4xf32>
    %71 = vector.shape_cast %70 : vector<1x4xf32> to vector<4xf32>
    %72 = vector.shape_cast %71 : vector<4xf32> to vector<1x1x4xf32>
    %73 = vector.broadcast %72 : vector<1x1x4xf32> to vector<16x16x4xf32>
    %74 = arith.mulf %69, %73 : vector<16x16x4xf32>
    %75 = arith.addf %68, %74 : vector<16x16x4xf32>
    %76 = vector.shape_cast %75 : vector<16x16x4xf32> to vector<256x4xf32>
    %77 = arith.truncf %76 : vector<256x4xf32> to vector<256x4xbf16>
    %c0_25 = arith.constant 0 : index
    %c0_26 = arith.constant 0 : index
    %78 = vector.load %arg3[%c0_25, %c0_26] : memref<4x8xbf16, #tpu.memory_space<vmem>>, vector<4x8xbf16>
    %cst_27 = arith.constant dense<0.000000e+00> : vector<256x8xf32>
    %79 = tpu.matmul %77, %78, %cst_27 {dimension_numbers = #tpu.dot_dimension_numbers<[1], [0], [0], [1], [0, 0, 1, 1], [], []>} : vector<256x4xbf16>, vector<4x8xbf16>, vector<256x8xf32> -> vector<256x8xf32>
    %c0_28 = arith.constant 0 : index
    %c0_29 = arith.constant 0 : index
    %80 = vector.load %arg4[%c0_28, %c0_29] : memref<1x8xf32, #tpu.memory_space<vmem>>, vector<1x8xf32>
    %81 = vector.broadcast %80 : vector<1x8xf32> to vector<256x8xf32>
    %82 = arith.addf %79, %81 : vector<256x8xf32>
    %cst_30 = arith.constant 0.000000e+00 : f32
    %83 = vector.broadcast %cst_30 : f32 to vector<256x8xf32>
    %84 = arith.maximumf %82, %83 : vector<256x8xf32>
    %cst_31 = arith.constant 0.000000e+00 : f32
    %85 = vector.broadcast %cst_31 : f32 to vector<1x25x8xf32>
    %c0_32 = arith.constant 0 : index
    %c0_33 = arith.constant 0 : index
    %c0_34 = arith.constant 0 : index
    %86 = vector.load %arg14[%c0_32, %c0_33, %c0_34] : memref<18x25x8xf32, #tpu.memory_space<vmem>>, vector<1x25x8xf32>
    tpu.vector_store %arg14[%c0_32, %c0_33, %c0_34], %85 {strides = array<i32>} : memref<18x25x8xf32, #tpu.memory_space<vmem>>, vector<1x25x8xf32>,
    %c17_35 = arith.constant 17 : index
    %c0_36 = arith.constant 0 : index
    %c0_37 = arith.constant 0 : index
    %87 = vector.load %arg14[%c17_35, %c0_36, %c0_37] : memref<18x25x8xf32, #tpu.memory_space<vmem>>, vector<1x25x8xf32>
    tpu.vector_store %arg14[%c17_35, %c0_36, %c0_37], %85 {strides = array<i32>} : memref<18x25x8xf32, #tpu.memory_space<vmem>>, vector<1x25x8xf32>,
    %cst_38 = arith.constant 0.000000e+00 : f32
    %88 = vector.broadcast %cst_38 : f32 to vector<16x8x8xf32>
    %c1_39 = arith.constant 1 : index
    %c0_40 = arith.constant 0 : index
    %c0_41 = arith.constant 0 : index
    %89 = vector.load %arg14[%c1_39, %c0_40, %c0_41] : memref<18x25x8xf32, #tpu.memory_space<vmem>>, vector<16x8x8xf32>
    tpu.vector_store %arg14[%c1_39, %c0_40, %c0_41], %88 {strides = array<i32>} : memref<18x25x8xf32, #tpu.memory_space<vmem>>, vector<16x8x8xf32>,
    %cst_42 = arith.constant 0.000000e+00 : f32
    %90 = vector.broadcast %cst_42 : f32 to vector<16x1x8xf32>
    %c1_43 = arith.constant 1 : index
    %c24_44 = arith.constant 24 : index
    %c0_45 = arith.constant 0 : index
    %91 = vector.load %arg14[%c1_43, %c24_44, %c0_45] : memref<18x25x8xf32, #tpu.memory_space<vmem>>, vector<16x1x8xf32>
    tpu.vector_store %arg14[%c1_43, %c24_44, %c0_45], %90 {strides = array<i32>} : memref<18x25x8xf32, #tpu.memory_space<vmem>>, vector<16x1x8xf32>,
    %92 = vector.shape_cast %84 : vector<256x8xf32> to vector<16x16x8xf32>
    %c1_46 = arith.constant 1 : index
    %c8_47 = arith.constant 8 : index
    %c0_48 = arith.constant 0 : index
    %93 = vector.load %arg14[%c1_46, %c8_47, %c0_48] : memref<18x25x8xf32, #tpu.memory_space<vmem>>, vector<16x16x8xf32>
    tpu.vector_store %arg14[%c1_46, %c8_47, %c0_48], %92 {strides = array<i32>} : memref<18x25x8xf32, #tpu.memory_space<vmem>>, vector<16x16x8xf32>,
    %c0_49 = arith.constant 0 : index
    %c0_50 = arith.constant 0 : index
    %94 = vector.load %arg5[%c0_49, %c0_50] : memref<9x8xf32, #tpu.memory_space<vmem>>, vector<9x8xf32>
    %c0_51 = arith.constant 0 : index
    %c7_52 = arith.constant 7 : index
    %c0_53 = arith.constant 0 : index
    %95 = vector.load %arg14[%c0_51, %c7_52, %c0_53] : memref<18x25x8xf32, #tpu.memory_space<vmem>>, vector<18x16x8xf32>
    %96 = vector.extract_strided_slice %95 {offsets = [0, 0, 0], sizes = [16, 16, 8], strides = [1, 1, 1]} : vector<18x16x8xf32> to vector<16x16x8xf32>
    %97 = vector.extract_strided_slice %94 {offsets = [0, 0], sizes = [1, 8], strides = [1, 1]} : vector<9x8xf32> to vector<1x8xf32>
    %98 = vector.shape_cast %97 : vector<1x8xf32> to vector<8xf32>
    %99 = vector.shape_cast %98 : vector<8xf32> to vector<1x1x8xf32>
    %100 = vector.broadcast %99 : vector<1x1x8xf32> to vector<16x16x8xf32>
    %101 = arith.mulf %96, %100 : vector<16x16x8xf32>
    %102 = vector.extract_strided_slice %95 {offsets = [1, 0, 0], sizes = [16, 16, 8], strides = [1, 1, 1]} : vector<18x16x8xf32> to vector<16x16x8xf32>
    %103 = vector.extract_strided_slice %94 {offsets = [3, 0], sizes = [1, 8], strides = [1, 1]} : vector<9x8xf32> to vector<1x8xf32>
    %104 = vector.shape_cast %103 : vector<1x8xf32> to vector<8xf32>
    %105 = vector.shape_cast %104 : vector<8xf32> to vector<1x1x8xf32>
    %106 = vector.broadcast %105 : vector<1x1x8xf32> to vector<16x16x8xf32>
    %107 = arith.mulf %102, %106 : vector<16x16x8xf32>
    %108 = arith.addf %101, %107 : vector<16x16x8xf32>
    %109 = vector.extract_strided_slice %95 {offsets = [2, 0, 0], sizes = [16, 16, 8], strides = [1, 1, 1]} : vector<18x16x8xf32> to vector<16x16x8xf32>
    %110 = vector.extract_strided_slice %94 {offsets = [6, 0], sizes = [1, 8], strides = [1, 1]} : vector<9x8xf32> to vector<1x8xf32>
    %111 = vector.shape_cast %110 : vector<1x8xf32> to vector<8xf32>
    %112 = vector.shape_cast %111 : vector<8xf32> to vector<1x1x8xf32>
    %113 = vector.broadcast %112 : vector<1x1x8xf32> to vector<16x16x8xf32>
    %114 = arith.mulf %109, %113 : vector<16x16x8xf32>
    %115 = arith.addf %108, %114 : vector<16x16x8xf32>
    %c0_54 = arith.constant 0 : index
    %c8_55 = arith.constant 8 : index
    %c0_56 = arith.constant 0 : index
    %116 = vector.load %arg14[%c0_54, %c8_55, %c0_56] : memref<18x25x8xf32, #tpu.memory_space<vmem>>, vector<18x16x8xf32>
    %117 = vector.extract_strided_slice %116 {offsets = [0, 0, 0], sizes = [16, 16, 8], strides = [1, 1, 1]} : vector<18x16x8xf32> to vector<16x16x8xf32>
    %118 = vector.extract_strided_slice %94 {offsets = [1, 0], sizes = [1, 8], strides = [1, 1]} : vector<9x8xf32> to vector<1x8xf32>
    %119 = vector.shape_cast %118 : vector<1x8xf32> to vector<8xf32>
    %120 = vector.shape_cast %119 : vector<8xf32> to vector<1x1x8xf32>
    %121 = vector.broadcast %120 : vector<1x1x8xf32> to vector<16x16x8xf32>
    %122 = arith.mulf %117, %121 : vector<16x16x8xf32>
    %123 = arith.addf %115, %122 : vector<16x16x8xf32>
    %124 = vector.extract_strided_slice %116 {offsets = [1, 0, 0], sizes = [16, 16, 8], strides = [1, 1, 1]} : vector<18x16x8xf32> to vector<16x16x8xf32>
    %125 = vector.extract_strided_slice %94 {offsets = [4, 0], sizes = [1, 8], strides = [1, 1]} : vector<9x8xf32> to vector<1x8xf32>
    %126 = vector.shape_cast %125 : vector<1x8xf32> to vector<8xf32>
    %127 = vector.shape_cast %126 : vector<8xf32> to vector<1x1x8xf32>
    %128 = vector.broadcast %127 : vector<1x1x8xf32> to vector<16x16x8xf32>
    %129 = arith.mulf %124, %128 : vector<16x16x8xf32>
    %130 = arith.addf %123, %129 : vector<16x16x8xf32>
    %131 = vector.extract_strided_slice %116 {offsets = [2, 0, 0], sizes = [16, 16, 8], strides = [1, 1, 1]} : vector<18x16x8xf32> to vector<16x16x8xf32>
    %132 = vector.extract_strided_slice %94 {offsets = [7, 0], sizes = [1, 8], strides = [1, 1]} : vector<9x8xf32> to vector<1x8xf32>
    %133 = vector.shape_cast %132 : vector<1x8xf32> to vector<8xf32>
    %134 = vector.shape_cast %133 : vector<8xf32> to vector<1x1x8xf32>
    %135 = vector.broadcast %134 : vector<1x1x8xf32> to vector<16x16x8xf32>
    %136 = arith.mulf %131, %135 : vector<16x16x8xf32>
    %137 = arith.addf %130, %136 : vector<16x16x8xf32>
    %c0_57 = arith.constant 0 : index
    %c9_58 = arith.constant 9 : index
    %c0_59 = arith.constant 0 : index
    %138 = vector.load %arg14[%c0_57, %c9_58, %c0_59] : memref<18x25x8xf32, #tpu.memory_space<vmem>>, vector<18x16x8xf32>
    %139 = vector.extract_strided_slice %138 {offsets = [0, 0, 0], sizes = [16, 16, 8], strides = [1, 1, 1]} : vector<18x16x8xf32> to vector<16x16x8xf32>
    %140 = vector.extract_strided_slice %94 {offsets = [2, 0], sizes = [1, 8], strides = [1, 1]} : vector<9x8xf32> to vector<1x8xf32>
    %141 = vector.shape_cast %140 : vector<1x8xf32> to vector<8xf32>
    %142 = vector.shape_cast %141 : vector<8xf32> to vector<1x1x8xf32>
    %143 = vector.broadcast %142 : vector<1x1x8xf32> to vector<16x16x8xf32>
    %144 = arith.mulf %139, %143 : vector<16x16x8xf32>
    %145 = arith.addf %137, %144 : vector<16x16x8xf32>
    %146 = vector.extract_strided_slice %138 {offsets = [1, 0, 0], sizes = [16, 16, 8], strides = [1, 1, 1]} : vector<18x16x8xf32> to vector<16x16x8xf32>
    %147 = vector.extract_strided_slice %94 {offsets = [5, 0], sizes = [1, 8], strides = [1, 1]} : vector<9x8xf32> to vector<1x8xf32>
    %148 = vector.shape_cast %147 : vector<1x8xf32> to vector<8xf32>
    %149 = vector.shape_cast %148 : vector<8xf32> to vector<1x1x8xf32>
    %150 = vector.broadcast %149 : vector<1x1x8xf32> to vector<16x16x8xf32>
    %151 = arith.mulf %146, %150 : vector<16x16x8xf32>
    %152 = arith.addf %145, %151 : vector<16x16x8xf32>
    %153 = vector.extract_strided_slice %138 {offsets = [2, 0, 0], sizes = [16, 16, 8], strides = [1, 1, 1]} : vector<18x16x8xf32> to vector<16x16x8xf32>
    %154 = vector.extract_strided_slice %94 {offsets = [8, 0], sizes = [1, 8], strides = [1, 1]} : vector<9x8xf32> to vector<1x8xf32>
    %155 = vector.shape_cast %154 : vector<1x8xf32> to vector<8xf32>
    %156 = vector.shape_cast %155 : vector<8xf32> to vector<1x1x8xf32>
    %157 = vector.broadcast %156 : vector<1x1x8xf32> to vector<16x16x8xf32>
    %158 = arith.mulf %153, %157 : vector<16x16x8xf32>
    %159 = arith.addf %152, %158 : vector<16x16x8xf32>
    %160 = vector.shape_cast %159 : vector<16x16x8xf32> to vector<256x8xf32>
    %161 = arith.truncf %160 : vector<256x8xf32> to vector<256x8xbf16>
    %c0_60 = arith.constant 0 : index
    %c0_61 = arith.constant 0 : index
    %162 = vector.load %arg6[%c0_60, %c0_61] : memref<8x8xbf16, #tpu.memory_space<vmem>>, vector<8x8xbf16>
    %cst_62 = arith.constant dense<0.000000e+00> : vector<256x8xf32>
    %163 = tpu.matmul %161, %162, %cst_62 {dimension_numbers = #tpu.dot_dimension_numbers<[1], [0], [0], [1], [0, 0, 1, 1], [], []>} : vector<256x8xbf16>, vector<8x8xbf16>, vector<256x8xf32> -> vector<256x8xf32>
    %c0_63 = arith.constant 0 : index
    %c0_64 = arith.constant 0 : index
    %164 = vector.load %arg7[%c0_63, %c0_64] : memref<1x8xf32, #tpu.memory_space<vmem>>, vector<1x8xf32>
    %165 = vector.broadcast %164 : vector<1x8xf32> to vector<256x8xf32>
    %166 = arith.addf %163, %165 : vector<256x8xf32>
    %167 = vector.shape_cast %166 : vector<256x8xf32> to vector<16x16x8xf32>
    %c1_65 = arith.constant 1 : index
    %c8_66 = arith.constant 8 : index
    %c0_67 = arith.constant 0 : index
    %168 = vector.load %arg14[%c1_65, %c8_66, %c0_67] : memref<18x25x8xf32, #tpu.memory_space<vmem>>, vector<16x16x8xf32>
    tpu.vector_store %arg14[%c1_65, %c8_66, %c0_67], %167 {strides = array<i32>} : memref<18x25x8xf32, #tpu.memory_space<vmem>>, vector<16x16x8xf32>,
    %c0_68 = arith.constant 0 : index
    %c0_69 = arith.constant 0 : index
    %169 = vector.load %arg8[%c0_68, %c0_69] : memref<9x8xf32, #tpu.memory_space<vmem>>, vector<9x8xf32>
    %c0_70 = arith.constant 0 : index
    %c7_71 = arith.constant 7 : index
    %c0_72 = arith.constant 0 : index
    %170 = tpu.strided_load %arg14[%c0_70, %c7_71, %c0_72] {strides = array<i32: 2, 2, 1>} : memref<18x25x8xf32, #tpu.memory_space<vmem>>, vector<8x8x8xf32>
    %171 = vector.extract_strided_slice %169 {offsets = [0, 0], sizes = [1, 8], strides = [1, 1]} : vector<9x8xf32> to vector<1x8xf32>
    %172 = vector.shape_cast %171 : vector<1x8xf32> to vector<8xf32>
    %173 = vector.shape_cast %172 : vector<8xf32> to vector<1x1x8xf32>
    %174 = vector.broadcast %173 : vector<1x1x8xf32> to vector<8x8x8xf32>
    %175 = arith.mulf %170, %174 : vector<8x8x8xf32>
    %c1_73 = arith.constant 1 : index
    %c7_74 = arith.constant 7 : index
    %c0_75 = arith.constant 0 : index
    %176 = tpu.strided_load %arg14[%c1_73, %c7_74, %c0_75] {strides = array<i32: 2, 2, 1>} : memref<18x25x8xf32, #tpu.memory_space<vmem>>, vector<8x8x8xf32>
    %177 = vector.extract_strided_slice %169 {offsets = [3, 0], sizes = [1, 8], strides = [1, 1]} : vector<9x8xf32> to vector<1x8xf32>
    %178 = vector.shape_cast %177 : vector<1x8xf32> to vector<8xf32>
    %179 = vector.shape_cast %178 : vector<8xf32> to vector<1x1x8xf32>
    %180 = vector.broadcast %179 : vector<1x1x8xf32> to vector<8x8x8xf32>
    %181 = arith.mulf %176, %180 : vector<8x8x8xf32>
    %182 = arith.addf %175, %181 : vector<8x8x8xf32>
    %c2 = arith.constant 2 : index
    %c7_76 = arith.constant 7 : index
    %c0_77 = arith.constant 0 : index
    %183 = tpu.strided_load %arg14[%c2, %c7_76, %c0_77] {strides = array<i32: 2, 2, 1>} : memref<18x25x8xf32, #tpu.memory_space<vmem>>, vector<8x8x8xf32>
    %184 = vector.extract_strided_slice %169 {offsets = [6, 0], sizes = [1, 8], strides = [1, 1]} : vector<9x8xf32> to vector<1x8xf32>
    %185 = vector.shape_cast %184 : vector<1x8xf32> to vector<8xf32>
    %186 = vector.shape_cast %185 : vector<8xf32> to vector<1x1x8xf32>
    %187 = vector.broadcast %186 : vector<1x1x8xf32> to vector<8x8x8xf32>
    %188 = arith.mulf %183, %187 : vector<8x8x8xf32>
    %189 = arith.addf %182, %188 : vector<8x8x8xf32>
    %c0_78 = arith.constant 0 : index
    %c8_79 = arith.constant 8 : index
    %c0_80 = arith.constant 0 : index
    %190 = tpu.strided_load %arg14[%c0_78, %c8_79, %c0_80] {strides = array<i32: 2, 2, 1>} : memref<18x25x8xf32, #tpu.memory_space<vmem>>, vector<8x8x8xf32>
    %191 = vector.extract_strided_slice %169 {offsets = [1, 0], sizes = [1, 8], strides = [1, 1]} : vector<9x8xf32> to vector<1x8xf32>
    %192 = vector.shape_cast %191 : vector<1x8xf32> to vector<8xf32>
    %193 = vector.shape_cast %192 : vector<8xf32> to vector<1x1x8xf32>
    %194 = vector.broadcast %193 : vector<1x1x8xf32> to vector<8x8x8xf32>
    %195 = arith.mulf %190, %194 : vector<8x8x8xf32>
    %196 = arith.addf %189, %195 : vector<8x8x8xf32>
    %c1_81 = arith.constant 1 : index
    %c8_82 = arith.constant 8 : index
    %c0_83 = arith.constant 0 : index
    %197 = tpu.strided_load %arg14[%c1_81, %c8_82, %c0_83] {strides = array<i32: 2, 2, 1>} : memref<18x25x8xf32, #tpu.memory_space<vmem>>, vector<8x8x8xf32>
    %198 = vector.extract_strided_slice %169 {offsets = [4, 0], sizes = [1, 8], strides = [1, 1]} : vector<9x8xf32> to vector<1x8xf32>
    %199 = vector.shape_cast %198 : vector<1x8xf32> to vector<8xf32>
    %200 = vector.shape_cast %199 : vector<8xf32> to vector<1x1x8xf32>
    %201 = vector.broadcast %200 : vector<1x1x8xf32> to vector<8x8x8xf32>
    %202 = arith.mulf %197, %201 : vector<8x8x8xf32>
    %203 = arith.addf %196, %202 : vector<8x8x8xf32>
    %c2_84 = arith.constant 2 : index
    %c8_85 = arith.constant 8 : index
    %c0_86 = arith.constant 0 : index
    %204 = tpu.strided_load %arg14[%c2_84, %c8_85, %c0_86] {strides = array<i32: 2, 2, 1>} : memref<18x25x8xf32, #tpu.memory_space<vmem>>, vector<8x8x8xf32>
    %205 = vector.extract_strided_slice %169 {offsets = [7, 0], sizes = [1, 8], strides = [1, 1]} : vector<9x8xf32> to vector<1x8xf32>
    %206 = vector.shape_cast %205 : vector<1x8xf32> to vector<8xf32>
    %207 = vector.shape_cast %206 : vector<8xf32> to vector<1x1x8xf32>
    %208 = vector.broadcast %207 : vector<1x1x8xf32> to vector<8x8x8xf32>
    %209 = arith.mulf %204, %208 : vector<8x8x8xf32>
    %210 = arith.addf %203, %209 : vector<8x8x8xf32>
    %c0_87 = arith.constant 0 : index
    %c9_88 = arith.constant 9 : index
    %c0_89 = arith.constant 0 : index
    %211 = tpu.strided_load %arg14[%c0_87, %c9_88, %c0_89] {strides = array<i32: 2, 2, 1>} : memref<18x25x8xf32, #tpu.memory_space<vmem>>, vector<8x8x8xf32>
    %212 = vector.extract_strided_slice %169 {offsets = [2, 0], sizes = [1, 8], strides = [1, 1]} : vector<9x8xf32> to vector<1x8xf32>
    %213 = vector.shape_cast %212 : vector<1x8xf32> to vector<8xf32>
    %214 = vector.shape_cast %213 : vector<8xf32> to vector<1x1x8xf32>
    %215 = vector.broadcast %214 : vector<1x1x8xf32> to vector<8x8x8xf32>
    %216 = arith.mulf %211, %215 : vector<8x8x8xf32>
    %217 = arith.addf %210, %216 : vector<8x8x8xf32>
    %c1_90 = arith.constant 1 : index
    %c9_91 = arith.constant 9 : index
    %c0_92 = arith.constant 0 : index
    %218 = tpu.strided_load %arg14[%c1_90, %c9_91, %c0_92] {strides = array<i32: 2, 2, 1>} : memref<18x25x8xf32, #tpu.memory_space<vmem>>, vector<8x8x8xf32>
    %219 = vector.extract_strided_slice %169 {offsets = [5, 0], sizes = [1, 8], strides = [1, 1]} : vector<9x8xf32> to vector<1x8xf32>
    %220 = vector.shape_cast %219 : vector<1x8xf32> to vector<8xf32>
    %221 = vector.shape_cast %220 : vector<8xf32> to vector<1x1x8xf32>
    %222 = vector.broadcast %221 : vector<1x1x8xf32> to vector<8x8x8xf32>
    %223 = arith.mulf %218, %222 : vector<8x8x8xf32>
    %224 = arith.addf %217, %223 : vector<8x8x8xf32>
    %c2_93 = arith.constant 2 : index
    %c9_94 = arith.constant 9 : index
    %c0_95 = arith.constant 0 : index
    %225 = tpu.strided_load %arg14[%c2_93, %c9_94, %c0_95] {strides = array<i32: 2, 2, 1>} : memref<18x25x8xf32, #tpu.memory_space<vmem>>, vector<8x8x8xf32>
    %226 = vector.extract_strided_slice %169 {offsets = [8, 0], sizes = [1, 8], strides = [1, 1]} : vector<9x8xf32> to vector<1x8xf32>
    %227 = vector.shape_cast %226 : vector<1x8xf32> to vector<8xf32>
    %228 = vector.shape_cast %227 : vector<8xf32> to vector<1x1x8xf32>
    %229 = vector.broadcast %228 : vector<1x1x8xf32> to vector<8x8x8xf32>
    %230 = arith.mulf %225, %229 : vector<8x8x8xf32>
    %231 = arith.addf %224, %230 : vector<8x8x8xf32>
    %232 = vector.shape_cast %231 : vector<8x8x8xf32> to vector<64x8xf32>
    %233 = arith.truncf %232 : vector<64x8xf32> to vector<64x8xbf16>
    %c0_96 = arith.constant 0 : index
    %c0_97 = arith.constant 0 : index
    %234 = vector.load %arg9[%c0_96, %c0_97] : memref<8x8xbf16, #tpu.memory_space<vmem>>, vector<8x8xbf16>
    %cst_98 = arith.constant dense<0.000000e+00> : vector<64x8xf32>
    %235 = tpu.matmul %233, %234, %cst_98 {dimension_numbers = #tpu.dot_dimension_numbers<[1], [0], [0], [1], [0, 0, 1, 1], [], []>} : vector<64x8xbf16>, vector<8x8xbf16>, vector<64x8xf32> -> vector<64x8xf32>
    %c1_99 = arith.constant 1 : index
    %c8_100 = arith.constant 8 : index
    %c0_101 = arith.constant 0 : index
    %236 = tpu.strided_load %arg13[%c1_99, %c8_100, %c0_101] {strides = array<i32: 2, 2, 1>} : memref<18x25x4xf32, #tpu.memory_space<vmem>>, vector<8x8x4xf32>
    %237 = vector.shape_cast %236 : vector<8x8x4xf32> to vector<64x4xf32>
    %238 = arith.truncf %237 : vector<64x4xf32> to vector<64x4xbf16>
    %c0_102 = arith.constant 0 : index
    %c0_103 = arith.constant 0 : index
    %239 = vector.load %arg10[%c0_102, %c0_103] : memref<4x8xbf16, #tpu.memory_space<vmem>>, vector<4x8xbf16>
    %cst_104 = arith.constant dense<0.000000e+00> : vector<64x8xf32>
    %240 = tpu.matmul %238, %239, %cst_104 {dimension_numbers = #tpu.dot_dimension_numbers<[1], [0], [0], [1], [0, 0, 1, 1], [], []>} : vector<64x4xbf16>, vector<4x8xbf16>, vector<64x8xf32> -> vector<64x8xf32>
    %c0_105 = arith.constant 0 : index
    %c0_106 = arith.constant 0 : index
    %241 = vector.load %arg11[%c0_105, %c0_106] : memref<1x8xf32, #tpu.memory_space<vmem>>, vector<1x8xf32>
    %242 = vector.broadcast %241 : vector<1x8xf32> to vector<64x8xf32>
    %243 = arith.addf %240, %242 : vector<64x8xf32>
    %244 = arith.addf %243, %235 : vector<64x8xf32>
    %cst_107 = arith.constant 0.000000e+00 : f32
    %245 = vector.broadcast %cst_107 : f32 to vector<64x8xf32>
    %246 = arith.maximumf %244, %245 : vector<64x8xf32>
    %247 = vector.shape_cast %246 : vector<64x8xf32> to vector<1x8x8x8xf32>
    %c0_108 = arith.constant 0 : index
    %c0_109 = arith.constant 0 : index
    %c0_110 = arith.constant 0 : index
    %c0_111 = arith.constant 0 : index
    %248 = vector.load %arg12[%c0_108, %c0_109, %c0_110, %c0_111] : memref<1x8x8x8xf32, #tpu.memory_space<vmem>>, vector<1x8x8x8xf32>
    tpu.vector_store %arg12[%c0_108, %c0_109, %c0_110, %c0_111], %247 {strides = array<i32>} : memref<1x8x8x8xf32, #tpu.memory_space<vmem>>, vector<1x8x8x8xf32>,
    return
  }
  func.func @transform_0(%arg0: i32) -> (i32, i32, i32, i32) {
    %c0_i32 = arith.constant 0 : i32
    %c0_i32_0 = arith.constant 0 : i32
    %c0_i32_1 = arith.constant 0 : i32
    %c0_i32_2 = arith.constant 0 : i32
    return %arg0, %c0_i32, %c0_i32_0, %c0_i32_1 : i32, i32, i32, i32
  }
  func.func @transform_1(%arg0: i32) -> (i32, i32) {
    %c0_i32 = arith.constant 0 : i32
    %c0_i32_0 = arith.constant 0 : i32
    %c0_i32_1 = arith.constant 0 : i32
    return %c0_i32, %c0_i32_0 : i32, i32
  }
  func.func @transform_2(%arg0: i32) -> (i32, i32) {
    %c0_i32 = arith.constant 0 : i32
    %c0_i32_0 = arith.constant 0 : i32
    %c0_i32_1 = arith.constant 0 : i32
    return %c0_i32, %c0_i32_0 : i32, i32
  }
  func.func @transform_3(%arg0: i32) -> (i32, i32) {
    %c0_i32 = arith.constant 0 : i32
    %c0_i32_0 = arith.constant 0 : i32
    %c0_i32_1 = arith.constant 0 : i32
    return %c0_i32, %c0_i32_0 : i32, i32
  }
  func.func @transform_4(%arg0: i32) -> (i32, i32) {
    %c0_i32 = arith.constant 0 : i32
    %c0_i32_0 = arith.constant 0 : i32
    %c0_i32_1 = arith.constant 0 : i32
    return %c0_i32, %c0_i32_0 : i32, i32
  }
  func.func @transform_5(%arg0: i32) -> (i32, i32) {
    %c0_i32 = arith.constant 0 : i32
    %c0_i32_0 = arith.constant 0 : i32
    %c0_i32_1 = arith.constant 0 : i32
    return %c0_i32, %c0_i32_0 : i32, i32
  }
  func.func @transform_6(%arg0: i32) -> (i32, i32) {
    %c0_i32 = arith.constant 0 : i32
    %c0_i32_0 = arith.constant 0 : i32
    %c0_i32_1 = arith.constant 0 : i32
    return %c0_i32, %c0_i32_0 : i32, i32
  }
  func.func @transform_7(%arg0: i32) -> (i32, i32) {
    %c0_i32 = arith.constant 0 : i32
    %c0_i32_0 = arith.constant 0 : i32
    %c0_i32_1 = arith.constant 0 : i32
    return %c0_i32, %c0_i32_0 : i32, i32
  }
  func.func @transform_8(%arg0: i32) -> (i32, i32) {
    %c0_i32 = arith.constant 0 : i32
    %c0_i32_0 = arith.constant 0 : i32
    %c0_i32_1 = arith.constant 0 : i32
    return %c0_i32, %c0_i32_0 : i32, i32
  }
  func.func @transform_9(%arg0: i32) -> (i32, i32) {
    %c0_i32 = arith.constant 0 : i32
    %c0_i32_0 = arith.constant 0 : i32
    %c0_i32_1 = arith.constant 0 : i32
    return %c0_i32, %c0_i32_0 : i32, i32
  }
  func.func @transform_10(%arg0: i32) -> (i32, i32) {
    %c0_i32 = arith.constant 0 : i32
    %c0_i32_0 = arith.constant 0 : i32
    %c0_i32_1 = arith.constant 0 : i32
    return %c0_i32, %c0_i32_0 : i32, i32
  }
  func.func @transform_11(%arg0: i32) -> (i32, i32, i32, i32) {
    %c0_i32 = arith.constant 0 : i32
    %c0_i32_0 = arith.constant 0 : i32
    %c0_i32_1 = arith.constant 0 : i32
    %c0_i32_2 = arith.constant 0 : i32
    return %arg0, %c0_i32, %c0_i32_0, %c0_i32_1 : i32, i32, i32, i32
  }
}

</mosaic_0001>

<bundles_post_ra>
// kernel: block1_forward.1
= control target key start
LH: loop header
LB: loop body
LE: loop exit
PB: predicated region body
PF: predicated region fallthrough
CT: control target
= control target key end

     0   :  { %s3432_s17 = smov 0   ;;  %s5666_s0 = inlined_call_operand.vmem [shape: f32[2,16,16,4], index: 0, kind: input, shape index: {}]   ;;  %s5667_s1 = inlined_call_operand.vmem [shape: f32[9,4], index: 1, kind: input, shape index: {}]   ;;  %s5668_s2 = inlined_call_operand.vmem [shape: bf16[4,8], index: 2, kind: input, shape index: {}]   ;;  %s5669_s3 = inlined_call_operand.vmem [shape: f32[1,8], index: 3, kind: input, shape index: {}]   ;;  %s5670_s4 = inlined_call_operand.vmem [shape: f32[9,8], index: 4, kind: input, shape index: {}]   ;;  %s5671_s5 = inlined_call_operand.vmem [shape: bf16[8,8], index: 5, kind: input, shape index: {}]   ;;  %s5672_s6 = inlined_call_operand.vmem [shape: f32[1,8], index: 6, kind: input, shape index: {}]   ;;  %s5673_s7 = inlined_call_operand.vmem [shape: f32[9,8], index: 7, kind: input, shape index: {}]   ;;  %s5674_s8 = inlined_call_operand.vmem [shape: bf16[8,8], index: 8, kind: input, shape index: {}]   ;;  %s5675_s9 = inlined_call_operand.vmem [shape: bf16[4,8], index: 9, kind: input, shape index: {}]   ;;  %s5676_s10 = inlined_call_operand.vmem [shape: f32[1,8], index: 10, kind: input, shape index: {}]   ;;  %s5677_s11 = inlined_call_operand.vmem [shape: f32[2,8,8,8], index: 11, kind: output, shape index: {}]  }
   0x1 LB: > { %s3137_s18 = sadd.s32 4294967295, %s3369_s17   ;;  %p3141_p0 = scmp.ge.s32.totalorder %s3369_s17, 1  ;;  %s3369_s17 = sphi %s3432_s17, %s21_s17  }
   0x2   : > { %p337_p1 = scmp.lt.s32.totalorder %s3369_s17, 3 }
   0x4   : > { %p338_p2 = pnand %p3141_p0, %p337_p1 }
   0x6   : > { %341 = sbr.rel (%p338_p2) target bundleno = 951 (0x3b7), region = 64 }
   0xd   : > { %v1202_v0 = vld [vmem:[%s5668_s2] sm:$0x3]  ;;  %vm1258_vm0 = vcmask 1041408   ;;  %p3445_p3 = scmp.lt.s32.totalorder %s3137_s18, 1  ;;  %vm388_vm1 = vcmask 31744   ;;  %v534_v1 = vlaneseq  ;;  %v5678_v3 = vmov 0.0  }
   0xe   : > { %3346 = vmatprep.subr.msk.bf16.mxu0 %vm1258_vm0, %v1202_v0  ;;  %v1260_v2 = vsel %vm1258_vm0, %v1202_v0, 0  ;;  %389 = vst.msk [vmem:[#allocation2] sm:$0xff] %vm388_vm1, %v5678_v3  ;;  %390 = vst.msk [vmem:[#allocation2 + $0x8] sm:$0xff] %vm388_vm1, %v5678_v3  ;;  %vm392_vm2 = vcmask 24576   ;;  %3347 = vmatprep.subr.msk.bf16.mxu1 %vm1258_vm0, %v1202_v0  ;;  %v496_v5 = vld [vmem:[%s5667_s1] sm:$0xff]  ;;  %vm1455_vm3 = vcmask 64512  }
   0xf   : > { %391 = vst.msk [vmem:[#allocation2 + $0x10] sm:$0xff] %vm388_vm1, %v5678_v3  ;;  %400 = vst.msk [vmem:[#allocation2 + $0x20] sm:$0xff] %vm388_vm1, %v5678_v3  ;;  %3241 = vmatpush3.bf16.msra.mxu0 %v1260_v2  ;;  %s5883_s18 = smov (!%p3445_p3, %s3137_s18), 1  ;;  %v535_v4 = vshrl.u32 %v534_v1, 7  ;;  %3329 = vmatpush3.bf16.msra.mxu1 %v1260_v2  ;;  %vm2293_vm4 = vcmask 1043456   ;;  %vm1459_vm5 = vcmask 57344  }
  0x10   : > { %401 = vst.msk [vmem:[#allocation2 + $0x40] sm:$0xff] %vm388_vm1, %v5678_v3  ;;  %402 = vst.msk [vmem:[#allocation2 + $0x60] sm:$0xff] %vm388_vm1, %v5678_v3  ;;  %s3194_s22 = sshll.u32 %s5883_s18, 8 }
  0x11   : > { %403 = vst.msk [vmem:[#allocation2 + $0x80] sm:$0xff] %vm388_vm1, %v5678_v3  ;;  %395 = vst.msk [vmem:[#allocation2 + $0x220] sm:$0xff] %vm388_vm1, %v5678_v3  ;;  %s3542_s25 = scalar_lea.vmem %s5666_s0, %s3194_s22  ;;  %v3547_v6 = vsub.s32 0, %v535_v4  ;;  %v3552_v10 = vsub.s32 1, %v535_v4  ;;  %v3554_v11 = vsub.s32 2, %v535_v4  ;;  %v3562_v15 = vsub.s32 3, %v535_v4 }
  0x12   : > { %396 = vst.msk [vmem:[#allocation2 + $0x228] sm:$0xff] %vm388_vm1, %v5678_v3  ;;  %397 = vst.msk [vmem:[#allocation2 + $0x230] sm:$0xff] %vm388_vm1, %v5678_v3  ;;  %v432_v7 = vld [vmem:[%s3542_s25] sm:$0xff]  ;;  %v433_v8 = vld [vmem:[%s3542_s25 + $0x8] sm:$0xff]  ;;  %v3569_v19 = vsub.s32 6, %v535_v4  ;;  %v3571_v20 = vsub.s32 4, %v535_v4 }
  0x13   : > { %404 = vst.msk [vmem:[#allocation2 + $0xa0] sm:$0xff] %vm388_vm1, %v5678_v3  ;;  %405 = vst.msk [vmem:[#allocation2 + $0xc0] sm:$0xff] %vm388_vm1, %v5678_v3  ;;  %v434_v9 = vld [vmem:[%s3542_s25 + $0x10] sm:$0xff]  ;;  %v435_v12 = vld [vmem:[%s3542_s25 + $0x18] sm:$0xff]  ;;  %v3576_v22 = vrot.slane %v496_v5, %v3547_v6  ;;  %v3578_v25 = vsub.s32 7, %v535_v4  ;;  %v3580_v26 = vsub.s32 5, %v535_v4  ;;  %v3583_v27 = vrot.slane %v496_v5, %v3552_v10 }
  0x14   : > { %406 = vst.msk [vmem:[#allocation2 + $0xe0] sm:$0xff] %vm388_vm1, %v5678_v3  ;;  %407 = vst.msk [vmem:[#allocation2 + $0x100] sm:$0xff] %vm388_vm1, %v5678_v3  ;;  %v436_v13 = vld [vmem:[%s3542_s25 + $0x20] sm:$0xff]  ;;  %v437_v14 = vld [vmem:[%s3542_s25 + $0x28] sm:$0xff]  ;;  %v3586_v30 = vrot.slane %v496_v5, %v3554_v11  ;;  %v3590_v32 = vrot.slane %v496_v5, %v3562_v15  ;;  %v3597_v36 = vrot.slane %v496_v5, %v3569_v19  ;;  %s3195_s22 = sshll.u32 %s5883_s18, 6 }
  0x15   : > { %408 = vst.msk [vmem:[#allocation2 + $0x120] sm:$0xff] %vm388_vm1, %v5678_v3  ;;  %409 = vst.msk [vmem:[#allocation2 + $0x140] sm:$0xff] %vm388_vm1, %v5678_v3  ;;  %v438_v16 = vld [vmem:[%s3542_s25 + $0x30] sm:$0xff]  ;;  %v439_v17 = vld [vmem:[%s3542_s25 + $0x38] sm:$0xff]  ;;  %v3600_v37 = vrot.slane %v496_v5, %v3571_v20  ;;  %v3611_v43 = vrot.slane %v496_v5, %v3578_v25  ;;  %v3614_v44 = vrot.slane %v496_v5, %v3580_v26 }
  0x16   : > { %410 = vst.msk [vmem:[#allocation2 + $0x160] sm:$0xff] %vm388_vm1, %v5678_v3  ;;  %411 = vst.msk [vmem:[#allocation2 + $0x180] sm:$0xff] %vm388_vm1, %v5678_v3  ;;  %v498_v18 = vld [vmem:[#allocation2 + $0x7] sm:$0xff]  ;;  %v499_v21 = vld [vmem:[#allocation2 + $0xf] sm:$0xff] }
  0x17   : > { %412 = vst.msk [vmem:[#allocation2 + $0x1a0] sm:$0xff] %vm388_vm1, %v5678_v3  ;;  %413 = vst.msk [vmem:[#allocation2 + $0x1c0] sm:$0xff] %vm388_vm1, %v5678_v3  ;;  %v706_v23 = vld [vmem:[#allocation2 + $0x8] sm:$0xff]  ;;  %v707_v24 = vld [vmem:[#allocation2 + $0x10] sm:$0xff]  ;;  %v538_v41 = vmul.f32 %v3576_v22, %v498_v18  ;;  %v539_v42 = vmul.f32 %v3576_v22, %v499_v21 }
  0x18   : > { %414 = vst.msk [vmem:[#allocation2 + $0x1e0] sm:$0xff] %vm388_vm1, %v5678_v3  ;;  %415 = vst.msk [vmem:[#allocation2 + $0x200] sm:$0xff] %vm388_vm1, %v5678_v3  ;;  %v946_v28 = vld [vmem:[#allocation2 + $0x9] sm:$0xff]  ;;  %v440_v31 = vld [vmem:[%s3542_s25 + $0x40] sm:$0xff]  ;;  %v746_v51 = vmul.f32 %v3583_v27, %v706_v23  ;;  %v747_v52 = vmul.f32 %v3583_v27, %v707_v24 }
  0x19   : > { %393 = vst.msk [vmem:[#allocation2 + $0x18] sm:$0x1] %vm392_vm2, %v5678_v3  ;;  %416 = vst.msk [vmem:[#allocation2 + $0x38] sm:$0x1] %vm392_vm2, %v5678_v3  ;;  %v441_v33 = vld [vmem:[%s3542_s25 + $0x48] sm:$0xff]  ;;  %v442_v34 = vld [vmem:[%s3542_s25 + $0x50] sm:$0xff]  ;;  %v3625_v53 = vmul.f32 %v3586_v30, %v946_v28 }
  0x1a   : > { %417 = vst.msk [vmem:[#allocation2 + $0x58] sm:$0x1] %vm392_vm2, %v5678_v3  ;;  %398 = vst.msk [vmem:[#allocation2 + $0x238] sm:$0x1] %vm392_vm2, %v5678_v3  ;;  %v443_v35 = vld [vmem:[%s3542_s25 + $0x58] sm:$0xff]  ;;  %v444_v38 = vld [vmem:[%s3542_s25 + $0x60] sm:$0xff] }
  0x1b   : > { %418 = vst.msk [vmem:[#allocation2 + $0x78] sm:$0x1] %vm392_vm2, %v5678_v3  ;;  %419 = vst.msk [vmem:[#allocation2 + $0x98] sm:$0x1] %vm392_vm2, %v5678_v3  ;;  %v445_v39 = vld [vmem:[%s3542_s25 + $0x68] sm:$0xff]  ;;  %v446_v40 = vld [vmem:[%s3542_s25 + $0x70] sm:$0xff] }
  0x1c   : > { %420 = vst.msk [vmem:[#allocation2 + $0xb8] sm:$0x1] %vm392_vm2, %v5678_v3  ;;  %421 = vst.msk [vmem:[#allocation2 + $0xd8] sm:$0x1] %vm392_vm2, %v5678_v3  ;;  %v447_v45 = vld [vmem:[%s3542_s25 + $0x78] sm:$0xff]  ;;  %v448_v46 = vld [vmem:[%s3542_s25 + $0x80] sm:$0xff] }
  0x1d   : > { %422 = vst.msk [vmem:[#allocation2 + $0xf8] sm:$0x1] %vm392_vm2, %v5678_v3  ;;  %423 = vst.msk [vmem:[#allocation2 + $0x118] sm:$0x1] %vm392_vm2, %v5678_v3  ;;  %v449_v47 = vld [vmem:[%s3542_s25 + $0x88] sm:$0xff] }
  0x1e   : > { %424 = vst.msk [vmem:[#allocation2 + $0x138] sm:$0x1] %vm392_vm2, %v5678_v3  ;;  %425 = vst.msk [vmem:[#allocation2 + $0x158] sm:$0x1] %vm392_vm2, %v5678_v3 }
  0x1f   : > { %426 = vst.msk [vmem:[#allocation2 + $0x178] sm:$0x1] %vm392_vm2, %v5678_v3  ;;  %427 = vst.msk [vmem:[#allocation2 + $0x198] sm:$0x1] %vm392_vm2, %v5678_v3 }
  0x20   : > { %428 = vst.msk [vmem:[#allocation2 + $0x1b8] sm:$0x1] %vm392_vm2, %v5678_v3  ;;  %429 = vst.msk [vmem:[#allocation2 + $0x1d8] sm:$0x1] %vm392_vm2, %v5678_v3  ;;  %v947_v29 = vld [vmem:[#allocation2 + $0x11] sm:$0xff] }
  0x21   : > { %430 = vst.msk [vmem:[#allocation2 + $0x1f8] sm:$0x1] %vm392_vm2, %v5678_v3  ;;  %431 = vst.msk [vmem:[#allocation2 + $0x218] sm:$0x1] %vm392_vm2, %v5678_v3  ;;  %v3628_v54 = vmul.f32 %v3586_v30, %v947_v29 }
  0x22   : > { %5725 = vst [vmem:[#allocation4_spill] sm:$0xff] %v3547_v6  ;;  %5726 = vst [vmem:[#allocation5_spill] sm:$0xff] %v3552_v10 }
  0x23   : > { %5727 = vst [vmem:[#allocation6_spill] sm:$0xff] %v3554_v11  ;;  %464 = vst.msk [vmem:[#allocation2 + $0x28] sm:$0xff] %vm388_vm1, %v432_v7 }
  0x24   : > { %465 = vst.msk [vmem:[#allocation2 + $0x30] sm:$0xff] %vm388_vm1, %v433_v8  ;;  %466 = vst.msk [vmem:[#allocation2 + $0x48] sm:$0xff] %vm388_vm1, %v434_v9 }
  0x25   : > { %5728 = vst [vmem:[#allocation7_spill] sm:$0xff] %v3562_v15  ;;  %467 = vst.msk [vmem:[#allocation2 + $0x50] sm:$0xff] %vm388_vm1, %v435_v12 }
  0x26   : > { %468 = vst.msk [vmem:[#allocation2 + $0x68] sm:$0xff] %vm388_vm1, %v436_v13  ;;  %469 = vst.msk [vmem:[#allocation2 + $0x70] sm:$0xff] %vm388_vm1, %v437_v14 }
  0x27   : > { %5729 = vst [vmem:[#allocation8_spill] sm:$0xff] %v3569_v19  ;;  %5730 = vst [vmem:[#allocation9_spill] sm:$0xff] %v3571_v20 }
  0x28   : > { %470 = vst.msk [vmem:[#allocation2 + $0x88] sm:$0xff] %vm388_vm1, %v438_v16  ;;  %471 = vst.msk [vmem:[#allocation2 + $0x90] sm:$0xff] %vm388_vm1, %v439_v17 }
  0x29   : > { %5731 = vst [vmem:[#allocation10_spill] sm:$0xff] %v3578_v25  ;;  %5732 = vst [vmem:[#allocation11_spill] sm:$0xff] %v3580_v26 }
  0x2a   : > { %472 = vst.msk [vmem:[#allocation2 + $0xa8] sm:$0xff] %vm388_vm1, %v440_v31  ;;  %473 = vst.msk [vmem:[#allocation2 + $0xb0] sm:$0xff] %vm388_vm1, %v441_v33  ;;  %v500_v48 = vld [vmem:[#allocation2 + $0x27] sm:$0xff] }
  0x2b   : > { %474 = vst.msk [vmem:[#allocation2 + $0xc8] sm:$0xff] %vm388_vm1, %v442_v34  ;;  %475 = vst.msk [vmem:[#allocation2 + $0xd0] sm:$0xff] %vm388_vm1, %v443_v35  ;;  %v501_v49 = vld [vmem:[#allocation2 + $0x2f] sm:$0xff]  ;;  %v502_v50 = vld [vmem:[#allocation2 + $0x47] sm:$0xff]  ;;  %v540_v56 = vmul.f32 %v3576_v22, %v500_v48  ;;  %v574_v59 = vmul.f32 %v3590_v32, %v500_v48 }
  0x2c   : > { %476 = vst.msk [vmem:[#allocation2 + $0xe8] sm:$0xff] %vm388_vm1, %v444_v38  ;;  %477 = vst.msk [vmem:[#allocation2 + $0xf0] sm:$0xff] %vm388_vm1, %v445_v39  ;;  %v503_v55 = vld [vmem:[#allocation2 + $0x4f] sm:$0xff]  ;;  %v541_v57 = vmul.f32 %v3576_v22, %v501_v49  ;;  %v542_v58 = vmul.f32 %v3576_v22, %v502_v50  ;;  %v575_v63 = vmul.f32 %v3590_v32, %v501_v49 }
  0x2d   : > { %478 = vst.msk [vmem:[#allocation2 + $0x108] sm:$0xff] %vm388_vm1, %v446_v40  ;;  %479 = vst.msk [vmem:[#allocation2 + $0x110] sm:$0xff] %vm388_vm1, %v447_v45  ;;  %v3637_v60 = vld [vmem:[#allocation2 + $0x67] sm:$0xff]  ;;  %v3639_v61 = vld [vmem:[#allocation2 + $0x6f] sm:$0xff]  ;;  %v543_v62 = vmul.f32 %v3576_v22, %v503_v55  ;;  %v576_v0 = vmul.f32 %v3590_v32, %v502_v50  ;;  %v577_v1 = vmul.f32 %v3590_v32, %v503_v55 }
  0x2e   : > { %480 = vst.msk [vmem:[#allocation2 + $0x128] sm:$0xff] %vm388_vm1, %v448_v46  ;;  %481 = vst.msk [vmem:[#allocation2 + $0x130] sm:$0xff] %vm388_vm1, %v449_v47  ;;  %v578_v5 = vmul.f32 %v3590_v32, %v3637_v60  ;;  %v579_v7 = vmul.f32 %v3590_v32, %v3639_v61  ;;  %v606_v8 = vadd.f32 %v574_v59, %v538_v41  ;;  %v708_v17 = vld [vmem:[#allocation2 + $0x28] sm:$0xff]  ;;  %v709_v18 = vld [vmem:[#allocation2 + $0x30] sm:$0xff] }
  0x2f   : > { %v3645_v2 = vld [vmem:[#allocation2 + $0x87] sm:$0xff]  ;;  %v3647_v4 = vld [vmem:[#allocation2 + $0x8f] sm:$0xff]  ;;  %v642_v9 = vmul.f32 %v3597_v36, %v502_v50  ;;  %v607_v12 = vadd.f32 %v575_v63, %v539_v42  ;;  %v608_v13 = vadd.f32 %v576_v0, %v540_v56  ;;  %v609_v14 = vadd.f32 %v577_v1, %v541_v57 }
  0x30   : > { %v643_v16 = vmul.f32 %v3597_v36, %v503_v55  ;;  %v610_v21 = vadd.f32 %v578_v5, %v542_v58  ;;  %v611_v23 = vadd.f32 %v579_v7, %v543_v62  ;;  %v644_v24 = vmul.f32 %v3597_v36, %v3637_v60  ;;  %v710_v39 = vld [vmem:[#allocation2 + $0x48] sm:$0xff]  ;;  %v711_v40 = vld [vmem:[#allocation2 + $0x50] sm:$0xff] }
  0x31   : > { %v645_v28 = vmul.f32 %v3597_v36, %v3639_v61  ;;  %v646_v29 = vmul.f32 %v3597_v36, %v3645_v2  ;;  %v647_v31 = vmul.f32 %v3597_v36, %v3647_v4  ;;  %v674_v33 = vadd.f32 %v642_v9, %v606_v8  ;;  %v712_v41 = vld [vmem:[#allocation2 + $0x68] sm:$0xff]  ;;  %v713_v48 = vld [vmem:[#allocation2 + $0x70] sm:$0xff] }
  0x32   : > { %v675_v34 = vadd.f32 %v643_v16, %v607_v12  ;;  %v676_v35 = vadd.f32 %v644_v24, %v608_v13  ;;  %v748_v42 = vmul.f32 %v3583_v27, %v708_v17  ;;  %v749_v45 = vmul.f32 %v3583_v27, %v709_v18  ;;  %v3665_v49 = vld [vmem:[#allocation2 + $0x88] sm:$0xff]  ;;  %v3667_v50 = vld [vmem:[#allocation2 + $0x90] sm:$0xff] }
  0x33   : > { %v677_v38 = vadd.f32 %v645_v28, %v609_v14  ;;  %v678_v46 = vadd.f32 %v646_v29, %v610_v21  ;;  %v679_v47 = vadd.f32 %v647_v31, %v611_v23  ;;  %v750_v55 = vmul.f32 %v3583_v27, %v710_v39  ;;  %v948_v28 = vld [vmem:[#allocation2 + $0x29] sm:$0xff]  ;;  %v949_v29 = vld [vmem:[#allocation2 + $0x31] sm:$0xff] }
  0x34   : > { %v751_v56 = vmul.f32 %v3583_v27, %v711_v40  ;;  %v3672_v57 = vmul.f32 %v3583_v27, %v712_v41  ;;  %v3675_v58 = vmul.f32 %v3583_v27, %v713_v48  ;;  %v3679_v59 = vmul.f32 %v3583_v27, %v3665_v49 }
  0x35   : > { %v3683_v62 = vmul.f32 %v3583_v27, %v3667_v50  ;;  %v778_v63 = vadd.f32 %v746_v51, %v674_v33  ;;  %v779_v0 = vadd.f32 %v747_v52, %v675_v34  ;;  %v780_v1 = vadd.f32 %v748_v42, %v676_v35 }
  0x36   : > { %v781_v5 = vadd.f32 %v749_v45, %v677_v38  ;;  %v782_v7 = vadd.f32 %v750_v55, %v678_v46  ;;  %v783_v8 = vadd.f32 %v751_v56, %v679_v47  ;;  %v814_v9 = vmul.f32 %v3600_v37, %v708_v17  ;;  %v950_v46 = vld [vmem:[#allocation2 + $0x49] sm:$0xff] }
  0x37   : > { %v815_v12 = vmul.f32 %v3600_v37, %v709_v18  ;;  %v816_v13 = vmul.f32 %v3600_v37, %v710_v39  ;;  %v817_v14 = vmul.f32 %v3600_v37, %v711_v40  ;;  %v818_v16 = vmul.f32 %v3600_v37, %v712_v41 }
  0x38   : > { %v819_v21 = vmul.f32 %v3600_v37, %v713_v48  ;;  %v846_v23 = vadd.f32 %v814_v9, %v778_v63  ;;  %v882_v51 = vmul.f32 %v3611_v43, %v710_v39  ;;  %v883_v52 = vmul.f32 %v3611_v43, %v711_v40  ;;  %v3702_v39 = vld [vmem:[%s5667_s1 + $0x8] ss:$0 sm:$0xff] }
  0x39   : > { %v847_v24 = vadd.f32 %v815_v12, %v779_v0  ;;  %v848_v31 = vadd.f32 %v816_v13, %v780_v1  ;;  %v849_v17 = vadd.f32 %v817_v14, %v781_v5  ;;  %v850_v33 = vadd.f32 %v818_v16, %v782_v7  ;;  %v951_v0 = vld [vmem:[#allocation2 + $0x51] sm:$0xff]  ;;  %v3706_v1 = vld [vmem:[#allocation2 + $0x69] sm:$0xff]  ;;  %v456_v16 = vld [vmem:[%s3542_s25 + $0xc0] sm:$0xff] }
  0x3a   : > { %v851_v18 = vadd.f32 %v819_v21, %v783_v8  ;;  %v884_v34 = vmul.f32 %v3611_v43, %v712_v41  ;;  %v885_v35 = vmul.f32 %v3611_v43, %v713_v48  ;;  %v886_v38 = vmul.f32 %v3611_v43, %v3665_v49  ;;  %v3708_v5 = vld [vmem:[#allocation2 + $0x71] sm:$0xff]  ;;  %488 = vst.msk [vmem:[#allocation2 + $0x1a8] sm:$0xff] %vm388_vm1, %v456_v16 }
  0x3b   : > { %v887_v42 = vmul.f32 %v3611_v43, %v3667_v50  ;;  %v914_v40 = vadd.f32 %v882_v51, %v846_v23  ;;  %v915_v45 = vadd.f32 %v883_v52, %v847_v24  ;;  %v988_v41 = vmul.f32 %v3586_v30, %v948_v28  ;;  %v454_v13 = vld [vmem:[%s3542_s25 + $0xb0] sm:$0xff]  ;;  %v455_v14 = vld [vmem:[%s3542_s25 + $0xb8] sm:$0xff] }
  0x3c   : > { %v989_v47 = vmul.f32 %v3586_v30, %v949_v29  ;;  %v916_v48 = vadd.f32 %v884_v34, %v848_v31  ;;  %v917_v55 = vadd.f32 %v885_v35, %v849_v17  ;;  %v918_v56 = vadd.f32 %v886_v38, %v850_v33  ;;  %v3719_v52 = vld [vmem:[#allocation2 + $0x89] sm:$0xff]  ;;  %v3721_v31 = vld [vmem:[#allocation2 + $0x91] sm:$0xff]  ;;  %486 = vst.msk [vmem:[#allocation2 + $0x188] sm:$0xff] %vm388_vm1, %v454_v13  ;;  %v460_v34 = vld [vmem:[%s3542_s25 + $0xe0] sm:$0xff] }
  0x3d   : > { %v919_v63 = vadd.f32 %v887_v42, %v851_v18  ;;  %v990_v7 = vmul.f32 %v3586_v30, %v950_v46  ;;  %v991_v8 = vmul.f32 %v3586_v30, %v951_v0  ;;  %v1018_v9 = vadd.f32 %v3625_v53, %v914_v40  ;;  %v457_v17 = vld [vmem:[%s3542_s25 + $0xc8] sm:$0xff]  ;;  %v458_v53 = vld [vmem:[%s3542_s25 + $0xd0] sm:$0xff]  ;;  %v459_v33 = vld [vmem:[%s3542_s25 + $0xd8] sm:$0xff]  ;;  %487 = vst.msk [vmem:[#allocation2 + $0x190] sm:$0xff] %vm388_vm1, %v455_v14 }
  0x3e   : > { %v1019_v12 = vadd.f32 %v3628_v54, %v915_v45  ;;  %v1020_v21 = vadd.f32 %v988_v41, %v916_v48  ;;  %v1021_v23 = vadd.f32 %v989_v47, %v917_v55  ;;  %v1054_v24 = vmul.f32 %v3614_v44, %v948_v28  ;;  %v461_v35 = vld [vmem:[%s3542_s25 + $0xe8] sm:$0xff]  ;;  %v462_v38 = vld [vmem:[%s3542_s25 + $0xf0] sm:$0xff]  ;;  %489 = vst.msk [vmem:[#allocation2 + $0x1b0] sm:$0xff] %vm388_vm1, %v457_v17  ;;  %v463_v47 = vld [vmem:[%s3542_s25 + $0xf8] sm:$0xff] }
  0x3f   : > { %v1055_v51 = vmul.f32 %v3614_v44, %v949_v29  ;;  %v1022_v54 = vadd.f32 %v990_v7, %v918_v56  ;;  %v1023_v18 = vadd.f32 %v991_v8, %v919_v63  ;;  %v1056_v28 = vmul.f32 %v3614_v44, %v950_v46  ;;  %490 = vst.msk [vmem:[#allocation2 + $0x1c8] sm:$0xff] %vm388_vm1, %v458_v53  ;;  %v450_v48 = vld [vmem:[%s3542_s25 + $0x90] sm:$0xff]  ;;  %v451_v55 = vld [vmem:[%s3542_s25 + $0x98] sm:$0xff]  ;;  %v453_v8 = vld [vmem:[%s3542_s25 + $0xa8] sm:$0xff] }
  0x40   : > { %v1057_v29 = vmul.f32 %v3614_v44, %v951_v0  ;;  %491 = vst.msk [vmem:[#allocation2 + $0x1d0] sm:$0xff] %vm388_vm1, %v459_v33  ;;  %v1086_v42 = vadd.f32 %v1054_v24, %v1018_v9  ;;  %v1122_v45 = vmul.f32 %v3702_v39, %v950_v46  ;;  %v1123_v41 = vmul.f32 %v3702_v39, %v951_v0  ;;  %v452_v0 = vld [vmem:[%s3542_s25 + $0xa0] sm:$0xff]  ;;  %v3766_v17 = vld [vmem:[#allocation2 + $0xaf] sm:$0xff]  ;;  %s386_s25 = scalar_lea.vmem %s5677_s11, %s3195_s22 }
  0x41   : > { %v1087_v40 = vadd.f32 %v1055_v51, %v1019_v12  ;;  %492 = vst.msk [vmem:[#allocation2 + $0x1e8] sm:$0xff] %vm388_vm1, %v460_v34  ;;  %493 = vst.msk [vmem:[#allocation2 + $0x1f0] sm:$0xff] %vm388_vm1, %v461_v35  ;;  %v1088_v56 = vadd.f32 %v1056_v28, %v1020_v21  ;;  %v1124_v7 = vmul.f32 %v3702_v39, %v3706_v1  ;;  %v3764_v51 = vld [vmem:[#allocation2 + $0xa7] sm:$0xff] }
  0x42   : > { %494 = vst.msk [vmem:[#allocation2 + $0x208] sm:$0xff] %vm388_vm1, %v462_v38  ;;  %v1089_v63 = vadd.f32 %v1057_v29, %v1021_v23  ;;  %v1125_v46 = vmul.f32 %v3702_v39, %v3708_v5  ;;  %495 = vst.msk [vmem:[#allocation2 + $0x210] sm:$0xff] %vm388_vm1, %v463_v47  ;;  %v1154_v9 = vadd.f32 %v1122_v45, %v1086_v42  ;;  %v3778_v45 = vld [vmem:[#allocation2 + $0xb0] sm:$0xff]  ;;  %v4062_v6 = vld [vmem:[#allocation2 + $0x1a8] sm:$0xff] }
  0x43   : > { %482 = vst.msk [vmem:[#allocation2 + $0x148] sm:$0xff] %vm388_vm1, %v450_v48  ;;  %483 = vst.msk [vmem:[#allocation2 + $0x150] sm:$0xff] %vm388_vm1, %v451_v55  ;;  %v1155_v12 = vadd.f32 %v1123_v41, %v1087_v40  ;;  %v1058_v13 = vmul.f32 %v3614_v44, %v3706_v1  ;;  %v1059_v14 = vmul.f32 %v3614_v44, %v3708_v5  ;;  %v3776_v40 = vld [vmem:[#allocation2 + $0xa8] sm:$0xff] }
  0x44   : > { %484 = vst.msk [vmem:[#allocation2 + $0x168] sm:$0xff] %vm388_vm1, %v452_v0  ;;  %485 = vst.msk [vmem:[#allocation2 + $0x170] sm:$0xff] %vm388_vm1, %v453_v8  ;;  %v1156_v16 = vadd.f32 %v1124_v7, %v1088_v56  ;;  %v1157_v21 = vadd.f32 %v1125_v46, %v1089_v63  ;;  %v1126_v23 = vmul.f32 %v3702_v39, %v3719_v52  ;;  %v3790_v56 = vld [vmem:[#allocation2 + $0xa9] sm:$0xff]  ;;  %v3792_v63 = vld [vmem:[#allocation2 + $0xb1] sm:$0xff] }
  0x45   : > { %v1127_v24 = vmul.f32 %v3702_v39, %v3721_v31  ;;  %v1186_v53 = vpack.c.bf16 %v1155_v12, %v1154_v9  ;;  %v1090_v33 = vadd.f32 %v1058_v13, %v1022_v54  ;;  %v1091_v28 = vadd.f32 %v1059_v14, %v1023_v18  ;;  %v3804_v13 = vld [vmem:[#allocation2 + $0xc7] sm:$0xff]  ;;  %v3806_v14 = vld [vmem:[#allocation2 + $0xcf] sm:$0xff]  ;;  %5739 = vst [vmem:[#allocation18_spill] sm:$0xff] %v4062_v6 }
  0x46   : > { %v544_v29 = vmul.f32 %v3576_v22, %v3637_v60  ;;  %v1187_v34 = vpack.c.bf16 %v1157_v21, %v1156_v16  ;;  %v545_v35 = vmul.f32 %v3576_v22, %v3639_v61  ;;  %v580_v38 = vmul.f32 %v3590_v32, %v3645_v2  ;;  %v4056_v20 = vld [vmem:[#allocation2 + $0x190] sm:$0xff] }
  0x47   : > { %v581_v42 = vmul.f32 %v3590_v32, %v3647_v4  ;;  %3242 = vmatprep.mubr.msk.bf16.mxu0 %vm388_vm1, %v1186_v53  ;;  %v1158_v54 = vadd.f32 %v1126_v23, %v1090_v33  ;;  %v1159_v18 = vadd.f32 %v1127_v24, %v1091_v28  ;;  %v648_v60 = vmul.f32 %v3597_v36, %v3764_v51  ;;  %v3823_v28 = vld [vmem:[#allocation2 + $0xc8] sm:$0xff] }
  0x48   : > { %v649_v61 = vmul.f32 %v3597_v36, %v3766_v17  ;;  %3243 = vmatmul.mubr.msk.bf16.vlgmr.msra.gmra.mrb[0].mxu0 %vm388_vm1, %v1187_v34  ;;  %v612_v41 = vadd.f32 %v580_v38, %v544_v29  ;;  %v820_v48 = vmul.f32 %v3600_v37, %v3665_v49  ;;  %v821_v55 = vmul.f32 %v3600_v37, %v3667_v50  ;;  %v3825_v29 = vld [vmem:[#allocation2 + $0xd0] sm:$0xff] }
  0x49   : > { %v613_v47 = vadd.f32 %v581_v42, %v545_v35  ;;  %v1188_v7 = vpack.c.bf16 %v1159_v18, %v1158_v54  ;;  %v888_v46 = vmul.f32 %v3611_v43, %v3776_v40  ;;  %v889_v0 = vmul.f32 %v3611_v43, %v3778_v45  ;;  %v3837_v54 = vld [vmem:[#allocation2 + $0xc9] sm:$0xff]  ;;  %5738 = vst [vmem:[#allocation17_spill] sm:$0xff] %v4056_v20 }
  0x4a   : > { %v992_v8 = vmul.f32 %v3586_v30, %v3706_v1  ;;  %v680_v9 = vadd.f32 %v648_v60, %v612_v41  ;;  %v993_v49 = vmul.f32 %v3586_v30, %v3708_v5  ;;  %v1060_v50 = vmul.f32 %v3614_v44, %v3719_v52  ;;  %v3843_v41 = vld [vmem:[#allocation2 + $0xd1] sm:$0xff] }
  0x4b   : > { %v681_v12 = vadd.f32 %v649_v61, %v613_v47  ;;  %3246 = vmatprep.mubr.msk.bf16.mxu0 %vm388_vm1, %v1188_v7  ;;  %v1061_v16 = vmul.f32 %v3614_v44, %v3721_v31  ;;  %v1128_v1 = vmul.f32 %v3702_v39, %v3790_v56  ;;  %v1129_v21 = vmul.f32 %v3702_v39, %v3792_v63 }
  0x4c   : > { %v546_v5 = vmul.f32 %v3576_v22, %v3645_v2  ;;  %v784_v23 = vadd.f32 %v3672_v57, %v680_v9  ;;  %v547_v53 = vmul.f32 %v3576_v22, %v3647_v4  ;;  %v582_v33 = vmul.f32 %v3590_v32, %v3764_v51 }
  0x4d   : > { %v785_v24 = vadd.f32 %v3675_v58, %v681_v12  ;;  %v583_v34 = vmul.f32 %v3590_v32, %v3766_v17  ;;  %v650_v2 = vmul.f32 %v3597_v36, %v3804_v13  ;;  %v651_v57 = vmul.f32 %v3597_v36, %v3806_v14 }
  0x4e   : > { %v822_v58 = vmul.f32 %v3600_v37, %v3776_v40  ;;  %v852_v4 = vadd.f32 %v820_v48, %v784_v23  ;;  %v614_v38 = vadd.f32 %v582_v33, %v546_v5  ;;  %v823_v42 = vmul.f32 %v3600_v37, %v3778_v45 }
  0x4f   : > { %v853_v35 = vadd.f32 %v821_v55, %v785_v24  ;;  %v615_v18 = vadd.f32 %v583_v34, %v547_v53  ;;  %v890_v60 = vmul.f32 %v3611_v43, %v3823_v28  ;;  %v891_v61 = vmul.f32 %v3611_v43, %v3825_v29 }
  0x50   : > { %v994_v47 = vmul.f32 %v3586_v30, %v3719_v52  ;;  %v920_v48 = vadd.f32 %v888_v46, %v852_v4  ;;  %v682_v7 = vadd.f32 %v650_v2, %v614_v38  ;;  %v995_v9 = vmul.f32 %v3586_v30, %v3721_v31  ;;  %v3860_v31 = vld [vmem:[#allocation2 + $0xef] sm:$0xff] }
  0x51   : > { %v921_v55 = vadd.f32 %v889_v0, %v853_v35  ;;  %v683_v12 = vadd.f32 %v651_v57, %v615_v18  ;;  %v1062_v5 = vmul.f32 %v3614_v44, %v3790_v56  ;;  %v1063_v23 = vmul.f32 %v3614_v44, %v3792_v63  ;;  %v3858_v0 = vld [vmem:[#allocation2 + $0xe7] sm:$0xff] }
  0x52   : > { %v1130_v24 = vmul.f32 %v3702_v39, %v3837_v54  ;;  %v1024_v53 = vadd.f32 %v992_v8, %v920_v48  ;;  %v786_v52 = vadd.f32 %v3679_v59, %v682_v7  ;;  %v1131_v46 = vmul.f32 %v3702_v39, %v3843_v41 }
  0x53   : > { %v1025_v33 = vadd.f32 %v993_v49, %v921_v55  ;;  %v787_v34 = vadd.f32 %v3683_v62, %v683_v12  ;;  %v548_v2 = vmul.f32 %v3576_v22, %v3764_v51  ;;  %v549_v57 = vmul.f32 %v3576_v22, %v3766_v17  ;;  %v3875_v12 = vld [vmem:[#allocation2 + $0xe8] sm:$0xff] }
  0x54   : > { %v584_v8 = vmul.f32 %v3590_v32, %v3804_v13  ;;  %v1092_v49 = vadd.f32 %v1060_v50, %v1024_v53  ;;  %v854_v4 = vadd.f32 %v822_v58, %v786_v52  ;;  %v585_v35 = vmul.f32 %v3590_v32, %v3806_v14  ;;  %v3877_v58 = vld [vmem:[#allocation2 + $0xf0] sm:$0xff] }
  0x55   : > { %v1093_v59 = vadd.f32 %v1061_v16, %v1025_v33  ;;  %v855_v38 = vadd.f32 %v823_v42, %v787_v34  ;;  %v652_v62 = vmul.f32 %v3597_v36, %v3858_v0  ;;  %v653_v51 = vmul.f32 %v3597_v36, %v3860_v31 }
  0x56   : > { %v616_v18 = vadd.f32 %v584_v8, %v548_v2  ;;  %v1160_v48 = vadd.f32 %v1128_v1, %v1092_v49  ;;  %v922_v17 = vadd.f32 %v890_v60, %v854_v4  ;;  %v617_v7 = vadd.f32 %v585_v35, %v549_v57  ;;  %v3889_v57 = vld [vmem:[#allocation2 + $0xe9] sm:$0xff]  ;;  %v3894_v8 = vld [vmem:[#allocation2 + $0xf1] sm:$0xff] }
  0x57   : > { %v1161_v55 = vadd.f32 %v1129_v21, %v1093_v59  ;;  %v923_v50 = vadd.f32 %v891_v61, %v855_v38  ;;  %v756_v42 = vmul.f32 %v3583_v27, %v3776_v40  ;;  %v757_v53 = vmul.f32 %v3583_v27, %v3778_v45 }
  0x58   : > { %v684_v16 = vadd.f32 %v652_v62, %v616_v18  ;;  %v1026_v52 = vadd.f32 %v994_v47, %v922_v17  ;;  %v685_v34 = vadd.f32 %v653_v51, %v617_v7  ;;  %v824_v1 = vmul.f32 %v3600_v37, %v3823_v28  ;;  %v3906_v51 = vld [vmem:[#allocation2 + $0x107] sm:$0xff] }
  0x59   : > { %v1189_v33 = vpack.c.bf16 %v1161_v55, %v1160_v48  ;;  %v1027_v21 = vadd.f32 %v995_v9, %v923_v50  ;;  %v825_v61 = vmul.f32 %v3600_v37, %v3825_v29  ;;  %v892_v2 = vmul.f32 %v3611_v43, %v3875_v12  ;;  %v3908_v48 = vld [vmem:[#allocation2 + $0x10f] sm:$0xff] }
  0x5a   : > { %v788_v60 = vadd.f32 %v756_v42, %v684_v16  ;;  %v1094_v40 = vadd.f32 %v1062_v5, %v1026_v52  ;;  %v789_v45 = vadd.f32 %v757_v53, %v685_v34  ;;  %v893_v47 = vmul.f32 %v3611_v43, %v3877_v58  ;;  %v3924_v34 = vld [vmem:[#allocation2 + $0x108] sm:$0xff] }
  0x5b   : > { %3247 = vmatmul.mubr.msk.bf16.gmra.mrb[4].mxu0 %vm388_vm1, %v1189_v33  ;;  %v996_v9 = vmul.f32 %v3586_v30, %v3790_v56  ;;  %v1095_v49 = vadd.f32 %v1063_v23, %v1027_v21  ;;  %v997_v4 = vmul.f32 %v3586_v30, %v3792_v63  ;;  %v1064_v35 = vmul.f32 %v3614_v44, %v3837_v54 }
  0x5c   : > { %v856_v59 = vadd.f32 %v824_v1, %v788_v60  ;;  %v1162_v38 = vadd.f32 %v1130_v24, %v1094_v40  ;;  %v857_v18 = vadd.f32 %v825_v61, %v789_v45  ;;  %v1065_v5 = vmul.f32 %v3614_v44, %v3843_v41 }
  0x5d   : > { %v1132_v62 = vmul.f32 %v3702_v39, %v3889_v57  ;;  %v1163_v56 = vadd.f32 %v1131_v46, %v1095_v49  ;;  %v1133_v63 = vmul.f32 %v3702_v39, %v3894_v8  ;;  %v550_v55 = vmul.f32 %v3576_v22, %v3804_v13 }
  0x5e   : > { %v924_v23 = vadd.f32 %v892_v2, %v856_v59  ;;  %v925_v24 = vadd.f32 %v893_v47, %v857_v18  ;;  %v551_v17 = vmul.f32 %v3576_v22, %v3806_v14  ;;  %v586_v7 = vmul.f32 %v3590_v32, %v3858_v0  ;;  %v3926_v14 = vld [vmem:[#allocation2 + $0x110] sm:$0xff] }
  0x5f   : > { %v587_v50 = vmul.f32 %v3590_v32, %v3860_v31  ;;  %v1190_v16 = vpack.c.bf16 %v1163_v56, %v1162_v38  ;;  %v654_v46 = vmul.f32 %v3597_v36, %v3906_v51  ;;  %v655_v53 = vmul.f32 %v3597_v36, %v3908_v48  ;;  %v3943_v38 = vld [vmem:[#allocation2 + $0x127] sm:$0xff]  ;;  %v3945_v18 = vld [vmem:[#allocation2 + $0x12f] sm:$0xff] }
  0x60   : > { %v1028_v42 = vadd.f32 %v996_v9, %v924_v23  ;;  %v1029_v33 = vadd.f32 %v997_v4, %v925_v24  ;;  %v618_v13 = vadd.f32 %v586_v7, %v550_v55  ;;  %v758_v1 = vmul.f32 %v3583_v27, %v3823_v28  ;;  %v3949_v56 = vld [vmem:[#allocation2 + $0x111] sm:$0xff] }
  0x61   : > { %v619_v52 = vadd.f32 %v587_v50, %v551_v17  ;;  %3250 = vmatprep.mubr.msk.bf16.mxu0 %vm388_vm1, %v1190_v16  ;;  %v759_v60 = vmul.f32 %v3583_v27, %v3825_v29  ;;  %v826_v61 = vmul.f32 %v3600_v37, %v3875_v12  ;;  %v827_v47 = vmul.f32 %v3600_v37, %v3877_v58 }
  0x62   : > { %v1096_v21 = vadd.f32 %v1064_v35, %v1028_v42  ;;  %v1097_v2 = vadd.f32 %v1065_v5, %v1029_v33  ;;  %v686_v40 = vadd.f32 %v654_v46, %v618_v13  ;;  %v894_v49 = vmul.f32 %v3611_v43, %v3924_v34  ;;  %v3947_v5 = vld [vmem:[#allocation2 + $0x109] sm:$0xff] }
  0x63   : > { %v687_v45 = vadd.f32 %v655_v53, %v619_v52  ;;  %v895_v28 = vmul.f32 %v3611_v43, %v3926_v14  ;;  %v998_v29 = vmul.f32 %v3586_v30, %v3837_v54  ;;  %v1066_v23 = vmul.f32 %v3614_v44, %v3889_v57  ;;  %v3974_v33 = vld [vmem:[#allocation2 + $0x128] sm:$0xff]  ;;  %v3976_v13 = vld [vmem:[#allocation2 + $0x130] sm:$0xff] }
  0x64   : > { %v1164_v9 = vadd.f32 %v1132_v62, %v1096_v21  ;;  %v1165_v59 = vadd.f32 %v1133_v63, %v1097_v2  ;;  %v790_v4 = vadd.f32 %v758_v1, %v686_v40  ;;  %v999_v62 = vmul.f32 %v3586_v30, %v3843_v41 }
  0x65   : > { %v791_v35 = vadd.f32 %v759_v60, %v687_v45  ;;  %v1067_v63 = vmul.f32 %v3614_v44, %v3894_v8  ;;  %v552_v54 = vmul.f32 %v3576_v22, %v3858_v0  ;;  %v553_v7 = vmul.f32 %v3576_v22, %v3860_v31 }
  0x66   : > { %v1191_v55 = vpack.c.bf16 %v1165_v59, %v1164_v9  ;;  %v858_v24 = vadd.f32 %v826_v61, %v790_v4  ;;  %v588_v50 = vmul.f32 %v3590_v32, %v3906_v51  ;;  %v589_v41 = vmul.f32 %v3590_v32, %v3908_v48  ;;  %v3992_v59 = vld [vmem:[#allocation2 + $0x131] sm:$0xff] }
  0x67   : > { %v859_v17 = vadd.f32 %v827_v47, %v791_v35  ;;  %v656_v16 = vmul.f32 %v3597_v36, %v3943_v38  ;;  %v657_v42 = vmul.f32 %v3597_v36, %v3945_v18  ;;  %v1134_v53 = vmul.f32 %v3702_v39, %v3947_v5 }
  0x68   : > { %3251 = vmatmul.mubr.msk.bf16.gmra.mrb[8].mxu0 %vm388_vm1, %v1191_v55  ;;  %v926_v0 = vadd.f32 %v894_v49, %v858_v24  ;;  %v1135_v31 = vmul.f32 %v3702_v39, %v3949_v56  ;;  %v620_v52 = vadd.f32 %v588_v50, %v552_v54  ;;  %v621_v1 = vadd.f32 %v589_v41, %v553_v7  ;;  %v4000_v54 = vld [vmem:[#allocation2 + $0x18f] sm:$0xff] }
  0x69   : > { %v927_v46 = vadd.f32 %v895_v28, %v859_v17  ;;  %v760_v21 = vmul.f32 %v3583_v27, %v3875_v12  ;;  %v761_v60 = vmul.f32 %v3583_v27, %v3877_v58  ;;  %v828_v40 = vmul.f32 %v3600_v37, %v3924_v34  ;;  %v3990_v12 = vld [vmem:[#allocation2 + $0x129] sm:$0xff] }
  0x6a   : > { %v1030_v61 = vadd.f32 %v998_v29, %v926_v0  ;;  %v829_v45 = vmul.f32 %v3600_v37, %v3926_v14  ;;  %v688_v47 = vadd.f32 %v656_v16, %v620_v52  ;;  %v689_v9 = vadd.f32 %v657_v42, %v621_v1  ;;  %v526_v0 = vld [vmem:[#allocation2 + $0x1c7] sm:$0xff] }
  0x6b   : > { %v1031_v2 = vadd.f32 %v999_v62, %v927_v46  ;;  %v896_v49 = vmul.f32 %v3611_v43, %v3974_v33  ;;  %v897_v28 = vmul.f32 %v3611_v43, %v3976_v13  ;;  %v1000_v35 = vmul.f32 %v3586_v30, %v3889_v57  ;;  %v3998_v62 = vld [vmem:[#allocation2 + $0x187] sm:$0xff] }
  0x6c   : > { %v1098_v58 = vadd.f32 %v1066_v23, %v1030_v61  ;;  %v1001_v29 = vmul.f32 %v3586_v30, %v3894_v8  ;;  %5733 = vst [vmem:[#allocation12_spill] sm:$0xff] %v3998_v62  ;;  %v792_v55 = vadd.f32 %v760_v21, %v688_v47  ;;  %v793_v24 = vadd.f32 %v761_v60, %v689_v9  ;;  %v4006_v23 = vld [vmem:[#allocation2 + $0x1a7] sm:$0xff]  ;;  %v527_v21 = vld [vmem:[#allocation2 + $0x1cf] sm:$0xff] }
  0x6d   : > { %v1099_v4 = vadd.f32 %v1067_v63, %v1031_v2  ;;  %v1068_v17 = vmul.f32 %v3614_v44, %v3947_v5  ;;  %v1069_v7 = vmul.f32 %v3614_v44, %v3949_v56  ;;  %5734 = vst [vmem:[#allocation13_spill] sm:$0xff] %v4006_v23  ;;  %v4008_v63 = vld [vmem:[#allocation2 + $0x1af] sm:$0xff]  ;;  %v1136_v8 = vmul.f32 %v3702_v39, %v3990_v12 }
  0x6e   : > { %5735 = vst [vmem:[#allocation14_spill] sm:$0xff] %v4008_v63  ;;  %v1166_v57 = vadd.f32 %v1134_v53, %v1098_v58  ;;  %v1137_v41 = vmul.f32 %v3702_v39, %v3992_v59  ;;  %v860_v16 = vadd.f32 %v828_v40, %v792_v55  ;;  %v861_v42 = vadd.f32 %v829_v45, %v793_v24  ;;  %v4027_v40 = vld [vmem:[#allocation2 + $0x1e7] sm:$0xff]  ;;  %v4033_v58 = vld [vmem:[#allocation2 + $0x1ef] sm:$0xff] }
  0x6f   : > { %v1167_v50 = vadd.f32 %v1135_v31, %v1099_v4  ;;  %v562_v46 = vmul.f32 %v3576_v22, %v3998_v62  ;;  %v563_v52 = vmul.f32 %v3576_v22, %v4000_v54  ;;  %v4020_v53 = vmul.f32 %v3576_v22, %v4006_v23  ;;  %v530_v45 = vld [vmem:[#allocation2 + $0x207] sm:$0xff] }
  0x70   : > { %v4024_v31 = vmul.f32 %v3576_v22, %v4008_v63  ;;  %v566_v60 = vmul.f32 %v3576_v22, %v526_v0  ;;  %v928_v61 = vadd.f32 %v896_v49, %v860_v16  ;;  %v929_v2 = vadd.f32 %v897_v28, %v861_v42 }
  0x71   : > { %v1192_v1 = vpack.c.bf16 %v1167_v50, %v1166_v57  ;;  %v567_v47 = vmul.f32 %v3576_v22, %v527_v21  ;;  %v598_v9 = vmul.f32 %v3590_v32, %v4006_v23  ;;  %v4037_v4 = vmul.f32 %v3590_v32, %v3998_v62  ;;  %v531_v50 = vld [vmem:[#allocation2 + $0x20f] sm:$0xff] }
  0x72   : > { %v599_v49 = vmul.f32 %v3590_v32, %v4008_v63  ;;  %v4042_v28 = vmul.f32 %v3590_v32, %v526_v0  ;;  %v602_v55 = vmul.f32 %v3590_v32, %v4027_v40  ;;  %v1032_v24 = vadd.f32 %v1000_v35, %v928_v61  ;;  %v974_v62 = vld [vmem:[#allocation2 + $0x1c9] sm:$0xff] }
  0x73   : > { %3254 = vmatprep.mubr.msk.bf16.mxu0 %vm388_vm1, %v1192_v1  ;;  %5736 = vst [vmem:[#allocation15_spill] sm:$0xff] %v4037_v4  ;;  %v1033_v57 = vadd.f32 %v1001_v29, %v929_v2  ;;  %v4047_v16 = vmul.f32 %v3590_v32, %v527_v21  ;;  %v603_v42 = vmul.f32 %v3590_v32, %v4033_v58  ;;  %v4051_v1 = vld [vmem:[#allocation2 + $0x188] sm:$0xff] }
  0x74   : > { %5737 = vst [vmem:[#allocation16_spill] sm:$0xff] %v4051_v1  ;;  %v4054_v3 = vmul.f32 %v3590_v32, %v530_v45  ;;  %v630_v26 = vadd.f32 %v598_v9, %v562_v46  ;;  %v631_v11 = vadd.f32 %v599_v49, %v563_v52  ;;  %v634_v25 = vadd.f32 %v602_v55, %v566_v60  ;;  %v4066_v49 = vld [vmem:[#allocation2 + $0x1b0] sm:$0xff] }
  0x75   : > { %v1100_v10 = vadd.f32 %v1068_v17, %v1032_v24  ;;  %v1101_v35 = vadd.f32 %v1069_v7, %v1033_v57  ;;  %v635_v29 = vadd.f32 %v603_v42, %v567_v47  ;;  %v666_v61 = vmul.f32 %v3597_v36, %v526_v0  ;;  %5740 = vst [vmem:[#allocation19_spill] sm:$0xff] %v4066_v49  ;;  %v734_v47 = vld [vmem:[#allocation2 + $0x1c8] sm:$0xff]  ;;  %v735_v55 = vld [vmem:[#allocation2 + $0x1d0] sm:$0xff] }
  0x76   : > { %v667_v2 = vmul.f32 %v3597_v36, %v527_v21  ;;  %v670_v19 = vmul.f32 %v3597_v36, %v530_v45  ;;  %v671_v15 = vmul.f32 %v3597_v36, %v531_v50  ;;  %v770_v46 = vmul.f32 %v3583_v27, %v4051_v1  ;;  %v738_v57 = vld [vmem:[#allocation2 + $0x208] sm:$0xff] }
  0x77   : > { %v1168_v52 = vadd.f32 %v1136_v8, %v1100_v10  ;;  %v1169_v60 = vadd.f32 %v1137_v41, %v1101_v35  ;;  %v698_v9 = vadd.f32 %v666_v61, %v630_v26  ;;  %v771_v17 = vmul.f32 %v3583_v27, %v4056_v20 }
  0x78   : > { %v4071_v7 = vmul.f32 %v3590_v32, %v531_v50  ;;  %v699_v0 = vadd.f32 %v667_v2, %v631_v11  ;;  %v702_v21 = vadd.f32 %v670_v19, %v634_v25  ;;  %v703_v45 = vadd.f32 %v671_v15, %v635_v29  ;;  %v4084_v15 = vld [vmem:[#allocation2 + $0x1e8] sm:$0xff]  ;;  %v4086_v19 = vld [vmem:[#allocation2 + $0x1f0] sm:$0xff] }
  0x79   : > { %v1193_v24 = vpack.c.bf16 %v1169_v60, %v1168_v52  ;;  %v4075_v10 = vmul.f32 %v3583_v27, %v4062_v6  ;;  %v774_v26 = vmul.f32 %v3583_v27, %v734_v47  ;;  %v775_v8 = vmul.f32 %v3583_v27, %v735_v55  ;;  %v4088_v25 = vld [vmem:[#allocation2 + $0x210] sm:$0xff] }
  0x7a   : > { %v802_v41 = vadd.f32 %v770_v46, %v698_v9  ;;  %v803_v42 = vadd.f32 %v771_v17, %v699_v0  ;;  %v838_v50 = vmul.f32 %v3600_v37, %v4062_v6  ;;  %v839_v11 = vmul.f32 %v3600_v37, %v4066_v49  ;;  %v4107_v17 = vld [vmem:[#allocation2 + $0x189] sm:$0xff]  ;;  %v4109_v0 = vld [vmem:[#allocation2 + $0x191] sm:$0xff] }
  0x7b   : > { %3255 = vmatmul.mubr.msk.bf16.gmra.mrb[12].mxu0 %vm388_vm1, %v1193_v24  ;;  %v4092_v35 = vmul.f32 %v3583_v27, %v4066_v49  ;;  %v806_v29 = vadd.f32 %v774_v26, %v702_v21  ;;  %v807_v61 = vadd.f32 %v775_v8, %v703_v45  ;;  %v4095_v2 = vmul.f32 %v3600_v37, %v734_v47  ;;  %v4113_v8 = vld [vmem:[#allocation2 + $0x1a9] sm:$0xff]  ;;  %v4115_v49 = vld [vmem:[#allocation2 + $0x1b1] sm:$0xff] }
  0x7c   : > { %v4098_v46 = vmul.f32 %v3600_v37, %v735_v55  ;;  %v842_v52 = vmul.f32 %v3600_v37, %v4084_v15  ;;  %v843_v60 = vmul.f32 %v3600_v37, %v4086_v19  ;;  %v4105_v9 = vmul.f32 %v3600_v37, %v738_v57  ;;  %5742 = vst [vmem:[#allocation21_spill] sm:$0xff] %v4107_v17 }
  0x7d   : > { %5743 = vst [vmem:[#allocation22_spill] sm:$0xff] %v4109_v0  ;;  %v870_v21 = vadd.f32 %v838_v50, %v802_v41  ;;  %v871_v45 = vadd.f32 %v839_v11, %v803_v42  ;;  %v906_v24 = vmul.f32 %v3611_v43, %v734_v47  ;;  %v907_v26 = vmul.f32 %v3611_v43, %v735_v55  ;;  %v975_v41 = vld [vmem:[#allocation2 + $0x1d1] sm:$0xff] }
  0x7e   : > { %5741 = vst [vmem:[#allocation20_spill] sm:$0xff] %v4105_v9  ;;  %5744 = vst [vmem:[#allocation23_spill] sm:$0xff] %v4113_v8  ;;  %v874_v6 = vadd.f32 %v842_v52, %v806_v29  ;;  %v875_v4 = vadd.f32 %v843_v60, %v807_v61  ;;  %v910_v63 = vmul.f32 %v3611_v43, %v738_v57 }
  0x7f   : > { %5745 = vst [vmem:[#allocation24_spill] sm:$0xff] %v4115_v49  ;;  %v911_v23 = vmul.f32 %v3611_v43, %v4088_v25  ;;  %v938_v20 = vadd.f32 %v906_v24, %v870_v21  ;;  %v939_v1 = vadd.f32 %v907_v26, %v871_v45  ;;  %v1010_v47 = vmul.f32 %v3586_v30, %v4107_v17  ;;  %v4152_v26 = vld [vmem:[#allocation2 + $0x1f1] sm:$0xff]  ;;  %v4205_v17 = vld [vmem:[#allocation2 + $0x149] sm:$0xff] }
  0x80   : > { %v1011_v55 = vmul.f32 %v3586_v30, %v4109_v0  ;;  %v942_v42 = vadd.f32 %v910_v63, %v874_v6  ;;  %v4126_v11 = vmul.f32 %v3586_v30, %v4113_v8  ;;  %v4130_v57 = vmul.f32 %v3586_v30, %v4115_v49 }
  0x81   : > { %v943_v50 = vadd.f32 %v911_v23, %v875_v4  ;;  %v1014_v29 = vmul.f32 %v3586_v30, %v974_v62  ;;  %v1015_v61 = vmul.f32 %v3586_v30, %v975_v41  ;;  %v1042_v52 = vadd.f32 %v1010_v47, %v938_v20 }
  0x82   : > { %v1043_v60 = vadd.f32 %v1011_v55, %v939_v1  ;;  %v1078_v21 = vmul.f32 %v3614_v44, %v4113_v8  ;;  %v1079_v6 = vmul.f32 %v3614_v44, %v4115_v49  ;;  %v4139_v23 = vmul.f32 %v3614_v44, %v974_v62  ;;  %v4150_v1 = vld [vmem:[#allocation2 + $0x1e9] sm:$0xff] }
  0x83   : > { %v4142_v63 = vmul.f32 %v3614_v44, %v975_v41  ;;  %v4144_v4 = vadd.f32 %v1014_v29, %v942_v42  ;;  %v4146_v45 = vadd.f32 %v1015_v61, %v943_v50  ;;  %v1146_v24 = vmul.f32 %v3702_v39, %v974_v62  ;;  %v4166_v29 = vld [vmem:[#allocation2 + $0x147] sm:$0xff] }
  0x84   : > { %v1147_v20 = vmul.f32 %v3702_v39, %v975_v41  ;;  %v1110_v47 = vadd.f32 %v1078_v21, %v1042_v52  ;;  %v1111_v55 = vadd.f32 %v1079_v6, %v1043_v60  ;;  %v632_v49 = vadd.f32 %v4042_v28, %v4020_v53  ;;  %v4172_v28 = vld [vmem:[#allocation2 + $0x14f] sm:$0xff] }
  0x85   : > { %v633_v8 = vadd.f32 %v4047_v16, %v4024_v31  ;;  %v668_v42 = vmul.f32 %v3597_v36, %v4027_v40  ;;  %v669_v62 = vmul.f32 %v3597_v36, %v4033_v58  ;;  %v908_v41 = vmul.f32 %v3611_v43, %v4084_v15  ;;  %5746 = vst [vmem:[#allocation25_spill] sm:$0xff] %v4172_v28 }
  0x86   : > { %v909_v50 = vmul.f32 %v3611_v43, %v4086_v19  ;;  %v1178_v61 = vadd.f32 %v1146_v24, %v1110_v47  ;;  %v1179_v52 = vadd.f32 %v1147_v20, %v1111_v55  ;;  %v1148_v53 = vmul.f32 %v3702_v39, %v4150_v1  ;;  %v4184_v55 = vld [vmem:[#allocation2 + $0x148] sm:$0xff] }
  0x87   : > { %v1149_v31 = vmul.f32 %v3702_v39, %v4152_v26  ;;  %v700_v16 = vadd.f32 %v668_v42, %v632_v49  ;;  %v701_v60 = vadd.f32 %v669_v62, %v633_v8  ;;  %v554_v21 = vmul.f32 %v3576_v22, %v3906_v51 }
  0x88   : > { %v555_v6 = vmul.f32 %v3576_v22, %v3908_v48  ;;  %v1198_v0 = vpack.c.bf16 %v1179_v52, %v1178_v61  ;;  %v590_v24 = vmul.f32 %v3590_v32, %v3943_v38  ;;  %v591_v20 = vmul.f32 %v3590_v32, %v3945_v18  ;;  %v4190_v48 = vld [vmem:[#allocation2 + $0x150] sm:$0xff] }
  0x89   : > { %v658_v47 = vmul.f32 %v3597_v36, %v4166_v29  ;;  %v804_v49 = vadd.f32 %v4075_v10, %v700_v16  ;;  %v805_v8 = vadd.f32 %v4092_v35, %v701_v60  ;;  %v659_v51 = vmul.f32 %v3597_v36, %v4172_v28 }
  0x8a   : > { %v762_v42 = vmul.f32 %v3583_v27, %v3924_v34  ;;  %3266 = vmatprep.mubr.msk.bf16.mxu1 %vm388_vm1, %v1198_v0  ;;  %v622_v62 = vadd.f32 %v590_v24, %v554_v21  ;;  %v623_v61 = vadd.f32 %v591_v20, %v555_v6  ;;  %v763_v52 = vmul.f32 %v3583_v27, %v3926_v14  ;;  %v4209_v6 = vld [vmem:[#allocation2 + $0x151] sm:$0xff] }
  0x8b   : > { %v830_v10 = vmul.f32 %v3600_v37, %v3974_v33  ;;  %v872_v35 = vadd.f32 %v4095_v2, %v804_v49  ;;  %v873_v16 = vadd.f32 %v4098_v46, %v805_v8  ;;  %v831_v60 = vmul.f32 %v3600_v37, %v3976_v13 }
  0x8c   : > { %v898_v34 = vmul.f32 %v3611_v43, %v4184_v55  ;;  %v690_v0 = vadd.f32 %v658_v47, %v622_v62  ;;  %v691_v21 = vadd.f32 %v659_v51, %v623_v61  ;;  %v899_v14 = vmul.f32 %v3611_v43, %v4190_v48  ;;  %v4221_v62 = vld [vmem:[#allocation2 + $0x167] sm:$0xff] }
  0x8d   : > { %v1002_v2 = vmul.f32 %v3586_v30, %v3947_v5  ;;  %v940_v24 = vadd.f32 %v908_v41, %v872_v35  ;;  %v941_v46 = vadd.f32 %v909_v50, %v873_v16  ;;  %v1003_v20 = vmul.f32 %v3586_v30, %v3949_v56  ;;  %v4227_v50 = vld [vmem:[#allocation2 + $0x16f] sm:$0xff] }
  0x8e   : > { %v1070_v49 = vmul.f32 %v3614_v44, %v3990_v12  ;;  %v794_v8 = vadd.f32 %v762_v42, %v690_v0  ;;  %v795_v9 = vadd.f32 %v763_v52, %v691_v21  ;;  %v1071_v47 = vmul.f32 %v3614_v44, %v3992_v59 }
  0x8f   : > { %v1138_v51 = vmul.f32 %v3702_v39, %v4205_v17  ;;  %v1044_v5 = vadd.f32 %v4126_v11, %v940_v24  ;;  %v1045_v41 = vadd.f32 %v4130_v57, %v941_v46  ;;  %v1139_v56 = vmul.f32 %v3702_v39, %v4209_v6 }
  0x90   : > { %v556_v42 = vmul.f32 %v3576_v22, %v3943_v38  ;;  %v862_v61 = vadd.f32 %v830_v10, %v794_v8  ;;  %v863_v52 = vadd.f32 %v831_v60, %v795_v9  ;;  %v557_v35 = vmul.f32 %v3576_v22, %v3945_v18  ;;  %v4243_v8 = vld [vmem:[#allocation2 + $0x168] sm:$0xff] }
  0x91   : > { %v592_v16 = vmul.f32 %v3590_v32, %v4166_v29  ;;  %v1112_v11 = vadd.f32 %v4139_v23, %v1044_v5  ;;  %v1113_v57 = vadd.f32 %v4142_v63, %v1045_v41  ;;  %v593_v0 = vmul.f32 %v3590_v32, %v4172_v28  ;;  %v4247_v28 = vld [vmem:[#allocation2 + $0x170] sm:$0xff] }
  0x92   : > { %v660_v21 = vmul.f32 %v3597_v36, %v4221_v62  ;;  %v930_v24 = vadd.f32 %v898_v34, %v862_v61  ;;  %v931_v38 = vadd.f32 %v899_v14, %v863_v52  ;;  %v661_v9 = vmul.f32 %v3597_v36, %v4227_v50 }
  0x93   : > { %v624_v10 = vadd.f32 %v592_v16, %v556_v42  ;;  %v1180_v18 = vadd.f32 %v1148_v53, %v1112_v11  ;;  %v1181_v60 = vadd.f32 %v1149_v31, %v1113_v57  ;;  %v625_v46 = vadd.f32 %v593_v0, %v557_v35 }
  0x94   : > { %v764_v23 = vmul.f32 %v3583_v27, %v3974_v33  ;;  %v1034_v63 = vadd.f32 %v1002_v2, %v930_v24  ;;  %v1035_v5 = vadd.f32 %v1003_v20, %v931_v38  ;;  %v765_v34 = vmul.f32 %v3583_v27, %v3976_v13  ;;  %v4257_v2 = vld [vmem:[#allocation2 + $0x169] sm:$0xff]  ;;  %v4259_v20 = vld [vmem:[#allocation2 + $0x171] sm:$0xff] }
  0x95   : > { %v692_v41 = vadd.f32 %v660_v21, %v624_v10  ;;  %v1199_v14 = vpack.c.bf16 %v1181_v60, %v1180_v18  ;;  %v693_v42 = vadd.f32 %v661_v9, %v625_v46  ;;  %v832_v53 = vmul.f32 %v3600_v37, %v4184_v55  ;;  %v978_v24 = vld [vmem:[#allocation2 + $0x209] sm:$0xff]  ;;  %v979_v38 = vld [vmem:[#allocation2 + $0x211] sm:$0xff] }
  0x96   : > { %v833_v31 = vmul.f32 %v3600_v37, %v4190_v48  ;;  %v1102_v61 = vadd.f32 %v1070_v49, %v1034_v63  ;;  %v1103_v52 = vadd.f32 %v1071_v47, %v1035_v5  ;;  %v900_v33 = vmul.f32 %v3611_v43, %v4243_v8  ;;  %v532_v46 = vld [vmem:[#allocation2 + $0x227] sm:$0xff] }
  0x97   : > { %v796_v35 = vadd.f32 %v764_v23, %v692_v41  ;;  %3267 = vmatmul.mubr.msk.bf16.vlgmr.msra.gmra.mrb[0].mxu1 %vm388_vm1, %v1199_v14  ;;  %v797_v13 = vadd.f32 %v765_v34, %v693_v42  ;;  %v901_v16 = vmul.f32 %v3611_v43, %v4247_v28  ;;  %v1004_v11 = vmul.f32 %v3586_v30, %v3990_v12  ;;  %v533_v23 = vld [vmem:[#allocation2 + $0x22f] sm:$0xff] }
  0x98   : > { %v1005_v49 = vmul.f32 %v3586_v30, %v3992_v59  ;;  %v1170_v47 = vadd.f32 %v1138_v51, %v1102_v61  ;;  %v1171_v57 = vadd.f32 %v1139_v56, %v1103_v52  ;;  %v1072_v21 = vmul.f32 %v3614_v44, %v4205_v17 }
  0x99   : > { %v864_v0 = vadd.f32 %v832_v53, %v796_v35  ;;  %v865_v10 = vadd.f32 %v833_v31, %v797_v13  ;;  %v1073_v9 = vmul.f32 %v3614_v44, %v4209_v6  ;;  %v1140_v18 = vmul.f32 %v3702_v39, %v4257_v2 }
  0x9a   : > { %v1141_v12 = vmul.f32 %v3702_v39, %v4259_v20  ;;  %v1194_v60 = vpack.c.bf16 %v1171_v57, %v1170_v47  ;;  %v1082_v51 = vmul.f32 %v3614_v44, %v4150_v1  ;;  %v1083_v56 = vmul.f32 %v3614_v44, %v4152_v26  ;;  %v741_v57 = vld [vmem:[#allocation2 + $0x230] sm:$0xff] }
  0x9b   : > { %v932_v59 = vadd.f32 %v900_v33, %v864_v0  ;;  %v933_v63 = vadd.f32 %v901_v16, %v865_v10  ;;  %v1150_v5 = vmul.f32 %v3702_v39, %v978_v24  ;;  %v1151_v41 = vmul.f32 %v3702_v39, %v979_v38 }
  0x9c   : > { %v568_v34 = vmul.f32 %v3576_v22, %v4027_v40  ;;  %3258 = vmatprep.mubr.msk.bf16.mxu0 %vm388_vm1, %v1194_v60  ;;  %v1114_v42 = vadd.f32 %v1082_v51, %v4144_v4  ;;  %v1115_v53 = vadd.f32 %v1083_v56, %v4146_v45  ;;  %v569_v31 = vmul.f32 %v3576_v22, %v4033_v58  ;;  %v5747_v51 = vld [vmem:[#allocation20_spill] sm:$0xff] }
  0x9d   : > { %v1036_v14 = vadd.f32 %v1004_v11, %v932_v59  ;;  %v1037_v61 = vadd.f32 %v1005_v49, %v933_v63  ;;  %v672_v35 = vmul.f32 %v3597_v36, %v532_v46  ;;  %v673_v39 = vmul.f32 %v3597_v36, %v533_v23  ;;  %v740_v11 = vld [vmem:[#allocation2 + $0x228] sm:$0xff] }
  0x9e   : > { %v636_v52 = vadd.f32 %v4054_v3, %v568_v34  ;;  %v1182_v13 = vadd.f32 %v1150_v5, %v1114_v42  ;;  %v1183_v40 = vadd.f32 %v1151_v41, %v1115_v53  ;;  %v637_v16 = vadd.f32 %v4071_v7, %v569_v31  ;;  %v980_v46 = vld [vmem:[#allocation2 + $0x229] sm:$0xff]  ;;  %v981_v5 = vld [vmem:[#allocation2 + $0x231] sm:$0xff] }
  0x9f   : > { %v1104_v33 = vadd.f32 %v1072_v21, %v1036_v14  ;;  %v1105_v47 = vadd.f32 %v1073_v9, %v1037_v61  ;;  %v776_v45 = vmul.f32 %v3583_v27, %v4084_v15  ;;  %v777_v58 = vmul.f32 %v3583_v27, %v4086_v19  ;;  %v5748_v34 = vld [vmem:[#allocation25_spill] sm:$0xff] }
  0xa0   : > { %v704_v4 = vadd.f32 %v672_v35, %v636_v52  ;;  %v845_v3 = vmul.f32 %v3600_v37, %v4088_v25  ;;  %v1200_v0 = vpack.c.bf16 %v1183_v40, %v1182_v13  ;;  %v705_v21 = vadd.f32 %v673_v39, %v637_v16 }
  0xa1   : > { %v1172_v49 = vadd.f32 %v1140_v18, %v1104_v33  ;;  %v597_v10 = vmul.f32 %v3590_v32, %v4000_v54  ;;  %v1173_v7 = vadd.f32 %v1141_v12, %v1105_v47  ;;  %v912_v9 = vmul.f32 %v3611_v43, %v740_v11 }
  0xa2   : > { %v808_v60 = vadd.f32 %v776_v45, %v704_v4  ;;  %3270 = vmatprep.mubr.msk.bf16.mxu1 %vm388_vm1, %v1200_v0  ;;  %v809_v59 = vadd.f32 %v777_v58, %v705_v21  ;;  %v913_v15 = vmul.f32 %v3611_v43, %v741_v57  ;;  %v1016_v19 = vmul.f32 %v3586_v30, %v4150_v1  ;;  %v5750_v57 = vld [vmem:[#allocation16_spill] sm:$0xff]  ;;  %v5751_v45 = vld [vmem:[#allocation17_spill] sm:$0xff] }
  0xa3   : > { %v1017_v25 = vmul.f32 %v3586_v30, %v4152_v26  ;;  %v1195_v18 = vpack.c.bf16 %v1173_v7, %v1172_v49  ;;  %v1084_v12 = vmul.f32 %v3614_v44, %v978_v24  ;;  %v1085_v23 = vmul.f32 %v3614_v44, %v979_v38  ;;  %v5749_v24 = vld [vmem:[#allocation12_spill] sm:$0xff] }
  0xa4   : > { %v876_v56 = vadd.f32 %v5747_v51, %v808_v60  ;;  %v877_v63 = vadd.f32 %v845_v3, %v809_v59  ;;  %v558_v41 = vmul.f32 %v3576_v22, %v4166_v29  ;;  %v559_v14 = vmul.f32 %v3576_v22, %v5748_v34  ;;  %v4327_v29 = vld [vmem:[%s5667_s1 + $0x8] ss:$0 sm:$0xff]  ;;  %v5753_v51 = vld [vmem:[#allocation14_spill] sm:$0xff] }
  0xa5   : > { %v594_v1 = vmul.f32 %v3590_v32, %v4221_v62  ;;  %3259 = vmatmul.mubr.msk.bf16.gmra.mrb[16].mxu0 %vm388_vm1, %v1195_v18  ;;  %v595_v42 = vmul.f32 %v3590_v32, %v4227_v50  ;;  %v662_v38 = vmul.f32 %v3597_v36, %v5749_v24  ;;  %v663_v53 = vmul.f32 %v3597_v36, %v4000_v54  ;;  %v5752_v18 = vld [vmem:[#allocation13_spill] sm:$0xff] }
  0xa6   : > { %v944_v26 = vadd.f32 %v912_v9, %v876_v56  ;;  %v945_v31 = vadd.f32 %v913_v15, %v877_v63  ;;  %v1152_v61 = vmul.f32 %v4327_v29, %v980_v46  ;;  %v766_v35 = vmul.f32 %v3583_v27, %v4184_v55  ;;  %v5754_v63 = vld [vmem:[#allocation15_spill] sm:$0xff] }
  0xa7   : > { %v626_v52 = vadd.f32 %v594_v1, %v558_v41  ;;  %v1153_v32 = vmul.f32 %v4327_v29, %v981_v5  ;;  %v627_v33 = vadd.f32 %v595_v42, %v559_v14  ;;  %v767_v13 = vmul.f32 %v3583_v27, %v4190_v48 }
  0xa8   : > { %v1048_v39 = vadd.f32 %v1016_v19, %v944_v26  ;;  %v1049_v54 = vadd.f32 %v1017_v25, %v945_v31  ;;  %v834_v16 = vmul.f32 %v3600_v37, %v4243_v8  ;;  %v835_v11 = vmul.f32 %v3600_v37, %v4247_v28 }
  0xa9   : > { %v694_v40 = vadd.f32 %v662_v38, %v626_v52  ;;  %v695_v4 = vadd.f32 %v663_v53, %v627_v33  ;;  %v902_v55 = vmul.f32 %v3611_v43, %v5750_v57  ;;  %v903_v58 = vmul.f32 %v3611_v43, %v5751_v45  ;;  %v5757_v38 = vld [vmem:[#allocation18_spill] sm:$0xff] }
  0xaa   : > { %v1116_v47 = vadd.f32 %v1084_v12, %v1048_v39  ;;  %v1117_v3 = vadd.f32 %v1085_v23, %v1049_v54  ;;  %v1006_v48 = vmul.f32 %v3586_v30, %v4205_v17  ;;  %v1007_v0 = vmul.f32 %v3586_v30, %v4209_v6 }
  0xab   : > { %v798_v49 = vadd.f32 %v766_v35, %v694_v40  ;;  %v799_v7 = vadd.f32 %v767_v13, %v695_v4  ;;  %v1074_v60 = vmul.f32 %v3614_v44, %v4257_v2  ;;  %v1075_v9 = vmul.f32 %v3614_v44, %v4259_v20  ;;  %v5760_v4 = vld [vmem:[#allocation23_spill] sm:$0xff] }
  0xac   : > { %v1184_v21 = vadd.f32 %v1152_v61, %v1116_v47  ;;  %v1185_v59 = vadd.f32 %v1153_v32, %v1117_v3  ;;  %v560_v19 = vmul.f32 %v3576_v22, %v4221_v62  ;;  %v561_v25 = vmul.f32 %v3576_v22, %v4227_v50  ;;  %v5755_v62 = vld [vmem:[#allocation21_spill] sm:$0xff]  ;;  %v5758_v61 = vld [vmem:[#allocation19_spill] sm:$0xff] }
  0xad   : > { %v866_v15 = vadd.f32 %v834_v16, %v798_v49  ;;  %v867_v17 = vadd.f32 %v835_v11, %v799_v7  ;;  %v664_v6 = vmul.f32 %v3597_v36, %v5752_v18  ;;  %v665_v56 = vmul.f32 %v3597_v36, %v5753_v51 }
  0xae   : > { %v768_v46 = vmul.f32 %v3583_v27, %v4243_v8  ;;  %v1201_v12 = vpack.c.bf16 %v1185_v59, %v1184_v21  ;;  %v628_v5 = vadd.f32 %v5754_v63, %v560_v19  ;;  %v629_v41 = vadd.f32 %v597_v10, %v561_v25  ;;  %v5756_v10 = vld [vmem:[#allocation22_spill] sm:$0xff] }
  0xaf   : > { %v934_v23 = vadd.f32 %v902_v55, %v866_v15  ;;  %v935_v34 = vadd.f32 %v903_v58, %v867_v17  ;;  %v1142_v14 = vmul.f32 %v4327_v29, %v5755_v62  ;;  %v769_v22 = vmul.f32 %v3583_v27, %v4247_v28  ;;  %v5761_v55 = vld [vmem:[#allocation24_spill] sm:$0xff] }
  0xb0   : > { %v836_v50 = vmul.f32 %v3600_v37, %v5750_v57  ;;  %3271 = vmatmul.mubr.msk.bf16.gmra.mrb[4].mxu1 %vm388_vm1, %v1201_v12  ;;  %v696_v1 = vadd.f32 %v664_v6, %v628_v5  ;;  %v697_v8 = vadd.f32 %v665_v56, %v629_v41  ;;  %v837_v26 = vmul.f32 %v3600_v37, %v5751_v45  ;;  %v1531_v56 = vld [vmem:[%s5670_s4] sm:$0xff]  ;;  %v5763_v5 = vld [vmem:[#allocation7_spill] sm:$0xff] }
  0xb1   : > { %v1038_v36 = vadd.f32 %v1006_v48, %v934_v23  ;;  %v1039_v42 = vadd.f32 %v1007_v0, %v935_v34  ;;  %v1143_v24 = vmul.f32 %v4327_v29, %v5756_v10  ;;  %v904_v53 = vmul.f32 %v3611_v43, %v5757_v38  ;;  %v5762_v12 = vld [vmem:[#allocation4_spill] sm:$0xff] }
  0xb2   : > { %v800_v27 = vadd.f32 %v768_v46, %v696_v1  ;;  %v801_v28 = vadd.f32 %v769_v22, %v697_v8  ;;  %v905_v52 = vmul.f32 %v3611_v43, %v5758_v61  ;;  %v1008_v39 = vmul.f32 %v3586_v30, %v4257_v2 }
  0xb3   : > { %v1106_v31 = vadd.f32 %v1074_v60, %v1038_v36  ;;  %v1107_v35 = vadd.f32 %v1075_v9, %v1039_v42  ;;  %v1009_v37 = vmul.f32 %v3586_v30, %v4259_v20  ;;  %v5759_v40 = vmov 0.0   ;;  %v5765_v42 = vld [vmem:[#allocation5_spill] sm:$0xff] }
  0xb4   : > { %v868_v33 = vadd.f32 %v836_v50, %v800_v27  ;;  %v869_v13 = vadd.f32 %v837_v26, %v801_v28  ;;  %1456 = vst.msk [vmem:[#allocation3] sm:$0xff] %vm1455_vm3, %v5759_v40  ;;  %1457 = vst.msk [vmem:[#allocation3 + $0x8] sm:$0xff] %vm1455_vm3, %v5759_v40  ;;  %v1076_v2 = vmul.f32 %v3614_v44, %v5755_v62  ;;  %v5767_v28 = vld [vmem:[#allocation10_spill] sm:$0xff] }
  0xb5   : > { %v1174_v32 = vadd.f32 %v1142_v14, %v1106_v31  ;;  %v1175_v54 = vadd.f32 %v1143_v24, %v1107_v35  ;;  %1458 = vst.msk [vmem:[#allocation3 + $0x10] sm:$0xff] %vm1455_vm3, %v5759_v40  ;;  %1462 = vst.msk [vmem:[#allocation3 + $0x220] sm:$0xff] %vm1455_vm3, %v5759_v40  ;;  %v1077_v20 = vmul.f32 %v3614_v44, %v5756_v10  ;;  %v2237_v44 = vld [vmem:[%s5671_s5] sm:$0xf]  ;;  %v5766_v31 = vld [vmem:[#allocation9_spill] sm:$0xff] }
  0xb6   : > { %1463 = vst.msk [vmem:[#allocation3 + $0x228] sm:$0xff] %vm1455_vm3, %v5759_v40  ;;  %1464 = vst.msk [vmem:[#allocation3 + $0x230] sm:$0xff] %vm1455_vm3, %v5759_v40  ;;  %v936_v30 = vadd.f32 %v904_v53, %v868_v33  ;;  %v937_v43 = vadd.f32 %v905_v52, %v869_v13  ;;  %v1144_v57 = vmul.f32 %v4327_v29, %v5760_v4  ;;  %3348 = vmatprep.subr.msk.bf16.mxu1 %vm2293_vm4, %v2237_v44  ;;  %v5764_v14 = vld [vmem:[#allocation8_spill] sm:$0xff] }
  0xb7   : > { %1467 = vst.msk [vmem:[#allocation3 + $0x20] sm:$0xff] %vm1455_vm3, %v5759_v40  ;;  %1468 = vst.msk [vmem:[#allocation3 + $0x40] sm:$0xff] %vm1455_vm3, %v5759_v40  ;;  %v1196_v16 = vpack.c.bf16 %v1175_v54, %v1174_v32  ;;  %v1145_v45 = vmul.f32 %v4327_v29, %v5761_v55  ;;  %v2295_v21 = vsel %vm2293_vm4, %v2237_v44, 0  ;;  %v4479_v29 = vld [vmem:[%s5669_s3] ss:$0 sm:$0xff]  ;;  %v4493_v23 = vrot.slane %v1531_v56, %v5762_v12  ;;  %v5769_v54 = vld [vmem:[#allocation6_spill] sm:$0xff] }
  0xb8   : > { %1469 = vst.msk [vmem:[#allocation3 + $0x60] sm:$0xff] %vm1455_vm3, %v5759_v40  ;;  %1470 = vst.msk [vmem:[#allocation3 + $0x80] sm:$0xff] %vm1455_vm3, %v5759_v40  ;;  %v1040_v11 = vadd.f32 %v1008_v39, %v936_v30  ;;  %v1041_v47 = vadd.f32 %v1009_v37, %v937_v43  ;;  %3275 = vmatpush3.bf16.msra.mxu1 %v2295_v21  ;;  %v4496_v41 = vrot.slane %v1531_v56, %v5763_v5  ;;  %v5770_v30 = vld [vmem:[#allocation11_spill] sm:$0xff] }
  0xb9   : > { %1471 = vst.msk [vmem:[#allocation3 + $0xa0] sm:$0xff] %vm1455_vm3, %v5759_v40  ;;  %1472 = vst.msk [vmem:[#allocation3 + $0xc0] sm:$0xff] %vm1455_vm3, %v5759_v40  ;;  %3262 = vmatprep.mubr.msk.bf16.mxu0 %vm388_vm1, %v1196_v16  ;;  %v4500_v22 = vrot.slane %v1531_v56, %v5764_v14  ;;  %v4507_v10 = vrot.slane %v1531_v56, %v5765_v42  ;;  %v4512_v27 = vrot.slane %v1531_v56, %v5766_v31 }
  0xba   : > { %1473 = vst.msk [vmem:[#allocation3 + $0xe0] sm:$0xff] %vm1455_vm3, %v5759_v40  ;;  %1474 = vst.msk [vmem:[#allocation3 + $0x100] sm:$0xff] %vm1455_vm3, %v5759_v40  ;;  %v1108_v58 = vadd.f32 %v1076_v2, %v1040_v11  ;;  %v1109_v3 = vadd.f32 %v1077_v20, %v1041_v47  ;;  %v4515_v61 = vrot.slane %v1531_v56, %v5767_v28 }
  0xbb   : > { %1475 = vst.msk [vmem:[#allocation3 + $0x120] sm:$0xff] %vm1455_vm3, %v5759_v40  ;;  %1476 = vst.msk [vmem:[#allocation3 + $0x140] sm:$0xff] %vm1455_vm3, %v5759_v40  ;;  %v1533_v63 = vld [vmem:[#allocation3 + $0x7] sm:$0xff]  ;;  %v4527_v43 = vrot.slane %v1531_v56, %v5770_v30 }
  0xbc   : > { %1477 = vst.msk [vmem:[#allocation3 + $0x160] sm:$0xff] %vm1455_vm3, %v5759_v40  ;;  %1478 = vst.msk [vmem:[#allocation3 + $0x180] sm:$0xff] %vm1455_vm3, %v5759_v40  ;;  %v1176_v49 = vadd.f32 %v1144_v57, %v1108_v58  ;;  %v1177_v48 = vadd.f32 %v1145_v45, %v1109_v3  ;;  %v1534_v34 = vld [vmem:[#allocation3 + $0xf] sm:$0xff]  ;;  %v1573_v62 = vmul.f32 %v4493_v23, %v1533_v63 }
  0xbd   : > { %1479 = vst.msk [vmem:[#allocation3 + $0x1a0] sm:$0xff] %vm1455_vm3, %v5759_v40  ;;  %1480 = vst.msk [vmem:[#allocation3 + $0x1c0] sm:$0xff] %vm1455_vm3, %v5759_v40  ;;  %v1741_v1 = vld [vmem:[#allocation3 + $0x8] sm:$0xff]  ;;  %v1574_v8 = vmul.f32 %v4493_v23, %v1534_v34  ;;  %v1742_v53 = vld [vmem:[#allocation3 + $0x10] sm:$0xff] }
  0xbe   : > { %1481 = vst.msk [vmem:[#allocation3 + $0x1e0] sm:$0xff] %vm1455_vm3, %v5759_v40  ;;  %1482 = vst.msk [vmem:[#allocation3 + $0x200] sm:$0xff] %vm1455_vm3, %v5759_v40  ;;  %v1197_v0 = vpack.c.bf16 %v1177_v48, %v1176_v49  ;;  %v1781_v32 = vmul.f32 %v4507_v10, %v1741_v1  ;;  %v1981_v33 = vld [vmem:[#allocation3 + $0x9] sm:$0xff]  ;;  %v1782_v4 = vmul.f32 %v4507_v10, %v1742_v53 }
  0xbf   : > { %1460 = vst.msk [vmem:[#allocation3 + $0x18] sm:$0x1] %vm1459_vm5, %v5759_v40  ;;  %1483 = vst.msk [vmem:[#allocation3 + $0x38] sm:$0x1] %vm1459_vm5, %v5759_v40 }
  0xc0   : > { %3263 = vmatmul.mubr.msk.bf16.gmra.mrb[20].mxu0 %vm388_vm1, %v1197_v0  ;;  %1484 = vst.msk [vmem:[#allocation3 + $0x58] sm:$0x1] %vm1459_vm5, %v5759_v40  ;;  %1465 = vst.msk [vmem:[#allocation3 + $0x238] sm:$0x1] %vm1459_vm5, %v5759_v40 }
  0xc1   : > { %1485 = vst.msk [vmem:[#allocation3 + $0x78] sm:$0x1] %vm1459_vm5, %v5759_v40  ;;  %1486 = vst.msk [vmem:[#allocation3 + $0x98] sm:$0x1] %vm1459_vm5, %v5759_v40 }
  0xc2   : > { %1487 = vst.msk [vmem:[#allocation3 + $0xb8] sm:$0x1] %vm1459_vm5, %v5759_v40  ;;  %1488 = vst.msk [vmem:[#allocation3 + $0xd8] sm:$0x1] %vm1459_vm5, %v5759_v40 }
  0xc3   : > { %1489 = vst.msk [vmem:[#allocation3 + $0xf8] sm:$0x1] %vm1459_vm5, %v5759_v40  ;;  %1490 = vst.msk [vmem:[#allocation3 + $0x118] sm:$0x1] %vm1459_vm5, %v5759_v40 }
  0xc4   : > { %1491 = vst.msk [vmem:[#allocation3 + $0x138] sm:$0x1] %vm1459_vm5, %v5759_v40  ;;  %1492 = vst.msk [vmem:[#allocation3 + $0x158] sm:$0x1] %vm1459_vm5, %v5759_v40 }
  0xc5   : > { %1493 = vst.msk [vmem:[#allocation3 + $0x178] sm:$0x1] %vm1459_vm5, %v5759_v40  ;;  %1494 = vst.msk [vmem:[#allocation3 + $0x198] sm:$0x1] %vm1459_vm5, %v5759_v40 }
  0xc6   : > { %1495 = vst.msk [vmem:[#allocation3 + $0x1b8] sm:$0x1] %vm1459_vm5, %v5759_v40  ;;  %1496 = vst.msk [vmem:[#allocation3 + $0x1d8] sm:$0x1] %vm1459_vm5, %v5759_v40 }
  0xc7   : > { %1497 = vst.msk [vmem:[#allocation3 + $0x1f8] sm:$0x1] %vm1459_vm5, %v5759_v40  ;;  %1498 = vst.msk [vmem:[#allocation3 + $0x218] sm:$0x1] %vm1459_vm5, %v5759_v40  ;;  %v4524_v40 = vrot.slane %v1531_v56, %v5769_v54 }
  0xc8   : > { %5768 = vst [vmem:[#allocation20_spill] sm:$0xff] %v4515_v61 }
  0xc9   : > { %v2021_v3 = vmul.f32 %v4524_v40, %v1981_v33 }
 0x11b   : > { %v3244_v7 = vpop.f32.mrb[0].mxu0 }
 0x11c   : > { %v1305_v60 = vadd.f32 %v3244_v7, %v4479_v29  ;;  %v1296_v9 = vpop.f32.mrb[1].mxu0  ;;  %v1982_v7 = vld [vmem:[#allocation3 + $0x11] sm:$0xff] }
 0x11d   : > { %v1297_v59 = vadd.f32 %v4479_v29, %v1296_v9  ;;  %v3245_v15 = vpop.f32.mrb[2].mxu0 }
 0x11e   : > { %v1425_v19 = vmax.f32 %v1305_v60, 0.0  ;;  %v1308_v25 = vadd.f32 %v3245_v15, %v4479_v29  ;;  %v1299_v17 = vpop.f32.mrb[3].mxu0 }
 0x11f   : > { %v1423_v18 = vmax.f32 %v1297_v59, 0.0  ;;  %v1300_v6 = vadd.f32 %v4479_v29, %v1299_v17 }
 0x120   : > { %1501 = vst.msk [vmem:[#allocation3 + $0x48] sm:$0xff] %vm1455_vm3, %v1425_v19  ;;  %v1426_v51 = vmax.f32 %v1308_v25, 0.0 }
 0x121   : > { %1499 = vst.msk [vmem:[#allocation3 + $0x28] sm:$0xff] %vm1455_vm3, %v1423_v18  ;;  %v1424_v46 = vmax.f32 %v1300_v6, 0.0 }
 0x122   : > { %1502 = vst.msk [vmem:[#allocation3 + $0x50] sm:$0xff] %vm1455_vm3, %v1426_v51 }
 0x123   : > { %1500 = vst.msk [vmem:[#allocation3 + $0x30] sm:$0xff] %vm1455_vm3, %v1424_v46 }
 0x127   : > { %v4502_v36 = vld [vmem:[#allocation3 + $0x47] sm:$0xff] }
 0x128   : > { %v1535_v50 = vld [vmem:[#allocation3 + $0x27] sm:$0xff]  ;;  %v1677_v39 = vmul.f32 %v4500_v22, %v4502_v36  ;;  %v1611_v45 = vmul.f32 %v4496_v41, %v4502_v36 }
 0x129   : > { %v1609_v26 = vmul.f32 %v4496_v41, %v1535_v50  ;;  %v4509_v38 = vld [vmem:[#allocation3 + $0x4f] sm:$0xff]  ;;  %v1575_v15 = vmul.f32 %v4493_v23, %v1535_v50 }
 0x12a   : > { %v1536_v24 = vld [vmem:[#allocation3 + $0x2f] sm:$0xff]  ;;  %v1678_v16 = vmul.f32 %v4500_v22, %v4509_v38  ;;  %v1612_v63 = vmul.f32 %v4496_v41, %v4509_v38 }
 0x12b   : > { %v1610_v52 = vmul.f32 %v4496_v41, %v1536_v24  ;;  %v1641_v35 = vadd.f32 %v1609_v26, %v1573_v62  ;;  %v4520_v37 = vld [vmem:[#allocation3 + $0x48] sm:$0xff]  ;;  %v1744_v47 = vld [vmem:[#allocation3 + $0x30] sm:$0xff]  ;;  %v1576_v46 = vmul.f32 %v4493_v23, %v1536_v24  ;;  %v2022_v62 = vmul.f32 %v4524_v40, %v1982_v7 }
 0x12c   : > { %v1743_v13 = vld [vmem:[#allocation3 + $0x28] sm:$0xff]  ;;  %v1917_v58 = vmul.f32 %v4515_v61, %v4520_v37  ;;  %v1746_v19 = vld [vmem:[#allocation3 + $0x50] sm:$0xff]  ;;  %v1850_v25 = vmul.f32 %v4512_v27, %v1744_v47  ;;  %v4555_v24 = vmul.f32 %v4512_v27, %v4520_v37  ;;  %v1643_v33 = vadd.f32 %v1611_v45, %v1575_v15 }
 0x12d   : > { %v1642_v20 = vadd.f32 %v1610_v52, %v1574_v8  ;;  %v1709_v11 = vadd.f32 %v1677_v39, %v1641_v35  ;;  %v1849_v21 = vmul.f32 %v4512_v27, %v1743_v13  ;;  %v1983_v34 = vld [vmem:[#allocation3 + $0x29] sm:$0xff]  ;;  %v1918_v8 = vmul.f32 %v4515_v61, %v1746_v19  ;;  %v1984_v53 = vld [vmem:[#allocation3 + $0x31] sm:$0xff] }
 0x12e   : > { %v3248_v2 = vpop.f32.mrb[4].mxu0  ;;  %v1783_v52 = vmul.f32 %v4507_v10, %v1743_v13  ;;  %v4558_v35 = vmul.f32 %v4512_v27, %v1746_v19  ;;  %v1986_v39 = vld [vmem:[#allocation3 + $0x51] sm:$0xff]  ;;  %v2089_v13 = vmul.f32 %v4527_v43, %v1983_v34  ;;  %v4594_v15 = vmul.f32 %v4507_v10, %v1746_v19 }
 0x12f   : > { %v1321_v57 = vadd.f32 %v3248_v2, %v4479_v29  ;;  %v1312_v55 = vpop.f32.mrb[5].mxu0  ;;  %v1710_v0 = vadd.f32 %v1678_v16, %v1642_v20  ;;  %v1813_v44 = vadd.f32 %v1781_v32, %v1709_v11  ;;  %v4564_v32 = vld [vmem:[%s5670_s4 + $0x8] ss:$0 sm:$0xff]  ;;  %v1985_v20 = vld [vmem:[#allocation3 + $0x49] sm:$0xff]  ;;  %v1644_v11 = vadd.f32 %v1612_v63, %v1576_v46 }
 0x130   : > { %v1313_v49 = vadd.f32 %v4479_v29, %v1312_v55  ;;  %v3249_v48 = vpop.f32.mrb[6].mxu0  ;;  %v4572_v55 = vmul.f32 %v4524_v40, %v1984_v53 }
 0x131   : > { %v1429_v60 = vmax.f32 %v1321_v57, 0.0  ;;  %v1324_v9 = vadd.f32 %v3249_v48, %v4479_v29  ;;  %v1315_v59 = vpop.f32.mrb[7].mxu0  ;;  %v1814_v6 = vadd.f32 %v1782_v4, %v1710_v0  ;;  %v1881_v51 = vadd.f32 %v1849_v21, %v1813_v44 }
 0x132   : > { %v1427_v17 = vmax.f32 %v1313_v49, 0.0  ;;  %v1316_v18 = vadd.f32 %v4479_v29, %v1315_v59  ;;  %v1784_v4 = vmul.f32 %v4507_v10, %v1744_v47  ;;  %v4569_v57 = vmul.f32 %v4524_v40, %v1983_v34 }
 0x133   : > { %1505 = vst.msk [vmem:[#allocation3 + $0x88] sm:$0xff] %vm1455_vm3, %v1429_v60  ;;  %v1430_v56 = vmax.f32 %v1324_v9, 0.0  ;;  %v1882_v1 = vadd.f32 %v1850_v25, %v1814_v6  ;;  %v1949_v26 = vadd.f32 %v1917_v58, %v1881_v51  ;;  %v2090_v49 = vmul.f32 %v4527_v43, %v1984_v53 }
 0x134   : > { %1503 = vst.msk [vmem:[#allocation3 + $0x68] sm:$0xff] %vm1455_vm3, %v1427_v17  ;;  %v1428_v50 = vmax.f32 %v1316_v18, 0.0  ;;  %v4576_v48 = vmul.f32 %v4527_v43, %v1986_v39  ;;  %v2158_v0 = vmul.f32 %v4564_v32, %v1986_v39  ;;  %v4581_v44 = vmul.f32 %v4527_v43, %v1985_v20 }
 0x135   : > { %1506 = vst.msk [vmem:[#allocation3 + $0x90] sm:$0xff] %vm1455_vm3, %v1430_v56  ;;  %v1950_v2 = vadd.f32 %v1918_v8, %v1882_v1  ;;  %v2053_v16 = vadd.f32 %v2021_v3, %v1949_v26  ;;  %v2157_v3 = vmul.f32 %v4564_v32, %v1985_v20  ;;  %v1577_v47 = vmul.f32 %v4493_v23, %v4502_v36 }
 0x136   : > { %1504 = vst.msk [vmem:[#allocation3 + $0x70] sm:$0xff] %vm1455_vm3, %v1428_v50  ;;  %v1578_v60 = vmul.f32 %v4493_v23, %v4509_v38  ;;  %v1785_v59 = vmul.f32 %v4507_v10, %v4520_v37  ;;  %v4601_v6 = vmul.f32 %v4524_v40, %v1985_v20  ;;  %v4604_v38 = vmul.f32 %v4524_v40, %v1986_v39 }
 0x137   : > { %v2054_v58 = vadd.f32 %v2022_v62, %v1950_v2  ;;  %v2121_v45 = vadd.f32 %v2089_v13, %v2053_v16 }
 0x139   : > { %v2122_v21 = vadd.f32 %v2090_v49, %v2054_v58  ;;  %v2189_v17 = vadd.f32 %v2157_v3, %v2121_v45 }
 0x13a   : > { %v4585_v7 = vld [vmem:[#allocation3 + $0x87] sm:$0xff] }
 0x13b   : > { %v4589_v9 = vld [vmem:[#allocation3 + $0x88] sm:$0xff]  ;;  %v1681_v36 = vmul.f32 %v4500_v22, %v4585_v7  ;;  %v3252_v51 = vpop.f32.mrb[8].mxu0  ;;  %v2190_v37 = vadd.f32 %v2158_v0, %v2122_v21  ;;  %v1615_v63 = vmul.f32 %v4496_v41, %v4585_v7 }
 0x13c   : > { %v1539_v25 = vld [vmem:[#allocation3 + $0x67] sm:$0xff]  ;;  %v4607_v46 = vld [vmem:[#allocation3 + $0x8f] sm:$0xff]  ;;  %v4611_v19 = vmul.f32 %v4515_v61, %v4589_v9  ;;  %v1337_v62 = vadd.f32 %v3252_v51, %v4479_v29  ;;  %v1328_v50 = vpop.f32.mrb[9].mxu0  ;;  %v4621_v26 = vmul.f32 %v4512_v27, %v4589_v9 }
 0x13d   : > { %v4596_v18 = vld [vmem:[#allocation3 + $0x68] sm:$0xff]  ;;  %v1679_v56 = vmul.f32 %v4500_v22, %v1539_v25  ;;  %v1613_v8 = vmul.f32 %v4496_v41, %v1539_v25  ;;  %v1329_v53 = vadd.f32 %v4479_v29, %v1328_v50  ;;  %v3253_v39 = vpop.f32.mrb[10].mxu0  ;;  %v1682_v16 = vmul.f32 %v4500_v22, %v4607_v46  ;;  %v4627_v13 = vld [vmem:[#allocation3 + $0x90] sm:$0xff] }
 0x13e   : > { %v1540_v34 = vld [vmem:[#allocation3 + $0x6f] sm:$0xff]  ;;  %v1919_v1 = vmul.f32 %v4515_v61, %v4596_v18  ;;  %v1433_v58 = vmax.f32 %v1337_v62, 0.0  ;;  %v1340_v49 = vadd.f32 %v3253_v39, %v4479_v29  ;;  %v1331_v45 = vpop.f32.mrb[11].mxu0  ;;  %v2221_v0 = vpack.c.bf16 %v2190_v37, %v2189_v17 }
 0x13f   : > { %v1680_v2 = vmul.f32 %v4500_v22, %v1540_v34  ;;  %v1711_v20 = vadd.f32 %v1679_v56, %v1643_v33  ;;  %v1748_v3 = vld [vmem:[#allocation3 + $0x70] sm:$0xff]  ;;  %v1853_v21 = vmul.f32 %v4512_v27, %v4596_v18  ;;  %v1431_v51 = vmax.f32 %v1329_v53, 0.0 }
 0x140   : > { %v1332_v50 = vadd.f32 %v4479_v29, %v1331_v45  ;;  %v1987_v33 = vld [vmem:[#allocation3 + $0x69] sm:$0xff]  ;;  %v1988_v56 = vld [vmem:[#allocation3 + $0x71] sm:$0xff]  ;;  %1509 = vst.msk [vmem:[#allocation3 + $0xc8] sm:$0xff] %vm1455_vm3, %v1433_v58  ;;  %v1434_v28 = vmax.f32 %v1340_v49, 0.0  ;;  %3276 = vmatprep.mubr.msk.bf16.mxu1 %vm1455_vm3, %v2221_v0  ;;  %v1614_v62 = vmul.f32 %v4496_v41, %v1540_v34  ;;  %v1645_v39 = vadd.f32 %v1613_v8, %v1577_v47 }
 0x141   : > { %v1712_v30 = vadd.f32 %v1680_v2, %v1644_v11  ;;  %v1815_v54 = vadd.f32 %v1783_v52, %v1711_v20  ;;  %v1922_v17 = vmul.f32 %v4515_v61, %v4627_v13  ;;  %1507 = vst.msk [vmem:[#allocation3 + $0xa8] sm:$0xff] %vm1455_vm3, %v1431_v51  ;;  %v1920_v11 = vmul.f32 %v4515_v61, %v1748_v3 }
 0x142   : > { %v1432_v37 = vmax.f32 %v1332_v50, 0.0  ;;  %1510 = vst.msk [vmem:[#allocation3 + $0xd0] sm:$0xff] %vm1455_vm3, %v1434_v28  ;;  %v2159_v2 = vmul.f32 %v4564_v32, %v1987_v33  ;;  %v2160_v20 = vmul.f32 %v4564_v32, %v1988_v56  ;;  %v1646_v58 = vadd.f32 %v1614_v62, %v1578_v60 }
 0x143   : > { %v1816_v53 = vadd.f32 %v1784_v4, %v1712_v30  ;;  %v1883_v52 = vadd.f32 %v4555_v24, %v1815_v54  ;;  %v1713_v49 = vadd.f32 %v1681_v36, %v1645_v39  ;;  %v1854_v45 = vmul.f32 %v4512_v27, %v1748_v3  ;;  %v4647_v30 = vld [vmem:[#allocation3 + $0x89] sm:$0xff]  ;;  %v4649_v4 = vld [vmem:[#allocation3 + $0x91] sm:$0xff] }
 0x144   : > { %1508 = vst.msk [vmem:[#allocation3 + $0xb0] sm:$0xff] %vm1455_vm3, %v1432_v37  ;;  %v2093_v54 = vmul.f32 %v4527_v43, %v1987_v33  ;;  %v1714_v28 = vadd.f32 %v1682_v16, %v1646_v58  ;;  %v1579_v0 = vmul.f32 %v4493_v23, %v1539_v25  ;;  %v1580_v60 = vmul.f32 %v4493_v23, %v1540_v34 }
 0x145   : > { %v1884_v47 = vadd.f32 %v4558_v35, %v1816_v53  ;;  %v1951_v8 = vadd.f32 %v1919_v1, %v1883_v52  ;;  %v1817_v24 = vadd.f32 %v1785_v59, %v1713_v49  ;;  %v2094_v35 = vmul.f32 %v4527_v43, %v1988_v56 }
 0x146   : > { %v1616_v1 = vmul.f32 %v4496_v41, %v4607_v46  ;;  %v1818_v50 = vadd.f32 %v4594_v15, %v1714_v28  ;;  %v2161_v39 = vmul.f32 %v4564_v32, %v4647_v30  ;;  %v2162_v59 = vmul.f32 %v4564_v32, %v4649_v4 }
 0x147   : > { %v1952_v36 = vadd.f32 %v1920_v11, %v1884_v47  ;;  %v2055_v51 = vadd.f32 %v4569_v57, %v1951_v8  ;;  %v1885_v62 = vadd.f32 %v1853_v21, %v1817_v24  ;;  %v1647_v16 = vadd.f32 %v1615_v63, %v1579_v0 }
 0x148   : > { %v1787_v57 = vmul.f32 %v4507_v10, %v4596_v18  ;;  %v1886_v37 = vadd.f32 %v1854_v45, %v1818_v50  ;;  %v4668_v11 = vld [vmem:[#allocation3 + $0xa7] sm:$0xff]  ;;  %v1648_v15 = vadd.f32 %v1616_v1, %v1580_v60  ;;  %v1788_v52 = vmul.f32 %v4507_v10, %v1748_v3 }
 0x149   : > { %v2056_v25 = vadd.f32 %v4572_v55, %v1952_v36  ;;  %v2123_v34 = vadd.f32 %v4581_v44, %v2055_v51  ;;  %v1953_v53 = vadd.f32 %v4611_v19, %v1885_v62  ;;  %v4670_v21 = vld [vmem:[#allocation3 + $0xa8] sm:$0xff]  ;;  %v1683_v55 = vmul.f32 %v4500_v22, %v4668_v11 }
 0x14a   : > { %v1856_v44 = vmul.f32 %v4512_v27, %v4627_v13  ;;  %v2027_v18 = vmul.f32 %v4524_v40, %v1987_v33  ;;  %v1954_v49 = vadd.f32 %v1922_v17, %v1886_v37  ;;  %v2028_v3 = vmul.f32 %v4524_v40, %v1988_v56  ;;  %v4708_v37 = vld [vmem:[#allocation3 + $0xcf] sm:$0xff] }
 0x14b   : > { %v2124_v58 = vadd.f32 %v4576_v48, %v2056_v25  ;;  %v2191_v63 = vadd.f32 %v2159_v2, %v2123_v34  ;;  %v2057_v19 = vadd.f32 %v4601_v6, %v1953_v53  ;;  %v4680_v47 = vld [vmem:[#allocation3 + $0xaf] sm:$0xff]  ;;  %v1715_v28 = vadd.f32 %v1683_v55, %v1647_v16 }
 0x14c   : > { %v4682_v8 = vld [vmem:[#allocation3 + $0xb0] sm:$0xff]  ;;  %v1684_v48 = vmul.f32 %v4500_v22, %v4680_v47  ;;  %v1923_v24 = vmul.f32 %v4515_v61, %v4670_v21  ;;  %v2058_v33 = vadd.f32 %v4604_v38, %v1954_v49  ;;  %v2095_v17 = vmul.f32 %v4527_v43, %v4647_v30 }
 0x14d   : > { %v2192_v45 = vadd.f32 %v2160_v20, %v2124_v58  ;;  %v2125_v2 = vadd.f32 %v2093_v54, %v2057_v19  ;;  %v1924_v6 = vmul.f32 %v4515_v61, %v4682_v8  ;;  %v1819_v56 = vadd.f32 %v1787_v57, %v1715_v28  ;;  %v4694_v20 = vld [vmem:[#allocation3 + $0xc7] sm:$0xff] }
 0x14e   : > { %v1716_v60 = vadd.f32 %v1684_v48, %v1648_v15  ;;  %v1581_v36 = vmul.f32 %v4493_v23, %v4585_v7  ;;  %v3256_v51 = vpop.f32.mrb[12].mxu0  ;;  %v2126_v1 = vadd.f32 %v2094_v35, %v2058_v33  ;;  %v1582_v38 = vmul.f32 %v4493_v23, %v4607_v46  ;;  %v4715_v28 = vld [vmem:[#allocation3 + $0xa9] sm:$0xff] }
 0x14f   : > { %v2222_v0 = vpack.c.bf16 %v2192_v45, %v2191_v63  ;;  %v2193_v50 = vadd.f32 %v2161_v39, %v2125_v2  ;;  %v1617_v54 = vmul.f32 %v4496_v41, %v4668_v11  ;;  %v1353_v62 = vadd.f32 %v3256_v51, %v4479_v29  ;;  %v1344_v25 = vpop.f32.mrb[13].mxu0  ;;  %v4728_v51 = vld [vmem:[#allocation3 + $0xc8] sm:$0xff] }
 0x150   : > { %v1820_v34 = vadd.f32 %v1788_v52, %v1716_v60  ;;  %v1887_v16 = vadd.f32 %v4621_v26, %v1819_v56  ;;  %v1618_v7 = vmul.f32 %v4496_v41, %v4680_v47  ;;  %v1345_v35 = vadd.f32 %v4479_v29, %v1344_v25  ;;  %v3257_v39 = vpop.f32.mrb[14].mxu0 }
 0x151   : > { %3277 = vmatmul.mubr.msk.bf16.vlgmr.msra.gmra.mrb[8].mxu1 %vm1455_vm3, %v2222_v0  ;;  %v2194_v57 = vadd.f32 %v2162_v59, %v2126_v1  ;;  %v1649_v46 = vadd.f32 %v1617_v54, %v1581_v36  ;;  %v1685_v53 = vmul.f32 %v4500_v22, %v4694_v20  ;;  %v1437_v15 = vmax.f32 %v1353_v62, 0.0  ;;  %v1347_v55 = vpop.f32.mrb[15].mxu0  ;;  %v4730_v1 = vld [vmem:[#allocation3 + $0xd0] sm:$0xff] }
 0x152   : > { %v1356_v58 = vadd.f32 %v3257_v39, %v4479_v29  ;;  %v1888_v52 = vadd.f32 %v1856_v44, %v1820_v34  ;;  %v1955_v63 = vadd.f32 %v1923_v24, %v1887_v16  ;;  %v1435_v26 = vmax.f32 %v1345_v35, 0.0  ;;  %v4721_v44 = vld [vmem:[#allocation3 + $0xb1] sm:$0xff] }
 0x153   : > { %v1348_v49 = vadd.f32 %v4479_v29, %v1347_v55  ;;  %v2223_v19 = vpack.c.bf16 %v2194_v57, %v2193_v50  ;;  %v1650_v45 = vadd.f32 %v1618_v7, %v1582_v38  ;;  %1513 = vst.msk [vmem:[#allocation3 + $0x108] sm:$0xff] %vm1455_vm3, %v1437_v15  ;;  %v1686_v2 = vmul.f32 %v4500_v22, %v4708_v37 }
 0x154   : > { %v1438_v59 = vmax.f32 %v1356_v58, 0.0  ;;  %v1956_v48 = vadd.f32 %v1924_v6, %v1888_v52  ;;  %v2059_v33 = vadd.f32 %v2027_v18, %v1955_v63  ;;  %1511 = vst.msk [vmem:[#allocation3 + $0xe8] sm:$0xff] %vm1455_vm3, %v1435_v26  ;;  %v2096_v24 = vmul.f32 %v4527_v43, %v4649_v4 }
 0x155   : > { %v1436_v0 = vmax.f32 %v1348_v49, 0.0  ;;  %3280 = vmatprep.mubr.msk.bf16.mxu1 %vm1455_vm3, %v2223_v19  ;;  %v1717_v60 = vadd.f32 %v1685_v53, %v1649_v46  ;;  %v1789_v6 = vmul.f32 %v4507_v10, %v4589_v9  ;;  %v1718_v36 = vadd.f32 %v1686_v2, %v1650_v45  ;;  %v4761_v49 = vld [vmem:[#allocation3 + $0xc9] sm:$0xff]  ;;  %v4763_v19 = vld [vmem:[#allocation3 + $0xd1] sm:$0xff] }
 0x156   : > { %1514 = vst.msk [vmem:[#allocation3 + $0x110] sm:$0xff] %vm1455_vm3, %v1438_v59  ;;  %v2060_v18 = vadd.f32 %v2028_v3, %v1956_v48  ;;  %v2127_v56 = vadd.f32 %v2095_v17, %v2059_v33  ;;  %v1790_v50 = vmul.f32 %v4507_v10, %v4627_v13  ;;  %v2163_v38 = vmul.f32 %v4564_v32, %v4715_v28 }
 0x157   : > { %1512 = vst.msk [vmem:[#allocation3 + $0xf0] sm:$0xff] %vm1455_vm3, %v1436_v0  ;;  %v1821_v54 = vadd.f32 %v1789_v6, %v1717_v60  ;;  %v1857_v9 = vmul.f32 %v4512_v27, %v4670_v21  ;;  %v2164_v3 = vmul.f32 %v4564_v32, %v4721_v44  ;;  %v1858_v25 = vmul.f32 %v4512_v27, %v4682_v8 }
 0x158   : > { %v2128_v62 = vadd.f32 %v2096_v24, %v2060_v18  ;;  %v1822_v17 = vadd.f32 %v1790_v50, %v1718_v36  ;;  %v1925_v13 = vmul.f32 %v4515_v61, %v4728_v51  ;;  %v1926_v16 = vmul.f32 %v4515_v61, %v4730_v1 }
 0x159   : > { %v1889_v34 = vadd.f32 %v1857_v9, %v1821_v54  ;;  %v2195_v7 = vadd.f32 %v2163_v38, %v2127_v56  ;;  %v2029_v57 = vmul.f32 %v4524_v40, %v4647_v30  ;;  %v1583_v53 = vmul.f32 %v4493_v23, %v4668_v11 }
 0x15a   : > { %v2196_v35 = vadd.f32 %v2164_v3, %v2128_v62  ;;  %v1890_v39 = vadd.f32 %v1858_v25, %v1822_v17  ;;  %v1584_v15 = vmul.f32 %v4493_v23, %v4680_v47  ;;  %v1619_v58 = vmul.f32 %v4496_v41, %v4694_v20 }
 0x15b   : > { %v1957_v46 = vadd.f32 %v1925_v13, %v1889_v34  ;;  %v2030_v63 = vmul.f32 %v4524_v40, %v4649_v4  ;;  %v4757_v26 = vld [vmem:[#allocation3 + $0xe7] sm:$0xff]  ;;  %v1620_v30 = vmul.f32 %v4496_v41, %v4708_v37  ;;  %v2097_v47 = vmul.f32 %v4527_v43, %v4715_v28 }
 0x15c   : > { %v2224_v55 = vpack.c.bf16 %v2196_v35, %v2195_v7  ;;  %v1958_v52 = vadd.f32 %v1926_v16, %v1890_v39  ;;  %v1651_v45 = vadd.f32 %v1619_v58, %v1583_v53  ;;  %v1687_v59 = vmul.f32 %v4500_v22, %v4757_v26  ;;  %v4778_v18 = vld [vmem:[#allocation3 + $0xe8] sm:$0xff] }
 0x15d   : > { %v2061_v11 = vadd.f32 %v2029_v57, %v1957_v46  ;;  %v2098_v48 = vmul.f32 %v4527_v43, %v4721_v44  ;;  %v1791_v2 = vmul.f32 %v4507_v10, %v4670_v21  ;;  %v1652_v24 = vadd.f32 %v1620_v30, %v1584_v15  ;;  %v4796_v35 = vld [vmem:[#allocation3 + $0x107] sm:$0xff] }
 0x15e   : > { %3281 = vmatmul.mubr.msk.bf16.gmra.mrb[12].mxu1 %vm1455_vm3, %v2224_v55  ;;  %v2062_v4 = vadd.f32 %v2030_v63, %v1958_v52  ;;  %v4772_v33 = vld [vmem:[#allocation3 + $0xef] sm:$0xff]  ;;  %v1719_v6 = vadd.f32 %v1687_v59, %v1651_v45  ;;  %v2165_v36 = vmul.f32 %v4564_v32, %v4761_v49  ;;  %v2166_v50 = vmul.f32 %v4564_v32, %v4763_v19 }
 0x15f   : > { %v2129_v0 = vadd.f32 %v2097_v47, %v2061_v11  ;;  %v1688_v60 = vmul.f32 %v4500_v22, %v4772_v33  ;;  %v4784_v38 = vld [vmem:[#allocation3 + $0xf0] sm:$0xff]  ;;  %v1792_v21 = vmul.f32 %v4507_v10, %v4682_v8  ;;  %v1859_v62 = vmul.f32 %v4512_v27, %v4728_v51 }
 0x160   : > { %v2130_v56 = vadd.f32 %v2098_v48, %v2062_v4  ;;  %v1823_v9 = vadd.f32 %v1791_v2, %v1719_v6  ;;  %v1860_v25 = vmul.f32 %v4512_v27, %v4730_v1  ;;  %v1927_v34 = vmul.f32 %v4515_v61, %v4778_v18  ;;  %v4798_v8 = vld [vmem:[#allocation3 + $0x10f] sm:$0xff] }
 0x161   : > { %v1720_v54 = vadd.f32 %v1688_v60, %v1652_v24  ;;  %v2197_v3 = vadd.f32 %v2165_v36, %v2129_v0  ;;  %v1928_v7 = vmul.f32 %v4515_v61, %v4784_v38  ;;  %v1585_v39 = vmul.f32 %v4493_v23, %v4694_v20  ;;  %v4813_v20 = vld [vmem:[#allocation3 + $0xe9] sm:$0xff]  ;;  %v4815_v30 = vld [vmem:[#allocation3 + $0xf1] sm:$0xff] }
 0x162   : > { %v2198_v17 = vadd.f32 %v2166_v50, %v2130_v56  ;;  %v1891_v16 = vadd.f32 %v1859_v62, %v1823_v9  ;;  %v1586_v46 = vmul.f32 %v4493_v23, %v4708_v37  ;;  %v1621_v53 = vmul.f32 %v4496_v41, %v4757_v26  ;;  %v4825_v0 = vld [vmem:[#allocation3 + $0x108] sm:$0xff]  ;;  %v4827_v24 = vld [vmem:[#allocation3 + $0x110] sm:$0xff] }
 0x163   : > { %v1824_v13 = vadd.f32 %v1792_v21, %v1720_v54  ;;  %v1622_v15 = vmul.f32 %v4496_v41, %v4772_v33  ;;  %v2031_v52 = vmul.f32 %v4524_v40, %v4715_v28  ;;  %v2032_v63 = vmul.f32 %v4524_v40, %v4721_v44 }
 0x164   : > { %v2225_v57 = vpack.c.bf16 %v2198_v17, %v2197_v3  ;;  %v1959_v55 = vadd.f32 %v1927_v34, %v1891_v16  ;;  %v1653_v37 = vadd.f32 %v1621_v53, %v1585_v39  ;;  %v1689_v47 = vmul.f32 %v4500_v22, %v4796_v35 }
 0x165   : > { %v1892_v58 = vadd.f32 %v1860_v25, %v1824_v13  ;;  %v1654_v11 = vadd.f32 %v1622_v15, %v1586_v46  ;;  %v1690_v45 = vmul.f32 %v4500_v22, %v4798_v8  ;;  %v2099_v28 = vmul.f32 %v4527_v43, %v4761_v49 }
 0x166   : > { %3284 = vmatprep.mubr.msk.bf16.mxu1 %vm1455_vm3, %v2225_v57  ;;  %v2063_v4 = vadd.f32 %v2031_v52, %v1959_v55  ;;  %v2100_v44 = vmul.f32 %v4527_v43, %v4763_v19  ;;  %v1721_v48 = vadd.f32 %v1689_v47, %v1653_v37  ;;  %v1793_v60 = vmul.f32 %v4507_v10, %v4728_v51  ;;  %v1997_v55 = vld [vmem:[#allocation3 + $0x109] sm:$0xff] }
 0x167   : > { %v1960_v59 = vadd.f32 %v1928_v7, %v1892_v58  ;;  %v1722_v2 = vadd.f32 %v1690_v45, %v1654_v11  ;;  %v1794_v6 = vmul.f32 %v4507_v10, %v4730_v1  ;;  %v2167_v50 = vmul.f32 %v4564_v32, %v4813_v20  ;;  %v1998_v45 = vld [vmem:[#allocation3 + $0x111] sm:$0xff] }
 0x168   : > { %v2131_v36 = vadd.f32 %v2099_v28, %v2063_v4  ;;  %v2168_v54 = vmul.f32 %v4564_v32, %v4815_v30  ;;  %v1825_v21 = vadd.f32 %v1793_v60, %v1721_v48  ;;  %v1861_v62 = vmul.f32 %v4512_v27, %v4778_v18 }
 0x169   : > { %v2064_v56 = vadd.f32 %v2032_v63, %v1960_v59  ;;  %v1826_v9 = vadd.f32 %v1794_v6, %v1722_v2  ;;  %v1862_v3 = vmul.f32 %v4512_v27, %v4784_v38  ;;  %v1929_v1 = vmul.f32 %v4515_v61, %v4825_v0 }
 0x16a   : > { %v3268_v51 = vpop.f32.mrb[0].mxu1  ;;  %v1930_v25 = vmul.f32 %v4515_v61, %v4827_v24  ;;  %v2033_v34 = vmul.f32 %v4524_v40, %v4761_v49  ;;  %v1893_v7 = vadd.f32 %v1861_v62, %v1825_v21  ;;  %v2034_v57 = vmul.f32 %v4524_v40, %v4763_v19 }
 0x16b   : > { %v2132_v17 = vadd.f32 %v2100_v44, %v2064_v56  ;;  %v1401_v13 = vadd.f32 %v3268_v51, %v4479_v29  ;;  %v1392_v16 = vpop.f32.mrb[1].mxu1  ;;  %v1894_v39 = vadd.f32 %v1862_v3, %v1826_v9  ;;  %v2199_v15 = vadd.f32 %v2167_v50, %v2131_v36 }
 0x16c   : > { %v1393_v46 = vadd.f32 %v4479_v29, %v1392_v16  ;;  %v3269_v53 = vpop.f32.mrb[2].mxu1  ;;  %v2101_v52 = vmul.f32 %v4527_v43, %v4813_v20  ;;  %v1961_v11 = vadd.f32 %v1929_v1, %v1893_v7  ;;  %v2102_v28 = vmul.f32 %v4527_v43, %v4815_v30  ;;  %v1567_v7 = vld [vmem:[#allocation3 + $0x227] sm:$0xff] }
 0x16d   : > { %v2200_v58 = vadd.f32 %v2168_v54, %v2132_v17  ;;  %v1449_v63 = vmax.f32 %v1401_v13, 0.0  ;;  %v1404_v49 = vadd.f32 %v3269_v53, %v4479_v29  ;;  %v1395_v37 = vpop.f32.mrb[3].mxu1  ;;  %v1962_v47 = vadd.f32 %v1930_v25, %v1894_v39  ;;  %v1568_v39 = vld [vmem:[#allocation3 + $0x22f] sm:$0xff] }
 0x16e   : > { %v1447_v59 = vmax.f32 %v1393_v46, 0.0  ;;  %v1396_v4 = vadd.f32 %v4479_v29, %v1395_v37  ;;  %v2065_v48 = vadd.f32 %v2033_v34, %v1961_v11  ;;  %v2169_v60 = vmul.f32 %v4564_v32, %v1997_v55 }
 0x16f   : > { %v2226_v19 = vpack.c.bf16 %v2200_v58, %v2199_v15  ;;  %1525 = vst.msk [vmem:[#allocation3 + $0x1c8] sm:$0xff] %vm1455_vm3, %v1449_v63  ;;  %v1450_v44 = vmax.f32 %v1404_v49, 0.0  ;;  %v2066_v2 = vadd.f32 %v2034_v57, %v1962_v47  ;;  %v2170_v56 = vmul.f32 %v4564_v32, %v1998_v45 }
 0x170   : > { %1523 = vst.msk [vmem:[#allocation3 + $0x1a8] sm:$0xff] %vm1455_vm3, %v1447_v59  ;;  %v1448_v6 = vmax.f32 %v1396_v4, 0.0  ;;  %v1587_v36 = vmul.f32 %v4493_v23, %v4757_v26  ;;  %v1623_v50 = vmul.f32 %v4496_v41, %v4796_v35  ;;  %v2133_v54 = vadd.f32 %v2101_v52, %v2065_v48 }
 0x171   : > { %3285 = vmatmul.mubr.msk.bf16.gmra.mrb[16].mxu1 %vm1455_vm3, %v2226_v19  ;;  %1526 = vst.msk [vmem:[#allocation3 + $0x1d0] sm:$0xff] %vm1455_vm3, %v1450_v44  ;;  %v2134_v21 = vadd.f32 %v2102_v28, %v2066_v2  ;;  %v1588_v9 = vmul.f32 %v4493_v23, %v4772_v33  ;;  %v1624_v62 = vmul.f32 %v4496_v41, %v4798_v8 }
 0x172   : > { %1524 = vst.msk [vmem:[#allocation3 + $0x1b0] sm:$0xff] %vm1455_vm3, %v1448_v6  ;;  %v2201_v3 = vadd.f32 %v2169_v60, %v2133_v54  ;;  %v4872_v17 = vadd.f32 %v1623_v50, %v1587_v36  ;;  %v4878_v25 = vmul.f32 %v4507_v10, %v4778_v18  ;;  %v4882_v34 = vmul.f32 %v4507_v10, %v4784_v38 }
 0x173   : > { %v2202_v51 = vadd.f32 %v2170_v56, %v2134_v21  ;;  %v4874_v1 = vadd.f32 %v1624_v62, %v1588_v9  ;;  %v4886_v33 = vmul.f32 %v4512_v27, %v4825_v0  ;;  %v4890_v13 = vmul.f32 %v4512_v27, %v4827_v24 }
 0x174   : > { %v4894_v16 = vmul.f32 %v4524_v40, %v4813_v20  ;;  %v4898_v18 = vmul.f32 %v4524_v40, %v4815_v30  ;;  %v4902_v38 = vmul.f32 %v4527_v43, %v1997_v55  ;;  %v4905_v57 = vmul.f32 %v4527_v43, %v1998_v45 }
 0x175   : > { %v2227_v26 = vpack.c.bf16 %v2202_v51, %v2201_v3  ;;  %v4909_v46 = vmul.f32 %v4493_v23, %v4796_v35  ;;  %v4913_v20 = vmul.f32 %v4493_v23, %v4798_v8  ;;  %v4921_v58 = vmul.f32 %v4507_v10, %v4825_v0 }
 0x176   : > { %v4915_v30 = vld [vmem:[#allocation3 + $0x1c7] sm:$0xff]  ;;  %v4925_v52 = vmul.f32 %v4507_v10, %v4827_v24  ;;  %v4928_v35 = vmul.f32 %v4524_v40, %v1997_v55  ;;  %v4931_v63 = vmul.f32 %v4524_v40, %v1998_v45  ;;  %v4939_v0 = vmul.f32 %v4500_v22, %v1567_v7 }
 0x177   : > { %3288 = vmatprep.mubr.msk.bf16.mxu1 %vm1455_vm3, %v2227_v26  ;;  %v4917_v53 = vld [vmem:[#allocation3 + $0x1c8] sm:$0xff]  ;;  %v4936_v37 = vmul.f32 %v4500_v22, %v4915_v30  ;;  %v4942_v11 = vmul.f32 %v4500_v22, %v1568_v39  ;;  %v1635_v4 = vmul.f32 %v4496_v41, %v4915_v30 }
 0x178   : > { %v3260_v15 = vpop.f32.mrb[16].mxu0  ;;  %5772 = vst [vmem:[#allocation12_spill] sm:$0xff] %v4939_v0  ;;  %v1559_v47 = vld [vmem:[#allocation3 + $0x1a7] sm:$0xff]  ;;  %v4947_v45 = vmul.f32 %v4515_v61, %v4917_v53  ;;  %v4953_v19 = vmul.f32 %v4512_v27, %v4917_v53  ;;  %v1562_v56 = vld [vmem:[#allocation3 + $0x1cf] sm:$0xff] }
 0x179   : > { %v1369_v8 = vadd.f32 %v3260_v15, %v4479_v29  ;;  %v1360_v49 = vpop.f32.mrb[17].mxu0  ;;  %5771 = vst [vmem:[#allocation25_spill] sm:$0xff] %v4936_v37  ;;  %5773 = vst [vmem:[#allocation16_spill] sm:$0xff] %v4942_v11  ;;  %v1767_v59 = vld [vmem:[#allocation3 + $0x1a8] sm:$0xff]  ;;  %v4957_v60 = vmul.f32 %v4500_v22, %v1559_v47  ;;  %v4964_v21 = vmul.f32 %v4496_v41, %v1559_v47  ;;  %v1770_v9 = vld [vmem:[#allocation3 + $0x1d0] sm:$0xff] }
 0x17a   : > { %v1361_v24 = vadd.f32 %v4479_v29, %v1360_v49  ;;  %v3261_v55 = vpop.f32.mrb[18].mxu0  ;;  %5774 = vst [vmem:[#allocation17_spill] sm:$0xff] %v4947_v45  ;;  %5775 = vst [vmem:[#allocation13_spill] sm:$0xff] %v4953_v19  ;;  %v1560_v2 = vld [vmem:[#allocation3 + $0x1af] sm:$0xff]  ;;  %v4960_v6 = vmul.f32 %v4515_v61, %v1767_v59  ;;  %v4967_v62 = vmul.f32 %v4512_v27, %v1767_v59 }
 0x17b   : > { %v1441_v28 = vmax.f32 %v1369_v8, 0.0  ;;  %v1372_v44 = vadd.f32 %v3261_v55, %v4479_v29  ;;  %v1363_v48 = vpop.f32.mrb[19].mxu0  ;;  %v2009_v36 = vld [vmem:[#allocation3 + $0x1c9] sm:$0xff]  ;;  %5777 = vst [vmem:[#allocation15_spill] sm:$0xff] %v4964_v21  ;;  %v4971_v26 = vmul.f32 %v4500_v22, %v1562_v56  ;;  %v4974_v7 = vmul.f32 %v4515_v61, %v1770_v9  ;;  %v2008_v49 = vld [vmem:[#allocation3 + $0x1b1] sm:$0xff] }
 0x17c   : > { %5776 = vst [vmem:[#allocation14_spill] sm:$0xff] %v4960_v6  ;;  %v1439_v50 = vmax.f32 %v1361_v24, 0.0  ;;  %v1364_v54 = vadd.f32 %v4479_v29, %v1363_v48  ;;  %5778 = vst [vmem:[#allocation21_spill] sm:$0xff] %v4967_v62  ;;  %v1768_v51 = vld [vmem:[#allocation3 + $0x1b0] sm:$0xff]  ;;  %v1599_v39 = vmul.f32 %v4493_v23, %v1559_v47  ;;  %v4979_v55 = vmul.f32 %v4564_v32, %v2009_v36 }
 0x17d   : > { %1517 = vst.msk [vmem:[#allocation3 + $0x148] sm:$0xff] %vm1455_vm3, %v1441_v28  ;;  %v1442_v3 = vmax.f32 %v1372_v44, 0.0  ;;  %5779 = vst [vmem:[#allocation22_spill] sm:$0xff] %v4971_v26  ;;  %v2007_v8 = vld [vmem:[#allocation3 + $0x1a9] sm:$0xff]  ;;  %v2010_v24 = vld [vmem:[#allocation3 + $0x1d1] sm:$0xff]  ;;  %v1600_v28 = vmul.f32 %v4493_v23, %v1560_v2  ;;  %v1636_v44 = vmul.f32 %v4496_v41, %v1562_v56  ;;  %v4985_v48 = vmul.f32 %v4500_v22, %v1560_v2 }
 0x17e   : > { %5780 = vst [vmem:[#allocation18_spill] sm:$0xff] %v4974_v7  ;;  %1515 = vst.msk [vmem:[#allocation3 + $0x128] sm:$0xff] %vm1455_vm3, %v1439_v50  ;;  %v1440_v15 = vmax.f32 %v1364_v54, 0.0  ;;  %v4988_v47 = vmul.f32 %v4515_v61, %v1768_v51  ;;  %v4991_v50 = vmul.f32 %v4564_v32, %v2007_v8  ;;  %v4994_v54 = vmul.f32 %v4564_v32, %v2008_v49 }
 0x17f   : > { %5781 = vst [vmem:[#allocation19_spill] sm:$0xff] %v4979_v55  ;;  %1518 = vst.msk [vmem:[#allocation3 + $0x150] sm:$0xff] %vm1455_vm3, %v1442_v3  ;;  %v4998_v31 = vmul.f32 %v4496_v41, %v1560_v2  ;;  %v5001_v42 = vmul.f32 %v4512_v27, %v1768_v51  ;;  %v5004_v3 = vmul.f32 %v4527_v43, %v2007_v8 }
 0x180   : > { %5782 = vst [vmem:[#allocation23_spill] sm:$0xff] %v4985_v48  ;;  %5783 = vst [vmem:[#allocation24_spill] sm:$0xff] %v4988_v47  ;;  %v5007_v14 = vmul.f32 %v4527_v43, %v2008_v49  ;;  %v5010_v5 = vmul.f32 %v4564_v32, %v2010_v24  ;;  %v5012_v12 = vadd.f32 %v1635_v4, %v1599_v39 }
 0x181   : > { %5784 = vst [vmem:[#allocation26_spill] sm:$0xff] %v4991_v50  ;;  %5785 = vst [vmem:[#allocation27_spill] sm:$0xff] %v4994_v54  ;;  %v5015_v11 = vmul.f32 %v4507_v10, %v1767_v59  ;;  %v5018_v2 = vmul.f32 %v4507_v10, %v1768_v51  ;;  %v5023_v0 = vmul.f32 %v4512_v27, %v1770_v9 }
 0x182   : > { %1516 = vst.msk [vmem:[#allocation3 + $0x130] sm:$0xff] %vm1455_vm3, %v1440_v15  ;;  %5786 = vst [vmem:[#allocation28_spill] sm:$0xff] %v4998_v31  ;;  %v5020_v15 = vadd.f32 %v1636_v44, %v1600_v28  ;;  %v5026_v55 = vmul.f32 %v4524_v40, %v2007_v8  ;;  %v5032_v4 = vmul.f32 %v4527_v43, %v2009_v36 }
 0x183   : > { %5787 = vst [vmem:[#allocation29_spill] sm:$0xff] %v5001_v42  ;;  %5788 = vst [vmem:[#allocation30_spill] sm:$0xff] %v5004_v3  ;;  %v5035_v59 = vmul.f32 %v4527_v43, %v2010_v24  ;;  %v5039_v51 = vmul.f32 %v4493_v23, %v4915_v30  ;;  %v5042_v39 = vmul.f32 %v4493_v23, %v1562_v56 }
 0x184   : > { %5789 = vst [vmem:[#allocation31_spill] sm:$0xff] %v5007_v14  ;;  %5790 = vst [vmem:[#allocation32_spill] sm:$0xff] %v5010_v5  ;;  %v5029_v14 = vmul.f32 %v4524_v40, %v2008_v49  ;;  %v3272_v5 = vpop.f32.mrb[4].mxu1  ;;  %v5045_v44 = vld [vmem:[#allocation3 + $0x147] sm:$0xff]  ;;  %v5051_v3 = vmul.f32 %v4507_v10, %v4917_v53  ;;  %v5057_v30 = vmul.f32 %v4524_v40, %v2009_v36 }
 0x185   : > { %5791 = vst [vmem:[#allocation33_spill] sm:$0xff] %v5023_v0  ;;  %5792 = vst [vmem:[#allocation34_spill] sm:$0xff] %v5026_v55  ;;  %v1417_v8 = vadd.f32 %v3272_v5, %v4479_v29  ;;  %v1408_v28 = vpop.f32.mrb[5].mxu1  ;;  %v5047_v49 = vld [vmem:[#allocation3 + $0x148] sm:$0xff]  ;;  %v1693_v7 = vmul.f32 %v4500_v22, %v5045_v44  ;;  %v5067_v53 = vmul.f32 %v4524_v40, %v2010_v24 }
 0x186   : > { %5793 = vst [vmem:[#allocation35_spill] sm:$0xff] %v5029_v14  ;;  %5794 = vst [vmem:[#allocation36_spill] sm:$0xff] %v5032_v4  ;;  %v1409_v56 = vadd.f32 %v4479_v29, %v1408_v28  ;;  %v3273_v4 = vpop.f32.mrb[6].mxu1  ;;  %v1551_v14 = vld [vmem:[#allocation3 + $0x127] sm:$0xff]  ;;  %v5064_v55 = vmul.f32 %v4515_v61, %v5047_v49  ;;  %v5071_v28 = vld [vmem:[#allocation3 + $0x14f] sm:$0xff]  ;;  %v1627_v45 = vmul.f32 %v4496_v41, %v5045_v44 }
 0x187   : > { %5795 = vst [vmem:[#allocation37_spill] sm:$0xff] %v5035_v59  ;;  %5796 = vst [vmem:[#allocation38_spill] sm:$0xff] %v5051_v3  ;;  %v5054_v59 = vmul.f32 %v4507_v10, %v1770_v9  ;;  %v1759_v5 = vld [vmem:[#allocation3 + $0x128] sm:$0xff]  ;;  %v1453_v9 = vmax.f32 %v1417_v8, 0.0  ;;  %v1411_v36 = vpop.f32.mrb[7].mxu1  ;;  %v1625_v8 = vmul.f32 %v4496_v41, %v1551_v14  ;;  %v5083_v26 = vld [vmem:[#allocation3 + $0x150] sm:$0xff] }
 0x188   : > { %5798 = vst [vmem:[#allocation40_spill] sm:$0xff] %v5057_v30  ;;  %5799 = vst [vmem:[#allocation41_spill] sm:$0xff] %v5067_v53  ;;  %v1691_v30 = vmul.f32 %v4500_v22, %v1551_v14  ;;  %v1451_v42 = vmax.f32 %v1409_v56, 0.0  ;;  %v1412_v3 = vadd.f32 %v4479_v29, %v1411_v36  ;;  %v1931_v62 = vmul.f32 %v4515_v61, %v1759_v5  ;;  %v5094_v47 = vld [vmem:[#allocation3 + $0x149] sm:$0xff] }
 0x189   : > { %5797 = vst [vmem:[#allocation39_spill] sm:$0xff] %v5054_v59  ;;  %v1420_v59 = vadd.f32 %v3273_v4, %v4479_v29  ;;  %v1552_v54 = vld [vmem:[#allocation3 + $0x12f] sm:$0xff]  ;;  %1529 = vst.msk [vmem:[#allocation3 + $0x208] sm:$0xff] %vm1455_vm3, %v1453_v9  ;;  %v1694_v56 = vmul.f32 %v4500_v22, %v5071_v28  ;;  %v1657_v31 = vadd.f32 %v1625_v8, %v4909_v46 }
 0x18a   : > { %v1760_v0 = vld [vmem:[#allocation3 + $0x130] sm:$0xff]  ;;  %v1692_v53 = vmul.f32 %v4500_v22, %v1552_v54  ;;  %v1723_v19 = vadd.f32 %v1691_v30, %v4872_v17  ;;  %1527 = vst.msk [vmem:[#allocation3 + $0x1e8] sm:$0xff] %vm1455_vm3, %v1451_v42  ;;  %v1452_v29 = vmax.f32 %v1412_v3, 0.0  ;;  %v1626_v9 = vmul.f32 %v4496_v41, %v1552_v54 }
 0x18b   : > { %v1999_v24 = vld [vmem:[#allocation3 + $0x129] sm:$0xff]  ;;  %v1454_v4 = vmax.f32 %v1420_v59, 0.0  ;;  %v2000_v50 = vld [vmem:[#allocation3 + $0x131] sm:$0xff]  ;;  %v1932_v36 = vmul.f32 %v4515_v61, %v1760_v0  ;;  %v1865_v3 = vmul.f32 %v4512_v27, %v1759_v5  ;;  %v1866_v21 = vmul.f32 %v4512_v27, %v1760_v0 }
 0x18c   : > { %v2171_v37 = vmul.f32 %v4564_v32, %v1999_v24  ;;  %v1724_v59 = vadd.f32 %v1692_v53, %v4874_v1  ;;  %v1827_v17 = vadd.f32 %v4878_v25, %v1723_v19  ;;  %v2172_v30 = vmul.f32 %v4564_v32, %v2000_v50  ;;  %1528 = vst.msk [vmem:[#allocation3 + $0x1f0] sm:$0xff] %vm1455_vm3, %v1452_v29  ;;  %v5104_v53 = vld [vmem:[#allocation3 + $0x151] sm:$0xff] }
 0x18d   : > { %1530 = vst.msk [vmem:[#allocation3 + $0x210] sm:$0xff] %vm1455_vm3, %v1454_v4  ;;  %v1658_v42 = vadd.f32 %v1626_v9, %v4913_v20  ;;  %v1934_v4 = vmul.f32 %v4515_v61, %v5083_v26  ;;  %v1725_v19 = vadd.f32 %v1693_v7, %v1657_v31  ;;  %v2105_v46 = vmul.f32 %v4527_v43, %v1999_v24 }
 0x18e   : > { %v1828_v1 = vadd.f32 %v4882_v34, %v1724_v59  ;;  %v1895_v25 = vadd.f32 %v4886_v33, %v1827_v17  ;;  %v2106_v29 = vmul.f32 %v4527_v43, %v2000_v50  ;;  %v2173_v20 = vmul.f32 %v4564_v32, %v5094_v47 }
 0x18f   : > { %v1726_v8 = vadd.f32 %v1694_v56, %v1658_v42  ;;  %v1591_v9 = vmul.f32 %v4493_v23, %v1551_v14  ;;  %v1829_v34 = vadd.f32 %v4921_v58, %v1725_v19  ;;  %v1592_v33 = vmul.f32 %v4493_v23, %v1552_v54 }
 0x190   : > { %v1896_v6 = vadd.f32 %v4890_v13, %v1828_v1  ;;  %v1963_v48 = vadd.f32 %v1931_v62, %v1895_v25  ;;  %v2174_v7 = vmul.f32 %v4564_v32, %v5104_v53  ;;  %v1628_v56 = vmul.f32 %v4496_v41, %v5071_v28 }
 0x191   : > { %v1830_v31 = vadd.f32 %v4925_v52, %v1726_v8  ;;  %v5119_v59 = vadd.f32 %v1627_v45, %v1591_v9  ;;  %v1897_v42 = vadd.f32 %v1865_v3, %v1829_v34  ;;  %v5123_v13 = vmul.f32 %v4507_v10, %v1759_v5 }
 0x192   : > { %v1964_v17 = vadd.f32 %v1932_v36, %v1896_v6  ;;  %v2067_v14 = vadd.f32 %v4894_v16, %v1963_v48  ;;  %v5125_v62 = vadd.f32 %v1628_v56, %v1592_v33  ;;  %v5128_v52 = vmul.f32 %v4507_v10, %v1760_v0 }
 0x193   : > { %v1898_v58 = vadd.f32 %v1866_v21, %v1830_v31  ;;  %v5132_v32 = vmul.f32 %v4512_v27, %v5047_v49  ;;  %v1965_v16 = vadd.f32 %v5064_v55, %v1897_v42  ;;  %v5139_v48 = vmul.f32 %v4512_v27, %v5083_v26  ;;  %v3264_v21 = vpop.f32.mrb[20].mxu0  ;;  %v5169_v42 = vld [vmem:[#allocation3 + $0x1e7] sm:$0xff] }
 0x194   : > { %v2068_v45 = vadd.f32 %v4898_v18, %v1964_v17  ;;  %v2135_v6 = vadd.f32 %v4902_v38, %v2067_v14  ;;  %v5142_v5 = vmul.f32 %v4524_v40, %v1999_v24  ;;  %v5145_v0 = vmul.f32 %v4524_v40, %v2000_v50  ;;  %v3361_v18 = vld [vmem:[%s5669_s3] ss:$0 sm:$0xff]  ;;  %v1376_v55 = vpop.f32.mrb[21].mxu0  ;;  %5800 = vst [vmem:[#allocation42_spill] sm:$0xff] %v5169_v42 }
 0x195   : > { %v1966_v54 = vadd.f32 %v1934_v4, %v1898_v58  ;;  %v5149_v36 = vmul.f32 %v4527_v43, %v5094_v47  ;;  %v1385_v38 = vadd.f32 %v3361_v18, %v3264_v21  ;;  %v2069_v4 = vadd.f32 %v4928_v35, %v1965_v16  ;;  %v3265_v1 = vpop.f32.mrb[22].mxu0 }
 0x196   : > { %v2136_v3 = vadd.f32 %v4905_v57, %v2068_v45  ;;  %v5158_v24 = vmul.f32 %v4527_v43, %v5104_v53  ;;  %v1377_v50 = vadd.f32 %v3361_v18, %v1376_v55  ;;  %v2203_v25 = vadd.f32 %v2171_v37, %v2135_v6  ;;  %v1379_v33 = vpop.f32.mrb[23].mxu0  ;;  %v5171_v37 = vld [vmem:[#allocation3 + $0x1ef] sm:$0xff]  ;;  %v5221_v55 = vld [vmem:[%s5670_s4 + $0x8] ss:$0 sm:$0xff] }
 0x197   : > { %v2070_v19 = vadd.f32 %v4931_v63, %v1966_v54  ;;  %v5163_v8 = vmul.f32 %v4493_v23, %v5045_v44  ;;  %v1445_v9 = vmax.f32 %v1385_v38, 0.0  ;;  %v1388_v34 = vadd.f32 %v3361_v18, %v3265_v1  ;;  %5801 = vst [vmem:[#allocation43_spill] sm:$0xff] %v5171_v37  ;;  %v5173_v63 = vld [vmem:[#allocation3 + $0x1e8] sm:$0xff]  ;;  %v5209_v54 = vld [vmem:[#allocation3 + $0x1f1] sm:$0xff] }
 0x198   : > { %v2204_v31 = vadd.f32 %v2172_v30, %v2136_v3  ;;  %v2137_v57 = vadd.f32 %v2105_v46, %v2069_v4  ;;  %v1443_v56 = vmax.f32 %v1377_v50, 0.0  ;;  %v1380_v35 = vadd.f32 %v3361_v18, %v1379_v33  ;;  %5802 = vst [vmem:[#allocation44_spill] sm:$0xff] %v5173_v63  ;;  %v5180_v46 = vld [vmem:[#allocation3 + $0x1f0] sm:$0xff]  ;;  %5806 = vst [vmem:[#allocation48_spill] sm:$0xff] %v5209_v54 }
 0x199   : > { %v2138_v17 = vadd.f32 %v2106_v29, %v2070_v19  ;;  %v5167_v14 = vmul.f32 %v4493_v23, %v5071_v28  ;;  %1521 = vst.msk [vmem:[#allocation3 + $0x188] sm:$0xff] %vm1455_vm3, %v1445_v9  ;;  %v1446_v44 = vmax.f32 %v1388_v34, 0.0  ;;  %v5178_v30 = vmul.f32 %v4507_v10, %v5047_v49  ;;  %5803 = vst [vmem:[#allocation45_spill] sm:$0xff] %v5180_v46  ;;  %v5182_v29 = vld [vmem:[#allocation3 + $0x1e9] sm:$0xff] }
 0x19a   : > { %v2228_v58 = vpack.c.bf16 %v2204_v31, %v2203_v25  ;;  %v2205_v45 = vadd.f32 %v2173_v20, %v2137_v57  ;;  %5804 = vst [vmem:[#allocation46_spill] sm:$0xff] %v5182_v29  ;;  %1519 = vst.msk [vmem:[#allocation3 + $0x168] sm:$0xff] %vm1455_vm3, %v1443_v56  ;;  %v1444_v28 = vmax.f32 %v1380_v35, 0.0  ;;  %v5187_v16 = vmul.f32 %v4507_v10, %v5083_v26  ;;  %v5193_v20 = vld [vmem:[#allocation3 + $0x207] sm:$0xff]  ;;  %v5211_v18 = vld [vmem:[#allocation3 + $0x20f] sm:$0xff] }
 0x19b   : > { %v2206_v6 = vadd.f32 %v2174_v7, %v2138_v17  ;;  %v5191_v21 = vmul.f32 %v4524_v40, %v5094_v47  ;;  %5805 = vst [vmem:[#allocation47_spill] sm:$0xff] %v5193_v20  ;;  %1522 = vst.msk [vmem:[#allocation3 + $0x190] sm:$0xff] %vm1455_vm3, %v1446_v44  ;;  %v5199_v49 = vmul.f32 %v4524_v40, %v5104_v53  ;;  %v5235_v9 = vld [vmem:[#allocation3 + $0x208] sm:$0xff]  ;;  %v5237_v34 = vld [vmem:[#allocation3 + $0x210] sm:$0xff] }
 0x19c   : > { %3289 = vmatmul.mubr.msk.bf16.gmra.mrb[20].mxu1 %vm1455_vm3, %v2228_v58  ;;  %v1703_v7 = vmul.f32 %v4500_v22, %v5169_v42  ;;  %v1704_v26 = vmul.f32 %v4500_v22, %v5171_v37  ;;  %v5207_v47 = vmul.f32 %v4515_v61, %v5173_v63  ;;  %5807 = vst [vmem:[#allocation49_spill] sm:$0xff] %v5211_v18  ;;  %1520 = vst.msk [vmem:[#allocation3 + $0x170] sm:$0xff] %vm1455_vm3, %v1444_v28 }
 0x19d   : > { %v2229_v38 = vpack.c.bf16 %v2206_v6, %v2205_v45  ;;  %v5216_v53 = vmul.f32 %v4515_v61, %v5180_v46  ;;  %v5225_v3 = vmul.f32 %v5221_v55, %v5182_v29  ;;  %v1637_v4 = vmul.f32 %v4496_v41, %v5169_v42  ;;  %5810 = vst [vmem:[#allocation52_spill] sm:$0xff] %v5235_v9 }
 0x19e   : > { %v1735_v50 = vadd.f32 %v1703_v7, %v5012_v12  ;;  %v1736_v1 = vadd.f32 %v1704_v26, %v5020_v15  ;;  %v1638_v25 = vmul.f32 %v4496_v41, %v5171_v37  ;;  %v1705_v19 = vmul.f32 %v4500_v22, %v5193_v20  ;;  %5811 = vst [vmem:[#allocation53_spill] sm:$0xff] %v5237_v34 }
 0x19f   : > { %5808 = vst [vmem:[#allocation50_spill] sm:$0xff] %v5216_v53  ;;  %5809 = vst [vmem:[#allocation51_spill] sm:$0xff] %v5225_v3  ;;  %3292 = vmatprep.mubr.msk.bf16.mxu1 %vm1455_vm3, %v2229_v38  ;;  %v5242_v33 = vmul.f32 %v5221_v55, %v5209_v54  ;;  %v1669_v12 = vadd.f32 %v1637_v4, %v5039_v51  ;;  %v5247_v15 = vmul.f32 %v4500_v22, %v5211_v18 }
 0x1a0   : > { %v5251_v31 = vmul.f32 %v4512_v27, %v5173_v63  ;;  %v5254_v57 = vadd.f32 %v5015_v11, %v1735_v50  ;;  %v5257_v56 = vadd.f32 %v5018_v2, %v1736_v1  ;;  %v5260_v35 = vadd.f32 %v1638_v25, %v5042_v39  ;;  %v5266_v17 = vld [vmem:[#allocation3 + $0x187] sm:$0xff] }
 0x1a1   : > { %5812 = vst [vmem:[#allocation54_spill] sm:$0xff] %v5242_v33  ;;  %5813 = vst [vmem:[#allocation55_spill] sm:$0xff] %v5247_v15  ;;  %v5264_v51 = vmul.f32 %v4512_v27, %v5180_v46  ;;  %v5268_v44 = vld [vmem:[#allocation3 + $0x188] sm:$0xff]  ;;  %v5270_v58 = vadd.f32 %v1705_v19, %v1669_v12  ;;  %v5274_v11 = vmul.f32 %v4515_v61, %v5235_v9 }
 0x1a2   : > { %5814 = vst [vmem:[#allocation56_spill] sm:$0xff] %v5251_v31  ;;  %5815 = vst [vmem:[#allocation57_spill] sm:$0xff] %v5260_v35  ;;  %v5278_v2 = vmul.f32 %v4515_v61, %v5237_v34  ;;  %v5282_v39 = vmul.f32 %v4527_v43, %v5182_v29  ;;  %v1555_v45 = vld [vmem:[#allocation3 + $0x167] sm:$0xff]  ;;  %v1697_v6 = vmul.f32 %v4500_v22, %v5266_v17  ;;  %v5296_v1 = vld [vmem:[#allocation3 + $0x18f] sm:$0xff] }
 0x1a3   : > { %5816 = vst [vmem:[#allocation58_spill] sm:$0xff] %v5264_v51  ;;  %5817 = vst [vmem:[#allocation59_spill] sm:$0xff] %v5270_v58  ;;  %v1763_v28 = vld [vmem:[#allocation3 + $0x168] sm:$0xff]  ;;  %v1937_v7 = vmul.f32 %v4515_v61, %v5268_v44  ;;  %v1631_v26 = vmul.f32 %v4496_v41, %v5266_v17  ;;  %v5292_v38 = vmul.f32 %v4527_v43, %v5209_v54  ;;  %v5299_v19 = vld [vmem:[#allocation3 + $0x190] sm:$0xff] }
 0x1a4   : > { %5818 = vst [vmem:[#allocation60_spill] sm:$0xff] %v5274_v11  ;;  %5819 = vst [vmem:[#allocation61_spill] sm:$0xff] %v5278_v2  ;;  %v1695_v4 = vmul.f32 %v4500_v22, %v1555_v45  ;;  %v1935_v50 = vmul.f32 %v4515_v61, %v1763_v28  ;;  %v1629_v25 = vmul.f32 %v4496_v41, %v1555_v45  ;;  %v5301_v12 = vld [vmem:[#allocation3 + $0x189] sm:$0xff]  ;;  %v2004_v20 = vld [vmem:[#allocation3 + $0x171] sm:$0xff] }
 0x1a5   : > { %5820 = vst [vmem:[#allocation62_spill] sm:$0xff] %v5282_v39  ;;  %5821 = vst [vmem:[#allocation63_spill] sm:$0xff] %v5292_v38  ;;  %v1871_v29 = vmul.f32 %v4512_v27, %v5268_v44  ;;  %v1556_v34 = vld [vmem:[#allocation3 + $0x16f] sm:$0xff]  ;;  %v1698_v54 = vmul.f32 %v4500_v22, %v5296_v1  ;;  %v1869_v38 = vmul.f32 %v4512_v27, %v1763_v28 }
 0x1a6   : > { %v1764_v9 = vld [vmem:[#allocation3 + $0x170] sm:$0xff]  ;;  %v1938_v63 = vmul.f32 %v4515_v61, %v5299_v19  ;;  %v5312_v39 = vmul.f32 %v5221_v55, %v5301_v12  ;;  %v1696_v18 = vmul.f32 %v4500_v22, %v1556_v34  ;;  %v1727_v33 = vadd.f32 %v1695_v4, %v5119_v59 }
 0x1a7   : > { %v2003_v46 = vld [vmem:[#allocation3 + $0x169] sm:$0xff]  ;;  %v1936_v3 = vmul.f32 %v4515_v61, %v1764_v9  ;;  %v1595_v2 = vmul.f32 %v4493_v23, %v1555_v45  ;;  %v2176_v42 = vmul.f32 %v5221_v55, %v2004_v20  ;;  %v1630_v11 = vmul.f32 %v4496_v41, %v1556_v34  ;;  %v5325_v59 = vld [vmem:[#allocation3 + $0x191] sm:$0xff] }
 0x1a8   : > { %v2175_v37 = vmul.f32 %v5221_v55, %v2003_v46  ;;  %v1661_v51 = vadd.f32 %v1629_v25, %v5163_v8  ;;  %v1728_v31 = vadd.f32 %v1696_v18, %v5125_v62  ;;  %v1831_v53 = vadd.f32 %v5123_v13, %v1727_v33 }
 0x1a9   : > { %v1870_v22 = vmul.f32 %v4512_v27, %v1764_v9  ;;  %v2109_v4 = vmul.f32 %v4527_v43, %v2003_v46  ;;  %v1662_v45 = vadd.f32 %v1630_v11, %v5167_v14  ;;  %v2110_v58 = vmul.f32 %v4527_v43, %v2004_v20 }
 0x1aa   : > { %v1729_v61 = vadd.f32 %v1697_v6, %v1661_v51  ;;  %v1596_v15 = vmul.f32 %v4493_v23, %v1556_v34  ;;  %v1832_v35 = vadd.f32 %v5128_v52, %v1728_v31  ;;  %v1899_v8 = vadd.f32 %v5132_v32, %v1831_v53 }
 0x1ab   : > { %v1632_v13 = vmul.f32 %v4496_v41, %v5296_v1  ;;  %v1663_v62 = vadd.f32 %v1631_v26, %v1595_v2  ;;  %v1730_v18 = vadd.f32 %v1698_v54, %v1662_v45  ;;  %v2178_v25 = vmul.f32 %v5221_v55, %v5325_v59  ;;  %v5822_v2 = vld [vmem:[#allocation23_spill] sm:$0xff]  ;;  %v5823_v45 = vld [vmem:[#allocation14_spill] sm:$0xff] }
 0x1ac   : > { %v1833_v33 = vadd.f32 %v5178_v30, %v1729_v61  ;;  %v1803_v14 = vmul.f32 %v4507_v10, %v1763_v28  ;;  %v1900_v51 = vadd.f32 %v5139_v48, %v1832_v35  ;;  %v1967_v11 = vadd.f32 %v1935_v50, %v1899_v8 }
 0x1ad   : > { %v1664_v34 = vadd.f32 %v1632_v13, %v1596_v15  ;;  %v1731_v52 = vadd.f32 %v4957_v60, %v1663_v62  ;;  %v1834_v32 = vadd.f32 %v5187_v16, %v1730_v18  ;;  %v1804_v31 = vmul.f32 %v4507_v10, %v1764_v9  ;;  %v5825_v18 = vld [vmem:[#allocation24_spill] sm:$0xff] }
 0x1ae   : > { %v1901_v53 = vadd.f32 %v1869_v38, %v1833_v33  ;;  %v1872_v54 = vmul.f32 %v4512_v27, %v5299_v19  ;;  %v1968_v61 = vadd.f32 %v1936_v3, %v1900_v51  ;;  %v2071_v30 = vadd.f32 %v5142_v5, %v1967_v11  ;;  %v5827_v11 = vld [vmem:[#allocation25_spill] sm:$0xff] }
 0x1af   : > { %v1732_v6 = vadd.f32 %v5822_v2, %v1664_v34  ;;  %v1835_v28 = vadd.f32 %v1803_v14, %v1731_v52  ;;  %v1902_v26 = vadd.f32 %v1870_v22, %v1834_v32  ;;  %v2043_v15 = vmul.f32 %v4524_v40, %v2003_v46  ;;  %v5826_v14 = vld [vmem:[#allocation28_spill] sm:$0xff]  ;;  %v5830_v2 = vld [vmem:[#allocation13_spill] sm:$0xff] }
 0x1b0   : > { %v1969_v48 = vadd.f32 %v1937_v7, %v1901_v53  ;;  %v2044_v60 = vmul.f32 %v4524_v40, %v2004_v20  ;;  %v2072_v16 = vadd.f32 %v5145_v0, %v1968_v61  ;;  %v2139_v35 = vadd.f32 %v5149_v36, %v2071_v30  ;;  %v5829_v61 = vld [vmem:[#allocation26_spill] sm:$0xff] }
 0x1b1   : > { %v1836_v9 = vadd.f32 %v1804_v31, %v1732_v6  ;;  %v1903_v38 = vadd.f32 %v1871_v29, %v1835_v28  ;;  %v1970_v50 = vadd.f32 %v1938_v63, %v1902_v26  ;;  %v2111_v5 = vmul.f32 %v4527_v43, %v5301_v12  ;;  %v5828_v31 = vld [vmem:[#allocation22_spill] sm:$0xff] }
 0x1b2   : > { %v2073_v3 = vadd.f32 %v5191_v21, %v1969_v48  ;;  %v1597_v22 = vmul.f32 %v4493_v23, %v5266_v17  ;;  %v2140_v7 = vadd.f32 %v5158_v24, %v2072_v16  ;;  %v2112_v0 = vmul.f32 %v4527_v43, %v5325_v59  ;;  %v5824_v21 = vld [vmem:[#allocation15_spill] sm:$0xff]  ;;  %v5832_v48 = vld [vmem:[#allocation33_spill] sm:$0xff] }
 0x1b3   : > { %v1904_v46 = vadd.f32 %v1872_v54, %v1836_v9  ;;  %v1971_v20 = vadd.f32 %v5823_v45, %v1903_v38  ;;  %v2074_v36 = vadd.f32 %v5199_v49, %v1970_v50  ;;  %v1598_v63 = vmul.f32 %v4493_v23, %v5296_v1  ;;  %v5834_v9 = vld [vmem:[#allocation57_spill] sm:$0xff]  ;;  %v5835_v38 = vld [vmem:[#allocation55_spill] sm:$0xff]  ;;  %v5840_v45 = vld [vmem:[#allocation50_spill] sm:$0xff] }
 0x1b4   : > { %v2141_v29 = vadd.f32 %v2109_v4, %v2073_v3  ;;  %v1665_v8 = vadd.f32 %v5824_v21, %v1597_v22  ;;  %v2207_v13 = vadd.f32 %v2175_v37, %v2139_v35  ;;  %v2208_v62 = vadd.f32 %v2176_v42, %v2140_v7  ;;  %v5837_v3 = vld [vmem:[#allocation38_spill] sm:$0xff]  ;;  %v5839_v7 = vld [vmem:[#allocation17_spill] sm:$0xff] }
 0x1b5   : > { %v1972_v17 = vadd.f32 %v5825_v18, %v1904_v46  ;;  %v2075_v33 = vadd.f32 %v2043_v15, %v1971_v20  ;;  %v2142_v24 = vadd.f32 %v2110_v58, %v2074_v36  ;;  %v1666_v51 = vadd.f32 %v5826_v14, %v1598_v63  ;;  %v5843_v63 = vld [vmem:[#allocation56_spill] sm:$0xff]  ;;  %v2014_v14 = vld [vmem:[#allocation3 + $0x211] sm:$0xff] }
 0x1b6   : > { %v1733_v34 = vadd.f32 %v5827_v11, %v1665_v8  ;;  %v1805_v52 = vmul.f32 %v4507_v10, %v5268_v44  ;;  %v2230_v49 = vpack.c.bf16 %v2208_v62, %v2207_v13  ;;  %v2209_v4 = vadd.f32 %v5312_v39, %v2141_v29  ;;  %v5844_v62 = vld [vmem:[#allocation18_spill] sm:$0xff] }
 0x1b7   : > { %v2076_v32 = vadd.f32 %v2044_v60, %v1972_v17  ;;  %v2143_v1 = vadd.f32 %v2111_v5, %v2075_v33  ;;  %v2210_v53 = vadd.f32 %v2178_v25, %v2142_v24  ;;  %v1734_v37 = vadd.f32 %v5828_v31, %v1666_v51  ;;  %v5831_v25 = vld [vmem:[#allocation21_spill] sm:$0xff]  ;;  %v5833_v60 = vld [vmem:[#allocation27_spill] sm:$0xff]  ;;  %v5846_v51 = vld [vmem:[#allocation36_spill] sm:$0xff] }
 0x1b8   : > { %v1806_v42 = vmul.f32 %v4507_v10, %v5299_v19  ;;  %v1837_v54 = vadd.f32 %v1805_v52, %v1733_v34  ;;  %3293 = vmatmul.mubr.msk.bf16.gmra.mrb[24].mxu1 %vm1455_vm3, %v2230_v49  ;;  %v2045_v44 = vmul.f32 %v4524_v40, %v5301_v12  ;;  %v1907_v39 = vadd.f32 %v5830_v2, %v5254_v57  ;;  %v5382_v19 = vld [vmem:[#allocation3 + $0x209] sm:$0xff]  ;;  %v5836_v12 = vld [vmem:[#allocation59_spill] sm:$0xff]  ;;  %v5848_v52 = vld [vmem:[#allocation60_spill] sm:$0xff] }
 0x1b9   : > { %v2144_v58 = vadd.f32 %v2112_v0, %v2076_v32  ;;  %v2211_v30 = vadd.f32 %v5829_v61, %v2143_v1  ;;  %v2231_v6 = vpack.c.bf16 %v2210_v53, %v2209_v4  ;;  %v1908_v15 = vadd.f32 %v5832_v48, %v5257_v56  ;;  %v5838_v57 = vld [vmem:[#allocation29_spill] sm:$0xff]  ;;  %v5841_v0 = vld [vmem:[#allocation34_spill] sm:$0xff]  ;;  %v5845_v33 = vld [vmem:[#allocation35_spill] sm:$0xff] }
 0x1ba   : > { %v1838_v28 = vadd.f32 %v1806_v42, %v1734_v37  ;;  %v1905_v26 = vadd.f32 %v5831_v25, %v1837_v54  ;;  %v1975_v35 = vadd.f32 %v5207_v47, %v1907_v39  ;;  %v1738_v50 = vadd.f32 %v5835_v38, %v5834_v9  ;;  %v5842_v47 = vld [vmem:[#allocation39_spill] sm:$0xff]  ;;  %v5847_v11 = vld [vmem:[#allocation58_spill] sm:$0xff]  ;;  %v5851_v37 = vld [vmem:[#allocation37_spill] sm:$0xff] }
 0x1bb   : > { %v2212_v16 = vadd.f32 %v5833_v60, %v2144_v58  ;;  %v1841_v5 = vadd.f32 %v5837_v3, %v5836_v12  ;;  %3296 = vmatprep.mubr.msk.bf16.mxu1 %vm1455_vm3, %v2231_v6  ;;  %v2046_v56 = vmul.f32 %v4524_v40, %v5325_v59  ;;  %v1976_v20 = vadd.f32 %v5840_v45, %v1908_v15  ;;  %v5849_v4 = vld [vmem:[#allocation42_spill] sm:$0xff]  ;;  %v5852_v54 = vld [vmem:[#allocation43_spill] sm:$0xff]  ;;  %v5853_v61 = vld [vmem:[#allocation61_spill] sm:$0xff] }
 0x1bc   : > { %v1906_v22 = vadd.f32 %v5838_v57, %v1838_v28  ;;  %v1973_v46 = vadd.f32 %v5839_v7, %v1905_v26  ;;  %v2079_v36 = vadd.f32 %v5841_v0, %v1975_v35  ;;  %v1842_v29 = vadd.f32 %v5842_v47, %v1738_v50  ;;  %v5850_v53 = vld [vmem:[#allocation30_spill] sm:$0xff]  ;;  %v5855_v6 = vld [vmem:[#allocation47_spill] sm:$0xff]  ;;  %v5859_v35 = vld [vmem:[#allocation49_spill] sm:$0xff] }
 0x1bd   : > { %v1909_v21 = vadd.f32 %v5843_v63, %v1841_v5  ;;  %v2185_v8 = vmul.f32 %v5221_v55, %v5382_v19  ;;  %v2232_v13 = vpack.c.bf16 %v2212_v16, %v2211_v30  ;;  %v2080_v24 = vadd.f32 %v5845_v33, %v1976_v20  ;;  %v5856_v25 = vld [vmem:[#allocation31_spill] sm:$0xff]  ;;  %v5858_v60 = vld [vmem:[#allocation54_spill] sm:$0xff]  ;;  %v5860_v9 = vld [vmem:[#allocation41_spill] sm:$0xff] }
 0x1be   : > { %v1974_v18 = vadd.f32 %v5844_v62, %v1906_v22  ;;  %v2077_v17 = vadd.f32 %v2045_v44, %v1973_v46  ;;  %v2147_v59 = vadd.f32 %v5846_v51, %v2079_v36  ;;  %v1910_v34 = vadd.f32 %v5847_v11, %v1842_v29  ;;  %v5854_v44 = vld [vmem:[#allocation40_spill] sm:$0xff]  ;;  %v5857_v48 = vld [vmem:[#allocation51_spill] sm:$0xff]  ;;  %v5861_v50 = vld [vmem:[#allocation62_spill] sm:$0xff] }
 0x1bf   : > { %v1977_v49 = vadd.f32 %v5848_v52, %v1909_v21  ;;  %v1603_v32 = vmul.f32 %v4493_v23, %v5849_v4  ;;  %v2148_v42 = vadd.f32 %v5851_v37, %v2080_v24  ;;  %v1604_v58 = vmul.f32 %v4493_v23, %v5852_v54  ;;  %v5862_v5 = vld [vmem:[#allocation44_spill] sm:$0xff]  ;;  %v5863_v22 = vld [vmem:[#allocation19_spill] sm:$0xff]  ;;  %v1775_v20 = vld [vmem:[#allocation3 + $0x228] sm:$0xff] }
 0x1c0   : > { %v2078_v1 = vadd.f32 %v2046_v56, %v1974_v18  ;;  %v2145_v31 = vadd.f32 %v5850_v53, %v2077_v17  ;;  %3297 = vmatmul.mubr.msk.bf16.gmra.mrb[28].mxu1 %vm1455_vm3, %v2232_v13  ;;  %v1978_v30 = vadd.f32 %v5853_v61, %v1910_v34  ;;  %v2186_v39 = vmul.f32 %v5221_v55, %v2014_v14  ;;  %v5864_v46 = vld [vmem:[#allocation32_spill] sm:$0xff]  ;;  %v5865_v0 = vld [vmem:[#allocation45_spill] sm:$0xff]  ;;  %v5866_v47 = vld [vmem:[#allocation63_spill] sm:$0xff] }
 0x1c1   : > { %v2081_v2 = vadd.f32 %v5854_v44, %v1977_v49  ;;  %v1639_v28 = vmul.f32 %v4496_v41, %v5855_v6  ;;  %v2215_v15 = vadd.f32 %v5857_v48, %v2147_v59  ;;  %v2216_v16 = vadd.f32 %v5858_v60, %v2148_v42  ;;  %v5867_v63 = vld [vmem:[#allocation12_spill] sm:$0xff]  ;;  %v1776_v13 = vld [vmem:[#allocation3 + $0x230] sm:$0xff]  ;;  %v5870_v51 = vld [vmem:[#allocation53_spill] sm:$0xff] }
 0x1c2   : > { %v2146_v26 = vadd.f32 %v5856_v25, %v2078_v1  ;;  %v1640_v23 = vmul.f32 %v4496_v41, %v5859_v35  ;;  %v2082_v38 = vadd.f32 %v5860_v9, %v1978_v30  ;;  %v1811_v57 = vmul.f32 %v4507_v10, %v5862_v5  ;;  %v5868_v62 = vld [vmem:[#allocation52_spill] sm:$0xff]  ;;  %v5872_v53 = vld [vmem:[#allocation46_spill] sm:$0xff] }
 0x1c3   : > { %v2149_v12 = vadd.f32 %v5861_v50, %v2081_v2  ;;  %v1671_v3 = vadd.f32 %v1639_v28, %v1603_v32  ;;  %v2213_v7 = vadd.f32 %v5863_v22, %v2145_v31  ;;  %v1812_v36 = vmul.f32 %v4507_v10, %v5865_v0  ;;  %v5869_v33 = vld [vmem:[#allocation16_spill] sm:$0xff]  ;;  %v2015_v42 = vld [vmem:[#allocation3 + $0x229] sm:$0xff]  ;;  %v2016_v61 = vld [vmem:[#allocation3 + $0x231] sm:$0xff] }
 0x1c4   : > { %v2214_v56 = vadd.f32 %v5864_v46, %v2146_v26  ;;  %v1672_v45 = vadd.f32 %v1640_v23, %v1604_v58  ;;  %v2150_v29 = vadd.f32 %v5866_v47, %v2082_v38  ;;  %v1879_v18 = vmul.f32 %v4512_v27, %v5868_v62  ;;  %v5871_v49 = vld [vmem:[#allocation20_spill] sm:$0xff] }
 0x1c5   : > { %v2217_v41 = vadd.f32 %v2185_v8, %v2149_v12  ;;  %v1739_v21 = vadd.f32 %v5867_v63, %v1671_v3  ;;  %v1880_v59 = vmul.f32 %v4512_v27, %v5870_v51  ;;  %v2234_v11 = vpack.c.bf16 %v2216_v16, %v2215_v15  ;;  %v5873_v27 = vld [vmem:[#allocation48_spill] sm:$0xff] }
 0x1c6   : > { %v2233_v17 = vpack.c.bf16 %v2214_v56, %v2213_v7  ;;  %v1740_v24 = vadd.f32 %v5869_v33, %v1672_v45  ;;  %v2218_v34 = vadd.f32 %v2186_v39, %v2150_v29  ;;  %v1947_v10 = vmul.f32 %v5871_v49, %v1775_v20  ;;  %v2490_v3 = vld [vmem:[%s5673_s7] sm:$0xff]  ;;  %v5875_v7 = vld [vmem:[#allocation7_spill] sm:$0xff] }
 0x1c7   : > { %v1843_v52 = vadd.f32 %v1811_v57, %v1739_v21  ;;  %v1948_v4 = vmul.f32 %v5871_v49, %v1776_v13  ;;  %v2051_v31 = vmul.f32 %v4524_v40, %v5872_v53  ;;  %v2052_v54 = vmul.f32 %v4524_v40, %v5873_v27  ;;  %v5874_v5 = vld [vmem:[#allocation4_spill] sm:$0xff] }
 0x1c8   : > { %3300 = vmatprep.mubr.msk.bf16.mxu1 %vm1455_vm3, %v2233_v17  ;;  %v1844_v8 = vadd.f32 %v1812_v36, %v1740_v24  ;;  %v2235_v32 = vpack.c.bf16 %v2218_v34, %v2217_v41  ;;  %v2119_v30 = vmul.f32 %v4527_v43, %v5382_v19  ;;  %v2120_v2 = vmul.f32 %v4527_v43, %v2014_v14  ;;  %v2813_v19 = vld [vmem:[%s5674_s8] sm:$0xf]  ;;  %v2493_v22 = vld [vmem:[#allocation3 + $0x7] ss:$2 sm:$0xff]  ;;  %v2594_v24 = vld [vmem:[#allocation3 + $0x8] ss:$2 sm:$0xff] }
 0x1c9   : > { %3301 = vmatmul.mubr.msk.bf16.gmra.mrb[32].mxu1 %vm1455_vm3, %v2234_v11  ;;  %v1911_v1 = vadd.f32 %v1879_v18, %v1843_v52  ;;  %v2187_v6 = vmul.f32 %v5221_v55, %v2015_v42  ;;  %v2188_v25 = vmul.f32 %v5221_v55, %v2016_v61  ;;  %3349 = vmatprep.subr.msk.bf16.mxu0 %vm2293_vm4, %v2813_v19  ;;  %v2827_v43 = vsel %vm2293_vm4, %v2813_v19, 0  ;;  %v5461_v55 = vld [vmem:[%s5672_s6] ss:$0 sm:$0xff]  ;;  %v5877_v11 = vld [vmem:[#allocation5_spill] sm:$0xff] }
 0x1ca   : > { %v1912_v37 = vadd.f32 %v1880_v59, %v1844_v8  ;;  %3304 = vmatprep.mubr.msk.bf16.mxu1 %vm1455_vm3, %v2235_v32  ;;  %3309 = vmatpush3.bf16.msra.mxu0 %v2827_v43  ;;  %v5475_v57 = vrot.slane %v2490_v3, %v5874_v5  ;;  %v5478_v46 = vrot.slane %v2490_v3, %v5875_v7  ;;  %v5876_v36 = vld [vmem:[#allocation8_spill] sm:$0xff] }
 0x1cb   : > { %v1979_v58 = vadd.f32 %v1947_v10, %v1911_v1  ;;  %v5483_v47 = vrot.slane %v2490_v3, %v5876_v36  ;;  %v5490_v18 = vld [vmem:[%s5675_s9] sm:$0x3]  ;;  %v5500_v34 = vrot.slane %v2490_v3, %v5877_v11  ;;  %v5878_v10 = vld [vmem:[#allocation9_spill] sm:$0xff] }
 0x1cc   : > { %v1980_v44 = vadd.f32 %v1948_v4, %v1912_v37  ;;  %v2512_v56 = vmul.f32 %v5475_v57, %v2493_v22  ;;  %3350 = vmatprep.subr.msk.bf16.mxu0 %vm1258_vm0, %v5490_v18  ;;  %v5506_v8 = vrot.slane %v2490_v3, %v5878_v10 }
 0x1cd   : > { %v2083_v39 = vadd.f32 %v2051_v31, %v1979_v58  ;;  %v2613_v49 = vmul.f32 %v5500_v34, %v2594_v24  ;;  %v5879_v31 = vld [vmem:[#allocation10_spill] sm:$0xff] }
 0x1ce   : > { %v2084_v28 = vadd.f32 %v2052_v54, %v1980_v44  ;;  %v5510_v37 = vrot.slane %v2490_v3, %v5879_v31 }
 0x1cf   : > { %v2151_v26 = vadd.f32 %v2119_v30, %v2083_v39 }
 0x1d0   : > { %v2152_v48 = vadd.f32 %v2120_v2, %v2084_v28  ;;  %v2702_v2 = vld [vmem:[#allocation3 + $0x9] ss:$2 sm:$0xff] }
 0x1d1   : > { %v2219_v15 = vadd.f32 %v2187_v6, %v2151_v26 }
 0x1d2   : > { %v2220_v40 = vadd.f32 %v2188_v25, %v2152_v48  ;;  %v5880_v25 = vld [vmem:[#allocation6_spill] sm:$0xff] }
 0x1d3   : > { %v5517_v26 = vrot.slane %v2490_v3, %v5880_v25 }
 0x1d4   : > { %v2236_v60 = vpack.c.bf16 %v2220_v40, %v2219_v15 }
 0x1d5   : > { %v2721_v19 = vmul.f32 %v5517_v26, %v2702_v2 }
 0x1d6   : > { %3305 = vmatmul.mubr.msk.bf16.gmra.mrb[36].mxu1 %vm1455_vm3, %v2236_v60 }
 0x224   : > { %v3278_v14 = vpop.f32.mrb[8].mxu1 }
 0x225   : > { %v2340_v16 = vadd.f32 %v3278_v14, %v5461_v55  ;;  %v2331_v35 = vpop.f32.mrb[9].mxu1 }
 0x226   : > { %v2332_v23 = vadd.f32 %v5461_v55, %v2331_v35  ;;  %v3279_v9 = vpop.f32.mrb[10].mxu1 }
 0x227   : > { %2460 = vst.msk [vmem:[#allocation3 + $0x48] sm:$0xff] %vm1455_vm3, %v2340_v16  ;;  %v2343_v38 = vadd.f32 %v3279_v9, %v5461_v55  ;;  %v2334_v50 = vpop.f32.mrb[11].mxu1 }
 0x228   : > { %2458 = vst.msk [vmem:[#allocation3 + $0x28] sm:$0xff] %vm1455_vm3, %v2332_v23  ;;  %v2335_v12 = vadd.f32 %v5461_v55, %v2334_v50 }
 0x229   : > { %2461 = vst.msk [vmem:[#allocation3 + $0x50] sm:$0xff] %vm1455_vm3, %v2343_v38  ;;  %v5881_v38 = vld [vmem:[#allocation11_spill] sm:$0xff] }
 0x22a   : > { %2459 = vst.msk [vmem:[#allocation3 + $0x30] sm:$0xff] %vm1455_vm3, %v2335_v12  ;;  %v5524_v50 = vrot.slane %v2490_v3, %v5881_v38 }
 0x230   : > { %v2558_v63 = vld [vmem:[#allocation3 + $0x47] ss:$2 sm:$0xff]  ;;  %v2666_v54 = vld [vmem:[#allocation3 + $0x48] ss:$2 sm:$0xff] }
 0x231   : > { %v2521_v45 = vld [vmem:[#allocation3 + $0x27] ss:$2 sm:$0xff]  ;;  %v3282_v20 = vpop.f32.mrb[12].mxu1  ;;  %v2577_v59 = vmul.f32 %v5483_v47, %v2558_v63  ;;  %v2630_v4 = vld [vmem:[#allocation3 + $0x28] ss:$2 sm:$0xff]  ;;  %v2685_v28 = vmul.f32 %v5510_v37, %v2666_v54 }
 0x232   : > { %v2540_v0 = vmul.f32 %v5478_v46, %v2521_v45  ;;  %v2356_v29 = vadd.f32 %v3282_v20, %v5461_v55  ;;  %v2347_v41 = vpop.f32.mrb[13].mxu1  ;;  %v2495_v1 = vld [vmem:[#allocation3 + $0x47] ss:$2 sm:$0xff]  ;;  %v2649_v53 = vmul.f32 %v5506_v8, %v2630_v4  ;;  %v2596_v44 = vld [vmem:[#allocation3 + $0x48] ss:$2 sm:$0xff] }
 0x233   : > { %v2348_v21 = vadd.f32 %v5461_v55, %v2347_v41  ;;  %v3283_v13 = vpop.f32.mrb[14].mxu1  ;;  %v2513_v58 = vmul.f32 %v5475_v57, %v2495_v1  ;;  %v2614_v40 = vmul.f32 %v5500_v34, %v2596_v44  ;;  %v2704_v22 = vld [vmem:[#allocation3 + $0x49] ss:$2 sm:$0xff] }
 0x234   : > { %v2548_v62 = vadd.f32 %v2540_v0, %v2512_v56  ;;  %2464 = vst.msk [vmem:[#allocation3 + $0x88] sm:$0xff] %vm1455_vm3, %v2356_v29  ;;  %v2359_v17 = vadd.f32 %v3283_v13, %v5461_v55  ;;  %v2350_v33 = vpop.f32.mrb[15].mxu1  ;;  %v2738_v7 = vld [vmem:[#allocation3 + $0x29] ss:$2 sm:$0xff]  ;;  %v2722_v63 = vmul.f32 %v5517_v26, %v2704_v22  ;;  %v5539_v13 = vld [vmem:[%s5673_s7 + $0x8] ss:$0 sm:$0xff] }
 0x235   : > { %2462 = vst.msk [vmem:[#allocation3 + $0x68] sm:$0xff] %vm1455_vm3, %v2348_v21  ;;  %v2351_v51 = vadd.f32 %v5461_v55, %v2350_v33  ;;  %v2757_v21 = vmul.f32 %v5524_v50, %v2738_v7 }
 0x236   : > { %2465 = vst.msk [vmem:[#allocation3 + $0x90] sm:$0xff] %vm1455_vm3, %v2359_v17  ;;  %v2585_v52 = vadd.f32 %v2577_v59, %v2548_v62  ;;  %v2774_v62 = vld [vmem:[#allocation3 + $0x49] ss:$2 sm:$0xff] }
 0x237   : > { %2463 = vst.msk [vmem:[#allocation3 + $0x70] sm:$0xff] %vm1455_vm3, %v2351_v51  ;;  %v2793_v11 = vmul.f32 %v5539_v13, %v2774_v62 }
 0x238   : > { %v2621_v32 = vadd.f32 %v2613_v49, %v2585_v52 }
 0x23a   : > { %v2657_v30 = vadd.f32 %v2649_v53, %v2621_v32 }
 0x23c   : > { %v2693_v60 = vadd.f32 %v2685_v28, %v2657_v30 }
 0x23d   : > { %v2560_v27 = vld [vmem:[#allocation3 + $0x87] ss:$2 sm:$0xff]  ;;  %v2668_v14 = vld [vmem:[#allocation3 + $0x88] ss:$2 sm:$0xff] }
 0x23e   : > { %v2523_v42 = vld [vmem:[#allocation3 + $0x67] ss:$2 sm:$0xff]  ;;  %v2578_v6 = vmul.f32 %v5483_v47, %v2560_v27  ;;  %v2632_v48 = vld [vmem:[#allocation3 + $0x68] ss:$2 sm:$0xff]  ;;  %v2686_v0 = vmul.f32 %v5510_v37, %v2668_v14  ;;  %v2729_v36 = vadd.f32 %v2721_v19, %v2693_v60 }
 0x23f   : > { %v2541_v61 = vmul.f32 %v5478_v46, %v2523_v42  ;;  %v2650_v9 = vmul.f32 %v5506_v8, %v2632_v48  ;;  %v2740_v3 = vld [vmem:[#allocation3 + $0x69] ss:$2 sm:$0xff]  ;;  %v2598_v25 = vld [vmem:[#allocation3 + $0x88] ss:$2 sm:$0xff] }
 0x240   : > { %v2776_v17 = vld [vmem:[#allocation3 + $0x89] ss:$2 sm:$0xff]  ;;  %v2758_v24 = vmul.f32 %v5524_v50, %v2740_v3  ;;  %v2765_v51 = vadd.f32 %v2757_v21, %v2729_v36 }
 0x241   : > { %v2549_v39 = vadd.f32 %v2541_v61, %v2513_v58  ;;  %v2794_v52 = vmul.f32 %v5539_v13, %v2776_v17  ;;  %v2497_v1 = vld [vmem:[#allocation3 + $0x87] ss:$2 sm:$0xff] }
 0x242   : > { %v2801_v49 = vadd.f32 %v2793_v11, %v2765_v51  ;;  %v2514_v42 = vmul.f32 %v5475_v57, %v2497_v1 }
 0x243   : > { %v2586_v15 = vadd.f32 %v2578_v6, %v2549_v39 }
 0x244   : > { %v3286_v43 = vpop.f32.mrb[16].mxu1 }
 0x245   : > { %v2372_v16 = vadd.f32 %v3286_v43, %v5461_v55  ;;  %v2363_v35 = vpop.f32.mrb[17].mxu1  ;;  %v2622_v23 = vadd.f32 %v2614_v40, %v2586_v15  ;;  %v2615_v15 = vmul.f32 %v5500_v34, %v2598_v25 }
 0x246   : > { %v2364_v12 = vadd.f32 %v5461_v55, %v2363_v35  ;;  %v3287_v5 = vpop.f32.mrb[18].mxu1 }
 0x247   : > { %2468 = vst.msk [vmem:[#allocation3 + $0xc8] sm:$0xff] %vm1455_vm3, %v2372_v16  ;;  %v2375_v56 = vadd.f32 %v3287_v5, %v5461_v55  ;;  %v2366_v45 = vpop.f32.mrb[19].mxu1  ;;  %v2658_v20 = vadd.f32 %v2650_v9, %v2622_v23 }
 0x248   : > { %2466 = vst.msk [vmem:[#allocation3 + $0xa8] sm:$0xff] %vm1455_vm3, %v2364_v12  ;;  %v2367_v29 = vadd.f32 %v5461_v55, %v2366_v45  ;;  %v2706_v45 = vld [vmem:[#allocation3 + $0x89] ss:$2 sm:$0xff] }
 0x249   : > { %2469 = vst.msk [vmem:[#allocation3 + $0xd0] sm:$0xff] %vm1455_vm3, %v2375_v56  ;;  %v2694_v41 = vadd.f32 %v2686_v0, %v2658_v20 }
 0x24a   : > { %2467 = vst.msk [vmem:[#allocation3 + $0xb0] sm:$0xff] %vm1455_vm3, %v2367_v29 }
 0x24b   : > { %v2730_v33 = vadd.f32 %v2722_v63, %v2694_v41  ;;  %v2723_v63 = vmul.f32 %v5517_v26, %v2706_v45 }
 0x24d   : > { %v2766_v59 = vadd.f32 %v2758_v24, %v2730_v33 }
 0x24f   : > { %v2802_v10 = vadd.f32 %v2794_v52, %v2766_v59 }
 0x250   : > { %v2562_v58 = vld [vmem:[#allocation3 + $0xc7] ss:$2 sm:$0xff]  ;;  %v2670_v35 = vld [vmem:[#allocation3 + $0xc8] ss:$2 sm:$0xff] }
 0x251   : > { %v2809_v4 = vpack.c.bf16 %v2802_v10, %v2801_v49  ;;  %v2525_v32 = vld [vmem:[#allocation3 + $0xa7] ss:$2 sm:$0xff]  ;;  %v2579_v28 = vmul.f32 %v5483_v47, %v2562_v58  ;;  %v2634_v40 = vld [vmem:[#allocation3 + $0xa8] ss:$2 sm:$0xff]  ;;  %v2687_v7 = vmul.f32 %v5510_v37, %v2670_v35 }
 0x252   : > { %v2542_v53 = vmul.f32 %v5478_v46, %v2525_v32  ;;  %v2499_v19 = vld [vmem:[#allocation3 + $0xc7] ss:$2 sm:$0xff]  ;;  %v2651_v43 = vmul.f32 %v5506_v8, %v2634_v40  ;;  %v2600_v12 = vld [vmem:[#allocation3 + $0xc8] ss:$2 sm:$0xff] }
 0x253   : > { %3310 = vmatprep.mubr.msk.bf16.mxu0 %vm1455_vm3, %v2809_v4  ;;  %v2515_v23 = vmul.f32 %v5475_v57, %v2499_v19  ;;  %v2616_v0 = vmul.f32 %v5500_v34, %v2600_v12  ;;  %v2708_v21 = vld [vmem:[#allocation3 + $0xc9] ss:$2 sm:$0xff] }
 0x254   : > { %v2550_v44 = vadd.f32 %v2542_v53, %v2514_v42  ;;  %v2742_v62 = vld [vmem:[#allocation3 + $0xa9] ss:$2 sm:$0xff]  ;;  %v2724_v11 = vmul.f32 %v5517_v26, %v2708_v21 }
 0x255   : > { %v2759_v52 = vmul.f32 %v5524_v50, %v2742_v62  ;;  %v2778_v49 = vld [vmem:[#allocation3 + $0xc9] ss:$2 sm:$0xff] }
 0x256   : > { %v2587_v48 = vadd.f32 %v2579_v28, %v2550_v44 }
 0x258   : > { %v2623_v60 = vadd.f32 %v2615_v15, %v2587_v48  ;;  %v2935_v48 = vsel %vm1258_vm0, %v5490_v18, 0 }
 0x25a   : > { %v2659_v38 = vadd.f32 %v2651_v43, %v2623_v60 }
 0x25c   : > { %v2695_v36 = vadd.f32 %v2687_v7, %v2659_v38 }
 0x25e   : > { %v2731_v24 = vadd.f32 %v2723_v63, %v2695_v36 }
 0x260   : > { %v2767_v1 = vadd.f32 %v2759_v52, %v2731_v24 }
 0x26f   : > { %v3290_v31 = vpop.f32.mrb[20].mxu1 }
 0x270   : > { %v2388_v27 = vadd.f32 %v3290_v31, %v5461_v55  ;;  %v2379_v54 = vpop.f32.mrb[21].mxu1 }
 0x271   : > { %v2380_v61 = vadd.f32 %v5461_v55, %v2379_v54  ;;  %v3291_v30 = vpop.f32.mrb[22].mxu1  ;;  %v2795_v54 = vmul.f32 %v5539_v13, %v2778_v49 }
 0x272   : > { %2472 = vst.msk [vmem:[#allocation3 + $0x108] sm:$0xff] %vm1455_vm3, %v2388_v27  ;;  %v2391_v2 = vadd.f32 %v3291_v30, %v5461_v55  ;;  %v2382_v39 = vpop.f32.mrb[23].mxu1 }
 0x273   : > { %2470 = vst.msk [vmem:[#allocation3 + $0xe8] sm:$0xff] %vm1455_vm3, %v2380_v61  ;;  %v2383_v6 = vadd.f32 %v5461_v55, %v2382_v39  ;;  %v2803_v39 = vadd.f32 %v2795_v54, %v2767_v1 }
 0x274   : > { %2473 = vst.msk [vmem:[#allocation3 + $0x110] sm:$0xff] %vm1455_vm3, %v2391_v2 }
 0x275   : > { %2471 = vst.msk [vmem:[#allocation3 + $0xf0] sm:$0xff] %vm1455_vm3, %v2383_v6 }
 0x27b   : > { %v2564_v16 = vld [vmem:[#allocation3 + $0x107] ss:$2 sm:$0xff]  ;;  %v2672_v29 = vld [vmem:[#allocation3 + $0x108] ss:$2 sm:$0xff] }
 0x27c   : > { %v2527_v14 = vld [vmem:[#allocation3 + $0xe7] ss:$2 sm:$0xff]  ;;  %v2580_v22 = vmul.f32 %v5483_v47, %v2564_v16  ;;  %v2636_v56 = vld [vmem:[#allocation3 + $0xe8] ss:$2 sm:$0xff]  ;;  %v2688_v33 = vmul.f32 %v5510_v37, %v2672_v29 }
 0x27d   : > { %v2543_v9 = vmul.f32 %v5478_v46, %v2527_v14  ;;  %v2652_v41 = vmul.f32 %v5506_v8, %v2636_v56  ;;  %v2744_v51 = vld [vmem:[#allocation3 + $0xe9] ss:$2 sm:$0xff] }
 0x27e   : > { %v2780_v10 = vld [vmem:[#allocation3 + $0x109] ss:$2 sm:$0xff]  ;;  %v2760_v32 = vmul.f32 %v5524_v50, %v2744_v51 }
 0x27f   : > { %v2551_v5 = vadd.f32 %v2543_v9, %v2515_v23  ;;  %v2796_v58 = vmul.f32 %v5539_v13, %v2780_v10  ;;  %v2501_v35 = vld [vmem:[#allocation3 + $0x107] ss:$2 sm:$0xff] }
 0x280   : > { %v2516_v38 = vmul.f32 %v5475_v57, %v2501_v35 }
 0x281   : > { %v2588_v20 = vadd.f32 %v2580_v22, %v2551_v5  ;;  %v2602_v5 = vld [vmem:[#allocation3 + $0x108] ss:$2 sm:$0xff] }
 0x283   : > { %v2624_v3 = vadd.f32 %v2616_v0, %v2588_v20 }
 0x285   : > { %v2660_v17 = vadd.f32 %v2652_v41, %v2624_v3  ;;  %v2617_v41 = vmul.f32 %v5500_v34, %v2602_v5 }
 0x287   : > { %v2696_v59 = vadd.f32 %v2688_v33, %v2660_v17 }
 0x289   : > { %v2732_v4 = vadd.f32 %v2724_v11, %v2696_v59 }
 0x28b   : > { %v3294_v53 = vpop.f32.mrb[24].mxu1  ;;  %v2768_v27 = vadd.f32 %v2760_v32, %v2732_v4 }
 0x28c   : > { %v2404_v31 = vadd.f32 %v3294_v53, %v5461_v55  ;;  %v2395_v42 = vpop.f32.mrb[25].mxu1 }
 0x28d   : > { %v2396_v61 = vadd.f32 %v5461_v55, %v2395_v42  ;;  %v3295_v30 = vpop.f32.mrb[26].mxu1  ;;  %v2804_v6 = vadd.f32 %v2796_v58, %v2768_v27  ;;  %v2710_v42 = vld [vmem:[#allocation3 + $0x109] ss:$2 sm:$0xff] }
 0x28e   : > { %2476 = vst.msk [vmem:[#allocation3 + $0x148] sm:$0xff] %vm1455_vm3, %v2404_v31  ;;  %v2407_v44 = vadd.f32 %v3295_v30, %v5461_v55  ;;  %v2398_v2 = vpop.f32.mrb[27].mxu1 }
 0x28f   : > { %2474 = vst.msk [vmem:[#allocation3 + $0x128] sm:$0xff] %vm1455_vm3, %v2396_v61  ;;  %v2399_v28 = vadd.f32 %v5461_v55, %v2398_v2  ;;  %v2810_v25 = vpack.c.bf16 %v2804_v6, %v2803_v39  ;;  %v2725_v6 = vmul.f32 %v5517_v26, %v2710_v42 }
 0x290   : > { %2477 = vst.msk [vmem:[#allocation3 + $0x150] sm:$0xff] %vm1455_vm3, %v2407_v44 }
 0x291   : > { %2475 = vst.msk [vmem:[#allocation3 + $0x130] sm:$0xff] %vm1455_vm3, %v2399_v28  ;;  %3311 = vmatmul.mubr.msk.bf16.vlgmr.msra.gmra.mrb[24].mxu0 %vm1455_vm3, %v2810_v25 }
 0x292   : > { %3319 = vmatpush3.bf16.msra.mxu0 %v2935_v48 }
 0x293   : > { %v3298_v15 = vpop.f32.mrb[28].mxu1 }
 0x294   : > { %v2420_v40 = vadd.f32 %v3298_v15, %v5461_v55  ;;  %v2411_v60 = vpop.f32.mrb[29].mxu1 }
 0x295   : > { %v2412_v19 = vadd.f32 %v5461_v55, %v2411_v60  ;;  %v3299_v43 = vpop.f32.mrb[30].mxu1 }
 0x296   : > { %2480 = vst.msk [vmem:[#allocation3 + $0x188] sm:$0xff] %vm1455_vm3, %v2420_v40  ;;  %v2423_v14 = vadd.f32 %v3299_v43, %v5461_v55  ;;  %v2414_v16 = vpop.f32.mrb[31].mxu1 }
 0x297   : > { %2478 = vst.msk [vmem:[#allocation3 + $0x168] sm:$0xff] %vm1455_vm3, %v2412_v19  ;;  %v2415_v18 = vadd.f32 %v5461_v55, %v2414_v16  ;;  %v2566_v9 = vld [vmem:[#allocation3 + $0x147] ss:$2 sm:$0xff]  ;;  %v2674_v11 = vld [vmem:[#allocation3 + $0x148] ss:$2 sm:$0xff] }
 0x298   : > { %2481 = vst.msk [vmem:[#allocation3 + $0x190] sm:$0xff] %vm1455_vm3, %v2423_v14  ;;  %v2529_v23 = vld [vmem:[#allocation3 + $0x127] ss:$2 sm:$0xff]  ;;  %v2581_v56 = vmul.f32 %v5483_v47, %v2566_v9  ;;  %v2638_v0 = vld [vmem:[#allocation3 + $0x128] ss:$2 sm:$0xff]  ;;  %v2689_v53 = vmul.f32 %v5510_v37, %v2674_v11 }
 0x299   : > { %2479 = vst.msk [vmem:[#allocation3 + $0x170] sm:$0xff] %vm1455_vm3, %v2415_v18  ;;  %v2544_v12 = vmul.f32 %v5478_v46, %v2529_v23  ;;  %v2503_v62 = vld [vmem:[#allocation3 + $0x147] ss:$2 sm:$0xff]  ;;  %v2653_v24 = vmul.f32 %v5506_v8, %v2638_v0  ;;  %v2604_v4 = vld [vmem:[#allocation3 + $0x148] ss:$2 sm:$0xff] }
 0x29a   : > { %v2517_v52 = vmul.f32 %v5475_v57, %v2503_v62  ;;  %v2618_v54 = vmul.f32 %v5500_v34, %v2604_v4  ;;  %v2712_v39 = vld [vmem:[#allocation3 + $0x149] ss:$2 sm:$0xff] }
 0x29b   : > { %v2552_v7 = vadd.f32 %v2544_v12, %v2516_v38  ;;  %v2746_v48 = vld [vmem:[#allocation3 + $0x129] ss:$2 sm:$0xff]  ;;  %v2726_v9 = vmul.f32 %v5517_v26, %v2712_v39 }
 0x29c   : > { %v3302_v22 = vpop.f32.mrb[32].mxu1 }
 0x29d   : > { %v2436_v45 = vadd.f32 %v3302_v22, %v5461_v55  ;;  %v2427_v20 = vpop.f32.mrb[33].mxu1  ;;  %v2589_v3 = vadd.f32 %v2581_v56, %v2552_v7  ;;  %v2761_v7 = vmul.f32 %v5524_v50, %v2746_v48 }
 0x29e   : > { %v2428_v36 = vadd.f32 %v5461_v55, %v2427_v20  ;;  %v3303_v29 = vpop.f32.mrb[34].mxu1  ;;  %v2782_v20 = vld [vmem:[#allocation3 + $0x149] ss:$2 sm:$0xff] }
 0x29f   : > { %2484 = vst.msk [vmem:[#allocation3 + $0x1c8] sm:$0xff] %vm1455_vm3, %v2436_v45  ;;  %v2439_v63 = vadd.f32 %v3303_v29, %v5461_v55  ;;  %v2430_v21 = vpop.f32.mrb[35].mxu1  ;;  %v2625_v33 = vadd.f32 %v2617_v41, %v2589_v3  ;;  %v2568_v59 = vld [vmem:[#allocation3 + $0x187] ss:$2 sm:$0xff]  ;;  %v2676_v58 = vld [vmem:[#allocation3 + $0x188] ss:$2 sm:$0xff] }
 0x2a0   : > { %2482 = vst.msk [vmem:[#allocation3 + $0x1a8] sm:$0xff] %vm1455_vm3, %v2428_v36  ;;  %v2431_v17 = vadd.f32 %v5461_v55, %v2430_v21  ;;  %v2531_v51 = vld [vmem:[#allocation3 + $0x167] ss:$2 sm:$0xff]  ;;  %v2582_v1 = vmul.f32 %v5483_v47, %v2568_v59  ;;  %v2640_v31 = vld [vmem:[#allocation3 + $0x168] ss:$2 sm:$0xff]  ;;  %v2690_v25 = vmul.f32 %v5510_v37, %v2676_v58 }
 0x2a1   : > { %2485 = vst.msk [vmem:[#allocation3 + $0x1d0] sm:$0xff] %vm1455_vm3, %v2439_v63  ;;  %v2545_v49 = vmul.f32 %v5478_v46, %v2531_v51  ;;  %v2661_v10 = vadd.f32 %v2653_v24, %v2625_v33  ;;  %v2505_v30 = vld [vmem:[#allocation3 + $0x187] ss:$2 sm:$0xff]  ;;  %v2654_v2 = vmul.f32 %v5506_v8, %v2640_v31  ;;  %v2606_v63 = vld [vmem:[#allocation3 + $0x188] ss:$2 sm:$0xff] }
 0x2a2   : > { %2483 = vst.msk [vmem:[#allocation3 + $0x1b0] sm:$0xff] %vm1455_vm3, %v2431_v17  ;;  %v2518_v15 = vmul.f32 %v5475_v57, %v2505_v30  ;;  %v2748_v38 = vld [vmem:[#allocation3 + $0x169] ss:$2 sm:$0xff]  ;;  %v2797_v17 = vmul.f32 %v5539_v13, %v2782_v20  ;;  %v2901_v20 = vld [vmem:[#allocation2 + $0xe8] ss:$2 sm:$0xff] }
 0x2a3   : > { %v2553_v32 = vadd.f32 %v2545_v49, %v2517_v52  ;;  %v2697_v61 = vadd.f32 %v2689_v53, %v2661_v10  ;;  %v2784_v0 = vld [vmem:[#allocation3 + $0x189] ss:$2 sm:$0xff]  ;;  %v2762_v3 = vmul.f32 %v5524_v50, %v2748_v38 }
 0x2a4   : > { %v2798_v33 = vmul.f32 %v5539_v13, %v2784_v0  ;;  %v2905_v0 = vld [vmem:[#allocation2 + $0x168] ss:$2 sm:$0xff] }
 0x2a5   : > { %v2590_v27 = vadd.f32 %v2582_v1, %v2553_v32  ;;  %v2733_v14 = vadd.f32 %v2725_v6, %v2697_v61 }
 0x2a7   : > { %v2626_v44 = vadd.f32 %v2618_v54, %v2590_v27  ;;  %v2769_v41 = vadd.f32 %v2761_v7, %v2733_v14 }
 0x2a8   : > { %v2570_v35 = vld [vmem:[#allocation3 + $0x1c7] ss:$2 sm:$0xff]  ;;  %v2678_v1 = vld [vmem:[#allocation3 + $0x1c8] ss:$2 sm:$0xff] }
 0x2a9   : > { %v3306_v28 = vpop.f32.mrb[36].mxu1  ;;  %v2533_v40 = vld [vmem:[#allocation3 + $0x1a7] ss:$2 sm:$0xff]  ;;  %v2662_v43 = vadd.f32 %v2654_v2, %v2626_v44  ;;  %v2583_v36 = vmul.f32 %v5483_v47, %v2570_v35  ;;  %v2805_v24 = vadd.f32 %v2797_v17, %v2769_v41  ;;  %v2642_v59 = vld [vmem:[#allocation3 + $0x1a8] ss:$2 sm:$0xff]  ;;  %v2691_v61 = vmul.f32 %v5510_v37, %v2678_v1 }
 0x2aa   : > { %v2452_v60 = vadd.f32 %v3306_v28, %v5461_v55  ;;  %v2443_v19 = vpop.f32.mrb[37].mxu1  ;;  %v2546_v16 = vmul.f32 %v5478_v46, %v2533_v40  ;;  %v2507_v49 = vld [vmem:[#allocation3 + $0x1c7] ss:$2 sm:$0xff]  ;;  %v2655_v10 = vmul.f32 %v5506_v8, %v2642_v59  ;;  %v2608_v27 = vld [vmem:[#allocation3 + $0x1c8] ss:$2 sm:$0xff] }
 0x2ab   : > { %v2444_v18 = vadd.f32 %v5461_v55, %v2443_v19  ;;  %v3307_v23 = vpop.f32.mrb[38].mxu1  ;;  %v2698_v22 = vadd.f32 %v2690_v25, %v2662_v43  ;;  %v2519_v53 = vmul.f32 %v5475_v57, %v2507_v49  ;;  %v2714_v44 = vld [vmem:[#allocation3 + $0x189] ss:$2 sm:$0xff]  ;;  %v2620_v39 = vmul.f32 %v5500_v34, %v2608_v27 }
 0x2ac   : > { %2488 = vst.msk [vmem:[#allocation3 + $0x208] sm:$0xff] %vm1455_vm3, %v2452_v60  ;;  %v2455_v12 = vadd.f32 %v3307_v23, %v5461_v55  ;;  %v2446_v5 = vpop.f32.mrb[39].mxu1  ;;  %v2554_v56 = vadd.f32 %v2546_v16, %v2518_v15  ;;  %v2727_v57 = vmul.f32 %v5517_v26, %v2714_v44  ;;  %v2750_v15 = vld [vmem:[#allocation3 + $0x1a9] ss:$2 sm:$0xff] }
 0x2ad   : > { %2486 = vst.msk [vmem:[#allocation3 + $0x1e8] sm:$0xff] %vm1455_vm3, %v2444_v18  ;;  %v2447_v45 = vadd.f32 %v5461_v55, %v2446_v5  ;;  %v2734_v29 = vadd.f32 %v2726_v9, %v2698_v22  ;;  %v2619_v55 = vmul.f32 %v5500_v34, %v2606_v63  ;;  %v2763_v16 = vmul.f32 %v5524_v50, %v2750_v15  ;;  %v2786_v34 = vld [vmem:[#allocation3 + $0x1c9] ss:$2 sm:$0xff]  ;;  %v2895_v5 = vld [vmem:[#allocation2 + $0x28] ss:$2 sm:$0xff] }
 0x2ae   : > { %2489 = vst.msk [vmem:[#allocation3 + $0x210] sm:$0xff] %vm1455_vm3, %v2455_v12  ;;  %v2591_v21 = vadd.f32 %v2583_v36, %v2554_v56  ;;  %v2799_v38 = vmul.f32 %v5539_v13, %v2786_v34  ;;  %v3187_v63 = vld [vmem:[%s5676_s10] ss:$0 sm:$0xff] }
 0x2af   : > { %2487 = vst.msk [vmem:[#allocation3 + $0x1f0] sm:$0xff] %vm1455_vm3, %v2447_v45  ;;  %v2770_v62 = vadd.f32 %v2762_v3, %v2734_v29  ;;  %v2909_v3 = vld [vmem:[#allocation2 + $0x1e8] ss:$2 sm:$0xff] }
 0x2b0   : > { %v2627_v11 = vadd.f32 %v2619_v55, %v2591_v21 }
 0x2b1   : > { %v2806_v51 = vadd.f32 %v2798_v33, %v2770_v62 }
 0x2b2   : > { %v2663_v42 = vadd.f32 %v2655_v10, %v2627_v11 }
 0x2b3   : > { %v2811_v52 = vpack.c.bf16 %v2806_v51, %v2805_v24 }
 0x2b4   : > { %v2699_v6 = vadd.f32 %v2691_v61, %v2663_v42 }
 0x2b5   : > { %3314 = vmatprep.mubr.msk.bf16.mxu0 %vm1455_vm3, %v2811_v52  ;;  %v2572_v32 = vld [vmem:[#allocation3 + $0x207] ss:$2 sm:$0xff]  ;;  %v2680_v28 = vld [vmem:[#allocation3 + $0x208] ss:$2 sm:$0xff] }
 0x2b6   : > { %v2535_v4 = vld [vmem:[#allocation3 + $0x1e7] ss:$2 sm:$0xff]  ;;  %v2584_v58 = vmul.f32 %v5483_v47, %v2572_v32  ;;  %v2644_v30 = vld [vmem:[#allocation3 + $0x1e8] ss:$2 sm:$0xff]  ;;  %v2692_v60 = vmul.f32 %v5510_v37, %v2680_v28  ;;  %v2735_v47 = vadd.f32 %v2727_v57, %v2699_v6 }
 0x2b7   : > { %v2547_v31 = vmul.f32 %v5478_v46, %v2535_v4  ;;  %v2656_v48 = vmul.f32 %v5506_v8, %v2644_v30  ;;  %v2716_v46 = vld [vmem:[#allocation3 + $0x1c9] ss:$2 sm:$0xff]  ;;  %v2897_v37 = vld [vmem:[#allocation2 + $0x68] ss:$2 sm:$0xff] }
 0x2b8   : > { %v2752_v19 = vld [vmem:[#allocation3 + $0x1e9] ss:$2 sm:$0xff]  ;;  %v2728_v14 = vmul.f32 %v5517_v26, %v2716_v46  ;;  %v2771_v8 = vadd.f32 %v2763_v16, %v2735_v47  ;;  %v2910_v56 = vpack.c.bf16 %v2897_v37, %v2895_v5  ;;  %v2899_v26 = vld [vmem:[#allocation2 + $0xa8] ss:$2 sm:$0xff] }
 0x2b9   : > { %v2555_v54 = vadd.f32 %v2547_v31, %v2519_v53  ;;  %v2788_v35 = vld [vmem:[#allocation3 + $0x209] ss:$2 sm:$0xff]  ;;  %v2764_v23 = vmul.f32 %v5524_v50, %v2752_v19  ;;  %v2903_v50 = vld [vmem:[#allocation2 + $0x128] ss:$2 sm:$0xff]  ;;  %v2911_v36 = vpack.c.bf16 %v2901_v20, %v2899_v26 }
 0x2ba   : > { %v2800_v12 = vmul.f32 %v5539_v13, %v2788_v35  ;;  %v2807_v22 = vadd.f32 %v2799_v38, %v2771_v8  ;;  %v2912_v29 = vpack.c.bf16 %v2905_v0, %v2903_v50  ;;  %v2907_v13 = vld [vmem:[#allocation2 + $0x1a8] ss:$2 sm:$0xff] }
 0x2bb   : > { %v2592_v2 = vadd.f32 %v2584_v58, %v2555_v54  ;;  %v2913_v41 = vpack.c.bf16 %v2909_v3, %v2907_v13 }
 0x2bd   : > { %v2628_v25 = vadd.f32 %v2620_v39, %v2592_v2 }
 0x2bf   : > { %v2664_v40 = vadd.f32 %v2656_v48, %v2628_v25 }
 0x2c1   : > { %v2700_v43 = vadd.f32 %v2692_v60, %v2664_v40 }
 0x2c3   : > { %v2736_v18 = vadd.f32 %v2728_v14, %v2700_v43 }
 0x2c5   : > { %v2772_v9 = vadd.f32 %v2764_v23, %v2736_v18 }
 0x2c7   : > { %v2808_v7 = vadd.f32 %v2800_v12, %v2772_v9 }
 0x2c9   : > { %v2812_v45 = vpack.c.bf16 %v2808_v7, %v2807_v22 }
 0x2cb   : > { %3315 = vmatmul.mubr.msk.bf16.gmra.mrb[28].mxu0 %vm1455_vm3, %v2812_v45 }
 0x2cc   : > { %3320 = vmatprep.mubr.msk.bf16.mxu0 %vm388_vm1, %v2910_v56 }
 0x2d3   : > { %3321 = vmatmul.mubr.msk.bf16.vlgmr.msra.gmra.mrb[24].mxu0 %vm388_vm1, %v2911_v36 }
 0x2d4   : > { %3324 = vmatprep.mubr.msk.bf16.mxu0 %vm388_vm1, %v2912_v29 }
 0x2db   : > { %3325 = vmatmul.mubr.msk.bf16.gmra.mrb[28].mxu0 %vm388_vm1, %v2913_v41 }
 0x3a6   : > { %v3322_v21 = vpop.f32.mrb[24].mxu0 }
 0x3a7   : > { %v2980_v62 = vadd.f32 %v3322_v21, %v3187_v63  ;;  %v2971_v17 = vpop.f32.mrb[25].mxu0 }
 0x3a8   : > { %v2972_v33 = vadd.f32 %v3187_v63, %v2971_v17  ;;  %v3323_v55 = vpop.f32.mrb[26].mxu0 }
 0x3a9   : > { %v3012_v24 = vmax.f32 %v2980_v62, 0.0  ;;  %v2983_v51 = vadd.f32 %v3323_v55, %v3187_v63  ;;  %v2974_v59 = vpop.f32.mrb[27].mxu0 }
 0x3aa   : > { %v3010_v11 = vmax.f32 %v2972_v33, 0.0  ;;  %v2975_v52 = vadd.f32 %v3187_v63, %v2974_v59 }
 0x3ab   : > { %3020 = vst.msk [vmem:[%s386_s25 + $0x10] sm:$0xff] %vm1455_vm3, %v3012_v24  ;;  %v3013_v49 = vmax.f32 %v2983_v51, 0.0 }
 0x3ac   : > { %3018 = vst.msk [vmem:[%s386_s25] sm:$0xff] %vm1455_vm3, %v3010_v11  ;;  %v3011_v10 = vmax.f32 %v2975_v52, 0.0 }
 0x3ad   : > { %3021 = vst.msk [vmem:[%s386_s25 + $0x18] sm:$0xff] %vm1455_vm3, %v3013_v49 }
 0x3ae   : > { %3019 = vst.msk [vmem:[%s386_s25 + $0x8] sm:$0xff] %vm1455_vm3, %v3011_v10  ;;  %v3326_v4 = vpop.f32.mrb[28].mxu0 }
 0x3af   : > { %v2996_v32 = vadd.f32 %v3326_v4, %v3187_v63  ;;  %v2987_v1 = vpop.f32.mrb[29].mxu0 }
 0x3b0   : > { %v2988_v53 = vadd.f32 %v3187_v63, %v2987_v1  ;;  %v3327_v31 = vpop.f32.mrb[30].mxu0 }
 0x3b1   : > { %v3016_v42 = vmax.f32 %v2996_v32, 0.0  ;;  %v2999_v27 = vadd.f32 %v3327_v31, %v3187_v63  ;;  %v2990_v54 = vpop.f32.mrb[31].mxu0 }
 0x3b2   : > { %v3014_v58 = vmax.f32 %v2988_v53, 0.0  ;;  %v2991_v61 = vadd.f32 %v3187_v63, %v2990_v54 }
 0x3b3   : > { %3024 = vst.msk [vmem:[%s386_s25 + $0x30] sm:$0xff] %vm1455_vm3, %v3016_v42  ;;  %v3017_v30 = vmax.f32 %v2999_v27, 0.0 }
 0x3b4   : > { %3022 = vst.msk [vmem:[%s386_s25 + $0x20] sm:$0xff] %vm1455_vm3, %v3014_v58  ;;  %v3015_v44 = vmax.f32 %v2991_v61, 0.0 }
 0x3b5   : > { %3025 = vst.msk [vmem:[%s386_s25 + $0x38] sm:$0xff] %vm1455_vm3, %v3017_v30 }
 0x3b6   : > { %3023 = vst.msk [vmem:[%s386_s25 + $0x28] sm:$0xff] %vm1455_vm3, %v3015_v44 }
 0x3b7 PF: > { %s21_s17 = sadd.s32 1, %s3369_s17  }
 0x3b8   : > { %p18_p4 = scmp.ge.s32.totalorder %s21_s17, 4  }
 0x3ba   :  { %20 = sbr.rel (!%p18_p4) target bundleno = 1 (0x1), region = 179 }

</bundles_post_ra>
